<compile_context>
chip_gen: v7x
topology: tpu7x:2x2x1
jax: 0.10.0
libtpu: 0.0.40
codegen_flags: <defaults>
</compile_context>

<pallas_src>
import jax
import jax.numpy as jnp
from jax.experimental import pallas as pl
from jax.experimental.pallas import tpu as pltpu


def _fam_conv_kernel(x1_ref, x2_ref, w_ref, b_ref, o_ref, xpad_ref):
    # x1_ref, x2_ref: (1, C, H, W)        NCHW input tile (one batch element).
    # w_ref:          (9, C, 2C)          per-tap weights, tap = kh*3 + kw.
    # b_ref:          (C, 1)              bias column.
    # o_ref:          (1, C, H*W)         lane-dense NCHW-flattened output.
    # xpad_ref:       (2C, H+2, W+2)      persistent VMEM padded-input scratch.
    _, C, H, W = x1_ref.shape
    Cin = 2 * C
    HW = H * W

    # Re-zero only the 1-pixel border strips (cheap; interior is fully
    # overwritten below, so the scratch never leaks stale data between steps,
    # and this stays correct under megacore sharding of the batch axis).
    row0 = jnp.zeros((Cin, 1, W + 2), dtype=xpad_ref.dtype)
    col0 = jnp.zeros((Cin, H + 2, 1), dtype=xpad_ref.dtype)
    xpad_ref[:, 0:1, :] = row0
    xpad_ref[:, H + 1:H + 2, :] = row0
    xpad_ref[:, :, 0:1] = col0
    xpad_ref[:, :, W + 1:W + 2] = col0

    # Fused channel concat (x1 ++ x2) + zero pad: two interior copies into the
    # scratch -- no jnp.concatenate / jnp.pad value chains, no HBM round trip.
    xpad_ref[0:C, 1:H + 1, 1:W + 1] = x1_ref[0]
    xpad_ref[C:Cin, 1:H + 1, 1:W + 1] = x2_ref[0]

    # 3x3 conv as 9 tap matmuls accumulated in f32:
    #   acc[co, p] += w_tap[co, ci] * window_tap[ci, p],   p = h*W + w.
    # Output stays channel-major so the lane axis is H*W (lane-dense, no
    # channel padding) and the store maps straight onto NCHW memory.
    acc = jnp.broadcast_to(b_ref[...].astype(jnp.float32), (C, HW))
    for kh in range(3):
        for kw in range(3):
            win = xpad_ref[:, kh:kh + H, kw:kw + W].reshape(Cin, HW)
            w_tap = w_ref[kh * 3 + kw]
            # TODO(synk): if the accuracy budget allows, cast win/w_tap to
            # bf16 here (keep preferred_element_type=f32) for the native
            # bf16 MXU path; the test tolerance would then need loosening.
            acc = acc + jnp.dot(w_tap, win, preferred_element_type=jnp.float32)

    o_ref[0] = acc.astype(o_ref.dtype)


def fam_forward(x1, x2, weight, bias):
    """FAM forward pass.

    Args:
      x1, x2: (N, C, H, W) float32 arrays (PyTorch NCHW convention).
      weight: (C, 2C, 3, 3) float32 (PyTorch OIHW convention).
      bias:   (C,) float32.

    Returns:
      (N, C, H, W) float32, identical to the PyTorch module output.
    """
    N, C, H, W = x1.shape
    Cin = 2 * C
    HW = H * W

    # OIHW (C, 2C, 3, 3) -> tap-major (9, C, 2C); row tap = kh*3 + kw matches
    # the window order produced in the kernel.
    w_taps = jnp.transpose(weight, (2, 3, 0, 1)).reshape(9, C, Cin)
    b_col = bias.reshape(C, 1)

    # TODO(synk): for large H*W add a second grid axis over row tiles of H
    #   with a 2-row halo so the per-step block stays under v7x's 64 MiB VMEM.
    # TODO(synk): for large N / small H*W, process Nb batch elements per grid
    #   step to amortize the ~0.35us/step grid overhead.
    # TODO(synk): for large C, mark the resident weight/bias BlockSpecs with
    #   pipeline_mode=pl.Buffered(1) (constant index_map -> no double buffer).
    out_flat = pl.pallas_call(
        _fam_conv_kernel,
        out_shape=jax.ShapeDtypeStruct((N, C, HW), x1.dtype),
        grid_spec=pltpu.PrefetchScalarGridSpec(
            num_scalar_prefetch=0,
            grid=(N,),
            in_specs=[
                pl.BlockSpec((1, C, H, W), lambda n: (n, 0, 0, 0)),   # x1 (NCHW)
                pl.BlockSpec((1, C, H, W), lambda n: (n, 0, 0, 0)),   # x2 (NCHW)
                pl.BlockSpec((9, C, Cin), lambda n: (0, 0, 0)),       # weights (resident)
                pl.BlockSpec((C, 1), lambda n: (0, 0)),               # bias (resident)
            ],
            out_specs=pl.BlockSpec((1, C, HW), lambda n: (n, 0, 0)),
            scratch_shapes=[pltpu.VMEM((Cin, H + 2, W + 2), x1.dtype)],
        ),
        compiler_params=pltpu.CompilerParams(
            dimension_semantics=("parallel",),
            # Above the v5e/v6e default scoped limits, below v7x's 64 MiB
            # physical VMEM; blocks here are tiny so this only buys headroom.
            vmem_limit_bytes=48 * 1024 * 1024,
        ),
    )(x1, x2, w_taps, b_col)

    # (N, C, H*W) is already NCHW memory order: free reshape, no transpose.
    return out_flat.reshape(N, C, H, W)


if __name__ == "__main__":
    # Small, deterministic setup: batch=2, channel=4, spatial=16.
    N, C, H, W = 2, 4, 16, 16
    key = jax.random.PRNGKey(0)
    k1, k2, kw, kb = jax.random.split(key, 4)

    x1 = jax.random.normal(k1, (N, C, H, W), dtype=jnp.float32)
    x2 = jax.random.normal(k2, (N, C, H, W), dtype=jnp.float32)

    # Deterministic parameter init (Conv2d(2C -> C, 3x3), OIHW + bias).
    fan_in = 2 * C * 3 * 3
    bound = 1.0 / jnp.sqrt(fan_in)
    weight = jax.random.uniform(
        kw, (C, 2 * C, 3, 3), dtype=jnp.float32, minval=-bound, maxval=bound
    )
    bias = jax.random.uniform(
        kb, (C,), dtype=jnp.float32, minval=-bound, maxval=bound
    )

    out = jax.block_until_ready(fam_forward(x1, x2, weight, bias))

    # Reference check against XLA's conv (same semantics as PyTorch Conv2d).
    x_cat = jnp.concatenate([x1, x2], axis=1)
    ref = jax.lax.conv_general_dilated(
        x_cat, weight, window_strides=(1, 1), padding=((1, 1), (1, 1)),
        dimension_numbers=("NCHW", "OIHW", "NCHW"),
    ) + bias.reshape(1, C, 1, 1)

    assert out.shape == (N, C, H, W)
    assert jnp.allclose(out, ref, atol=1e-4, rtol=1e-4)
    print("KERNEL_OK")
</pallas_src>

<mosaic_0001>
module attributes {stable_mosaic.version = 11 : i64} {
  func.func @_fam_conv_kernel(%arg0: i32, %arg1: memref<1x4x16x16xf32, #tpu.memory_space<vmem>>, %arg2: memref<1x4x16x16xf32, #tpu.memory_space<vmem>>, %arg3: memref<9x4x8xf32, #tpu.memory_space<vmem>>, %arg4: memref<4x1xf32, #tpu.memory_space<vmem>>, %arg5: memref<1x4x256xf32, #tpu.memory_space<vmem>>, %arg6: memref<8x18x18xf32, #tpu.memory_space<vmem>>) attributes {dimension_semantics = [#tpu.dimension_semantics<parallel>], iteration_bounds = array<i64: 2>, scalar_prefetch = 0 : i64, scratch_operands = 1 : i64, tpu.core_type = #tpu.core_type<tc>, window_params = [{transform_indices = @transform_0, window_bounds = array<i64: 1, 4, 16, 16>}, {transform_indices = @transform_1, window_bounds = array<i64: 1, 4, 16, 16>}, {pipeline_mode = #tpu.pipeline_mode<synchronous>, transform_indices = @transform_2, window_bounds = array<i64: 9, 4, 8>}, {pipeline_mode = #tpu.pipeline_mode<synchronous>, transform_indices = @transform_3, window_bounds = array<i64: 4, 1>}, {transform_indices = @transform_4, window_bounds = array<i64: 1, 4, 256>}]} {
    %cst = arith.constant 0.000000e+00 : f32
    %0 = vector.broadcast %cst : f32 to vector<8x1x18xf32>
    %cst_0 = arith.constant 0.000000e+00 : f32
    %1 = vector.broadcast %cst_0 : f32 to vector<8x18x1xf32>
    %c0 = arith.constant 0 : index
    %c0_1 = arith.constant 0 : index
    %c0_2 = arith.constant 0 : index
    %2 = vector.load %arg6[%c0, %c0_1, %c0_2] : memref<8x18x18xf32, #tpu.memory_space<vmem>>, vector<8x1x18xf32>
    tpu.vector_store %arg6[%c0, %c0_1, %c0_2], %0 {strides = array<i32>} : memref<8x18x18xf32, #tpu.memory_space<vmem>>, vector<8x1x18xf32>,
    %c0_3 = arith.constant 0 : index
    %c17 = arith.constant 17 : index
    %c0_4 = arith.constant 0 : index
    %3 = vector.load %arg6[%c0_3, %c17, %c0_4] : memref<8x18x18xf32, #tpu.memory_space<vmem>>, vector<8x1x18xf32>
    tpu.vector_store %arg6[%c0_3, %c17, %c0_4], %0 {strides = array<i32>} : memref<8x18x18xf32, #tpu.memory_space<vmem>>, vector<8x1x18xf32>,
    %c0_5 = arith.constant 0 : index
    %c0_6 = arith.constant 0 : index
    %c0_7 = arith.constant 0 : index
    %4 = vector.load %arg6[%c0_5, %c0_6, %c0_7] : memref<8x18x18xf32, #tpu.memory_space<vmem>>, vector<8x18x1xf32>
    tpu.vector_store %arg6[%c0_5, %c0_6, %c0_7], %1 {strides = array<i32>} : memref<8x18x18xf32, #tpu.memory_space<vmem>>, vector<8x18x1xf32>,
    %c0_8 = arith.constant 0 : index
    %c0_9 = arith.constant 0 : index
    %c17_10 = arith.constant 17 : index
    %5 = vector.load %arg6[%c0_8, %c0_9, %c17_10] : memref<8x18x18xf32, #tpu.memory_space<vmem>>, vector<8x18x1xf32>
    tpu.vector_store %arg6[%c0_8, %c0_9, %c17_10], %1 {strides = array<i32>} : memref<8x18x18xf32, #tpu.memory_space<vmem>>, vector<8x18x1xf32>,
    %c0_11 = arith.constant 0 : index
    %c0_12 = arith.constant 0 : index
    %c0_13 = arith.constant 0 : index
    %c0_14 = arith.constant 0 : index
    %6 = vector.load %arg1[%c0_11, %c0_12, %c0_13, %c0_14] : memref<1x4x16x16xf32, #tpu.memory_space<vmem>>, vector<1x4x16x16xf32>
    %7 = vector.shape_cast %6 : vector<1x4x16x16xf32> to vector<4x16x16xf32>
    %c0_15 = arith.constant 0 : index
    %c1 = arith.constant 1 : index
    %c1_16 = arith.constant 1 : index
    %8 = vector.load %arg6[%c0_15, %c1, %c1_16] : memref<8x18x18xf32, #tpu.memory_space<vmem>>, vector<4x16x16xf32>
    tpu.vector_store %arg6[%c0_15, %c1, %c1_16], %7 {strides = array<i32>} : memref<8x18x18xf32, #tpu.memory_space<vmem>>, vector<4x16x16xf32>,
    %c0_17 = arith.constant 0 : index
    %c0_18 = arith.constant 0 : index
    %c0_19 = arith.constant 0 : index
    %c0_20 = arith.constant 0 : index
    %9 = vector.load %arg2[%c0_17, %c0_18, %c0_19, %c0_20] : memref<1x4x16x16xf32, #tpu.memory_space<vmem>>, vector<1x4x16x16xf32>
    %10 = vector.shape_cast %9 : vector<1x4x16x16xf32> to vector<4x16x16xf32>
    %c4 = arith.constant 4 : index
    %c1_21 = arith.constant 1 : index
    %c1_22 = arith.constant 1 : index
    %11 = vector.load %arg6[%c4, %c1_21, %c1_22] : memref<8x18x18xf32, #tpu.memory_space<vmem>>, vector<4x16x16xf32>
    tpu.vector_store %arg6[%c4, %c1_21, %c1_22], %10 {strides = array<i32>} : memref<8x18x18xf32, #tpu.memory_space<vmem>>, vector<4x16x16xf32>,
    %c0_23 = arith.constant 0 : index
    %c0_24 = arith.constant 0 : index
    %12 = vector.load %arg4[%c0_23, %c0_24] : memref<4x1xf32, #tpu.memory_space<vmem>>, vector<4x1xf32>
    %13 = vector.shape_cast %12 : vector<4x1xf32> to vector<4x1xf32>
    %14 = vector.broadcast %13 : vector<4x1xf32> to vector<4x256xf32>
    %c0_25 = arith.constant 0 : index
    %c0_26 = arith.constant 0 : index
    %c0_27 = arith.constant 0 : index
    %15 = vector.load %arg6[%c0_25, %c0_26, %c0_27] : memref<8x18x18xf32, #tpu.memory_space<vmem>>, vector<8x16x16xf32>
    %16 = vector.shape_cast %15 : vector<8x16x16xf32> to vector<8x256xf32>
    %c0_28 = arith.constant 0 : index
    %c0_29 = arith.constant 0 : index
    %c0_30 = arith.constant 0 : index
    %17 = vector.load %arg3[%c0_28, %c0_29, %c0_30] : memref<9x4x8xf32, #tpu.memory_space<vmem>>, vector<1x4x8xf32>
    %18 = vector.shape_cast %17 : vector<1x4x8xf32> to vector<4x8xf32>
    %cst_31 = arith.constant dense<0.000000e+00> : vector<4x256xf32>
    %19 = tpu.matmul %18, %16, %cst_31 {dimension_numbers = #tpu.dot_dimension_numbers<[1], [0], [0], [1], [0, 0, 1, 1], [], []>} : vector<4x8xf32>, vector<8x256xf32>, vector<4x256xf32> -> vector<4x256xf32>
    %20 = arith.addf %14, %19 : vector<4x256xf32>
    %c0_32 = arith.constant 0 : index
    %c0_33 = arith.constant 0 : index
    %c1_34 = arith.constant 1 : index
    %21 = vector.load %arg6[%c0_32, %c0_33, %c1_34] : memref<8x18x18xf32, #tpu.memory_space<vmem>>, vector<8x16x16xf32>
    %22 = vector.shape_cast %21 : vector<8x16x16xf32> to vector<8x256xf32>
    %c1_35 = arith.constant 1 : index
    %c0_36 = arith.constant 0 : index
    %c0_37 = arith.constant 0 : index
    %23 = vector.load %arg3[%c1_35, %c0_36, %c0_37] : memref<9x4x8xf32, #tpu.memory_space<vmem>>, vector<1x4x8xf32>
    %24 = vector.shape_cast %23 : vector<1x4x8xf32> to vector<4x8xf32>
    %cst_38 = arith.constant dense<0.000000e+00> : vector<4x256xf32>
    %25 = tpu.matmul %24, %22, %cst_38 {dimension_numbers = #tpu.dot_dimension_numbers<[1], [0], [0], [1], [0, 0, 1, 1], [], []>} : vector<4x8xf32>, vector<8x256xf32>, vector<4x256xf32> -> vector<4x256xf32>
    %26 = arith.addf %20, %25 : vector<4x256xf32>
    %c0_39 = arith.constant 0 : index
    %c0_40 = arith.constant 0 : index
    %c2 = arith.constant 2 : index
    %27 = vector.load %arg6[%c0_39, %c0_40, %c2] : memref<8x18x18xf32, #tpu.memory_space<vmem>>, vector<8x16x16xf32>
    %28 = vector.shape_cast %27 : vector<8x16x16xf32> to vector<8x256xf32>
    %c2_41 = arith.constant 2 : index
    %c0_42 = arith.constant 0 : index
    %c0_43 = arith.constant 0 : index
    %29 = vector.load %arg3[%c2_41, %c0_42, %c0_43] : memref<9x4x8xf32, #tpu.memory_space<vmem>>, vector<1x4x8xf32>
    %30 = vector.shape_cast %29 : vector<1x4x8xf32> to vector<4x8xf32>
    %cst_44 = arith.constant dense<0.000000e+00> : vector<4x256xf32>
    %31 = tpu.matmul %30, %28, %cst_44 {dimension_numbers = #tpu.dot_dimension_numbers<[1], [0], [0], [1], [0, 0, 1, 1], [], []>} : vector<4x8xf32>, vector<8x256xf32>, vector<4x256xf32> -> vector<4x256xf32>
    %32 = arith.addf %26, %31 : vector<4x256xf32>
    %c0_45 = arith.constant 0 : index
    %c1_46 = arith.constant 1 : index
    %c0_47 = arith.constant 0 : index
    %33 = vector.load %arg6[%c0_45, %c1_46, %c0_47] : memref<8x18x18xf32, #tpu.memory_space<vmem>>, vector<8x16x16xf32>
    %34 = vector.shape_cast %33 : vector<8x16x16xf32> to vector<8x256xf32>
    %c3 = arith.constant 3 : index
    %c0_48 = arith.constant 0 : index
    %c0_49 = arith.constant 0 : index
    %35 = vector.load %arg3[%c3, %c0_48, %c0_49] : memref<9x4x8xf32, #tpu.memory_space<vmem>>, vector<1x4x8xf32>
    %36 = vector.shape_cast %35 : vector<1x4x8xf32> to vector<4x8xf32>
    %cst_50 = arith.constant dense<0.000000e+00> : vector<4x256xf32>
    %37 = tpu.matmul %36, %34, %cst_50 {dimension_numbers = #tpu.dot_dimension_numbers<[1], [0], [0], [1], [0, 0, 1, 1], [], []>} : vector<4x8xf32>, vector<8x256xf32>, vector<4x256xf32> -> vector<4x256xf32>
    %38 = arith.addf %32, %37 : vector<4x256xf32>
    %c0_51 = arith.constant 0 : index
    %c1_52 = arith.constant 1 : index
    %c1_53 = arith.constant 1 : index
    %39 = vector.load %arg6[%c0_51, %c1_52, %c1_53] : memref<8x18x18xf32, #tpu.memory_space<vmem>>, vector<8x16x16xf32>
    %40 = vector.shape_cast %39 : vector<8x16x16xf32> to vector<8x256xf32>
    %c4_54 = arith.constant 4 : index
    %c0_55 = arith.constant 0 : index
    %c0_56 = arith.constant 0 : index
    %41 = vector.load %arg3[%c4_54, %c0_55, %c0_56] : memref<9x4x8xf32, #tpu.memory_space<vmem>>, vector<1x4x8xf32>
    %42 = vector.shape_cast %41 : vector<1x4x8xf32> to vector<4x8xf32>
    %cst_57 = arith.constant dense<0.000000e+00> : vector<4x256xf32>
    %43 = tpu.matmul %42, %40, %cst_57 {dimension_numbers = #tpu.dot_dimension_numbers<[1], [0], [0], [1], [0, 0, 1, 1], [], []>} : vector<4x8xf32>, vector<8x256xf32>, vector<4x256xf32> -> vector<4x256xf32>
    %44 = arith.addf %38, %43 : vector<4x256xf32>
    %c0_58 = arith.constant 0 : index
    %c1_59 = arith.constant 1 : index
    %c2_60 = arith.constant 2 : index
    %45 = vector.load %arg6[%c0_58, %c1_59, %c2_60] : memref<8x18x18xf32, #tpu.memory_space<vmem>>, vector<8x16x16xf32>
    %46 = vector.shape_cast %45 : vector<8x16x16xf32> to vector<8x256xf32>
    %c5 = arith.constant 5 : index
    %c0_61 = arith.constant 0 : index
    %c0_62 = arith.constant 0 : index
    %47 = vector.load %arg3[%c5, %c0_61, %c0_62] : memref<9x4x8xf32, #tpu.memory_space<vmem>>, vector<1x4x8xf32>
    %48 = vector.shape_cast %47 : vector<1x4x8xf32> to vector<4x8xf32>
    %cst_63 = arith.constant dense<0.000000e+00> : vector<4x256xf32>
    %49 = tpu.matmul %48, %46, %cst_63 {dimension_numbers = #tpu.dot_dimension_numbers<[1], [0], [0], [1], [0, 0, 1, 1], [], []>} : vector<4x8xf32>, vector<8x256xf32>, vector<4x256xf32> -> vector<4x256xf32>
    %50 = arith.addf %44, %49 : vector<4x256xf32>
    %c0_64 = arith.constant 0 : index
    %c2_65 = arith.constant 2 : index
    %c0_66 = arith.constant 0 : index
    %51 = vector.load %arg6[%c0_64, %c2_65, %c0_66] : memref<8x18x18xf32, #tpu.memory_space<vmem>>, vector<8x16x16xf32>
    %52 = vector.shape_cast %51 : vector<8x16x16xf32> to vector<8x256xf32>
    %c6 = arith.constant 6 : index
    %c0_67 = arith.constant 0 : index
    %c0_68 = arith.constant 0 : index
    %53 = vector.load %arg3[%c6, %c0_67, %c0_68] : memref<9x4x8xf32, #tpu.memory_space<vmem>>, vector<1x4x8xf32>
    %54 = vector.shape_cast %53 : vector<1x4x8xf32> to vector<4x8xf32>
    %cst_69 = arith.constant dense<0.000000e+00> : vector<4x256xf32>
    %55 = tpu.matmul %54, %52, %cst_69 {dimension_numbers = #tpu.dot_dimension_numbers<[1], [0], [0], [1], [0, 0, 1, 1], [], []>} : vector<4x8xf32>, vector<8x256xf32>, vector<4x256xf32> -> vector<4x256xf32>
    %56 = arith.addf %50, %55 : vector<4x256xf32>
    %c0_70 = arith.constant 0 : index
    %c2_71 = arith.constant 2 : index
    %c1_72 = arith.constant 1 : index
    %57 = vector.load %arg6[%c0_70, %c2_71, %c1_72] : memref<8x18x18xf32, #tpu.memory_space<vmem>>, vector<8x16x16xf32>
    %58 = vector.shape_cast %57 : vector<8x16x16xf32> to vector<8x256xf32>
    %c7 = arith.constant 7 : index
    %c0_73 = arith.constant 0 : index
    %c0_74 = arith.constant 0 : index
    %59 = vector.load %arg3[%c7, %c0_73, %c0_74] : memref<9x4x8xf32, #tpu.memory_space<vmem>>, vector<1x4x8xf32>
    %60 = vector.shape_cast %59 : vector<1x4x8xf32> to vector<4x8xf32>
    %cst_75 = arith.constant dense<0.000000e+00> : vector<4x256xf32>
    %61 = tpu.matmul %60, %58, %cst_75 {dimension_numbers = #tpu.dot_dimension_numbers<[1], [0], [0], [1], [0, 0, 1, 1], [], []>} : vector<4x8xf32>, vector<8x256xf32>, vector<4x256xf32> -> vector<4x256xf32>
    %62 = arith.addf %56, %61 : vector<4x256xf32>
    %c0_76 = arith.constant 0 : index
    %c2_77 = arith.constant 2 : index
    %c2_78 = arith.constant 2 : index
    %63 = vector.load %arg6[%c0_76, %c2_77, %c2_78] : memref<8x18x18xf32, #tpu.memory_space<vmem>>, vector<8x16x16xf32>
    %64 = vector.shape_cast %63 : vector<8x16x16xf32> to vector<8x256xf32>
    %c8 = arith.constant 8 : index
    %c0_79 = arith.constant 0 : index
    %c0_80 = arith.constant 0 : index
    %65 = vector.load %arg3[%c8, %c0_79, %c0_80] : memref<9x4x8xf32, #tpu.memory_space<vmem>>, vector<1x4x8xf32>
    %66 = vector.shape_cast %65 : vector<1x4x8xf32> to vector<4x8xf32>
    %cst_81 = arith.constant dense<0.000000e+00> : vector<4x256xf32>
    %67 = tpu.matmul %66, %64, %cst_81 {dimension_numbers = #tpu.dot_dimension_numbers<[1], [0], [0], [1], [0, 0, 1, 1], [], []>} : vector<4x8xf32>, vector<8x256xf32>, vector<4x256xf32> -> vector<4x256xf32>
    %68 = arith.addf %62, %67 : vector<4x256xf32>
    %c0_82 = arith.constant 0 : index
    %c0_83 = arith.constant 0 : index
    %c0_84 = arith.constant 0 : index
    %69 = vector.load %arg5[%c0_82, %c0_83, %c0_84] : memref<1x4x256xf32, #tpu.memory_space<vmem>>, vector<1x4x256xf32>
    %70 = vector.shape_cast %69 : vector<1x4x256xf32> to vector<4x256xf32>
    %71 = vector.shape_cast %68 : vector<4x256xf32> to vector<1x4x256xf32>
    tpu.vector_store %arg5[%c0_82, %c0_83, %c0_84], %71 {strides = array<i32>} : memref<1x4x256xf32, #tpu.memory_space<vmem>>, vector<1x4x256xf32>,
    return
  }
  func.func @transform_0(%arg0: i32) -> (i32, i32, i32, i32) {
    %c0_i32 = arith.constant 0 : i32
    %c0_i32_0 = arith.constant 0 : i32
    %c0_i32_1 = arith.constant 0 : i32
    %c0_i32_2 = arith.constant 0 : i32
    return %arg0, %c0_i32, %c0_i32_0, %c0_i32_1 : i32, i32, i32, i32
  }
  func.func @transform_1(%arg0: i32) -> (i32, i32, i32, i32) {
    %c0_i32 = arith.constant 0 : i32
    %c0_i32_0 = arith.constant 0 : i32
    %c0_i32_1 = arith.constant 0 : i32
    %c0_i32_2 = arith.constant 0 : i32
    return %arg0, %c0_i32, %c0_i32_0, %c0_i32_1 : i32, i32, i32, i32
  }
  func.func @transform_2(%arg0: i32) -> (i32, i32, i32) {
    %c0_i32 = arith.constant 0 : i32
    %c0_i32_0 = arith.constant 0 : i32
    %c0_i32_1 = arith.constant 0 : i32
    %c0_i32_2 = arith.constant 0 : i32
    return %c0_i32, %c0_i32_0, %c0_i32_1 : i32, i32, i32
  }
  func.func @transform_3(%arg0: i32) -> (i32, i32) {
    %c0_i32 = arith.constant 0 : i32
    %c0_i32_0 = arith.constant 0 : i32
    %c0_i32_1 = arith.constant 0 : i32
    return %c0_i32, %c0_i32_0 : i32, i32
  }
  func.func @transform_4(%arg0: i32) -> (i32, i32, i32) {
    %c0_i32 = arith.constant 0 : i32
    %c0_i32_0 = arith.constant 0 : i32
    %c0_i32_1 = arith.constant 0 : i32
    return %arg0, %c0_i32, %c0_i32_0 : i32, i32, i32
  }
}

</mosaic_0001>

<bundles_post_ra>
// kernel: tpu_custom_call.1
= control target key start
LH: loop header
LB: loop body
LE: loop exit
PB: predicated region body
PF: predicated region fallthrough
CT: control target
= control target key end

     0   :  { %9 = vsyncpa [#allocation4], 0  ;;  %s7670_s0 = inlined_call_operand.hbm [shape: f32[2,4,16,16], index: 0, kind: input, shape index: {}]   ;;  %s7671_s1 = inlined_call_operand.hbm [shape: f32[2,4,16,16], index: 1, kind: input, shape index: {}]   ;;  %s7672_s2 = inlined_call_operand.vmem [shape: f32[9,4,8], index: 2, kind: input, shape index: {}]   ;;  %s7673_s3 = inlined_call_operand.vmem [shape: f32[4,1], index: 3, kind: input, shape index: {}]   ;;  %s7674_s4 = inlined_call_operand.hbm [shape: f32[2,4,256], index: 4, kind: output, shape index: {}]  }
   0x1   :  { %11 = vsyncpa [#allocation4 + $0x1], 0 }
   0x2   :  { %12 = vsyncpa [#allocation7], 0 }
   0x3   :  { %14 = vsyncpa [#allocation7 + $0x1], 0 }
   0x4   :  { %15 = vsyncpa [#allocation5], 0 }
   0x5   :  { %17 = vsyncpa [#allocation5 + $0x1], 0  ;;  %s5219_s15 = smov 0   ;;  %s5221_s16 = smov 0  }
   0x6   :  { %s5223_s17 = smov 0   ;;  %s5225_s18 = smov 0  }
   0x7 LB: > { %s5240_s19 = sadd.s32 4294967295, %s5173_s18   ;;  %s4857_s20 = sadd.s32 4294967294, %s5173_s18   ;;  %s5173_s18 = sphi %s5225_s18, %s8093_s18   ;;  %s5169_s17 = sphi %s5223_s17, %s8092_s17   ;;  %s5165_s16 = sphi %s5221_s16, %s8091_s16   ;;  %s5161_s15 = sphi %s5219_s15, %s8090_s15  }
   0x8   : > { %s5244_s21 = sadd.s32 1, %s5173_s18   ;;  %s30_s22 = sadd.s32 1, %s5169_s17 }
   0x9   : > { %s27_s23 = ssub.s32 %s5173_s18, %s5244_s21  ;;  %p37_p0 = scmp.ne.s32.totalorder %s5169_s17, %s5165_s16 }
   0xa   : > { %p28_p1 = scmp.eq.s32.totalorder %s27_s23, 0  ;;  %p38_p2 = scmp.eq.s32.totalorder %s5173_s18, 0 }
   0xb   : > { %p43_p3 = scmp.ne.s32.totalorder %s5165_s16, %s5161_s15  ;;  %p44_p4 = scmp.eq.s32.totalorder %s5240_s19, 0 }
   0xc   : > { %s5256_s24 = scalar_select %p28_p1, %s5169_s17, %s30_s22  }
   0xd   : > { %p5258_p5 = por %p38_p2, %p37_p0  ;;  %p5262_p6 = por %p44_p4, %p43_p3 }
   0xe   : > { %p135_p7 = scmp.eq.s32.totalorder %s5240_s19, 1  ;;  %p141_p8 = scmp.eq.s32.totalorder %s4857_s20, 1 }
   0xf   : > { %s7820_s26 = scalar_select %p5262_p6, 1, 0 }
  0x10   : > { %p4930_p10 = scmp.lt.s32.totalorder %s5173_s18, 2  ;;  %p5269_p11 = por %p135_p7, %p37_p0 }
  0x11   : > { %p5273_p12 = por %p141_p8, %p43_p3  ;;  %s5278_s29 = sand.u32 1, %s5169_s17  }
  0x12   : > { %s7821_s27 = scalar_select %p5269_p11, 1, 0 }
  0x13   : > { %s7822_s28 = scalar_select %p5273_p12, 1, 0 }
  0x14   : > { %s4892_s30 = sshll.u32 %s5173_s18, 10  ;;  %s4860_s5 = sshll.u32 %s5278_s29, 6 }
  0x15   : > { %s5287_s8 = scalar_lea.hbm %s7670_s0, %s4892_s30  ;;  %s171_s9 = scalar_lea.vmem [#allocation3], %s4860_s5 }
  0x16   : > { %s178_s10 = sshll.u32 %s171_s9, 4  ;;  %p5293_p13 = pnand %p4930_p10, %p5258_p5  ;;  %s5297_s10 = int_to_ptr.vmem [resolvable:$true] %s178_s10 }
  0x17   : > { %s168_s12 = scalar_lea.sflag [#allocation4], %s5278_s29  ;;  %s5043_s13 = scalar_lea.hbm %s5287_s8, 1024 }
  0x18   : > { %p5044_p0 = scmp.ne.s32.totalorder %s5287_s8, %s5043_s13  ;;  %p5045_p1 = pneg %p5293_p13 }
  0x19   : > { %s5048_s22 = scalar_lea.hbm %s7670_s0, 2048  ;;  %p5049_p4 = scmp.lt.u32.totalorder %s5287_s8, %s7670_s0 }
  0x1a   : > { %p5046_p2 = pnand %p5045_p1, %p5044_p0  ;;  %p5050_p5 = scmp.lt.u32.totalorder %s5048_s22, %s5043_s13 }
  0x1b   : > { %p5052_p8 = scmp.lt.u32.totalorder %s5043_s13, %s5287_s8 }
  0x1c   : > { %p5047_p3 = pneg %p5046_p2  ;;  %p5051_p7 = por %p5050_p5, %p5049_p4 }
  0x1e   : > { %p5053_p10 = por %p5052_p8, %p5051_p7 }
  0x20   : > { %p5054_p9 = pnand %p5053_p10, %p5047_p3 }
  0x22   : > { %5057 = shalt.err (!%p5054_p9)
}
  0x23   : > { %s5058_s6 = scalar_lea.vmem %s5297_s10, 1024  ;;  %s5175_s7 = smov [#allocation3]  }
  0x24   : > { %p5059_p0 = scmp.ne.s32.totalorder %s5297_s10, %s5058_s6  ;;  %s5063_s9 = sshll.u32 %s5175_s7, 4  ;;  %s5064_s9 = int_to_ptr.vmem [resolvable:$false] %s5063_s9 }
  0x25   : > { %s5065_s14 = scalar_lea.vmem %s5064_s9, 2048  ;;  %p5066_p11 = scmp.lt.s32.totalorder %s5297_s10, %s5064_s9 }
  0x26   : > { %p5061_p2 = pnand %p5059_p0, %p5045_p1  ;;  %p5067_p4 = scmp.lt.s32.totalorder %s5065_s14, %s5058_s6 }
  0x28   : > { %p5062_p12 = pneg %p5061_p2  ;;  %p5068_p5 = por %p5067_p4, %p5066_p11 }
  0x2a   : > { %p5069_p7 = pnand %p5068_p5, %p5062_p12 }
  0x2c   : > { %5072 = shalt.err (!%p5069_p7)
}
  0x2d   : > { %s5176_s13 = smov 128   ;;  %s5177_s20 = smov 8  }
  0x2e   : > { %4922 = dma.hbm_to_vmem [thread:$0]  (!%p5293_p13), %s5287_s8, 1024, %s5297_s10, %s168_s12, %s5176_s13, %s5176_s13, %s5177_s20  }
  0x2f   : > { %p4866_p9 = scmp.ge.s32.totalorder %s5173_s18, 1  ;;  %p207_p11 = scmp.lt.s32.totalorder %s5173_s18, 3 }
  0x30   : > { %s5341_s6 = scalar_lea.hbm %s7671_s1, %s4892_s30  ;;  %s192_s7 = scalar_lea.vmem [#allocation6], %s4860_s5 }
  0x31   : > { %p5332_p12 = pnand %p4866_p9, %p207_p11  ;;  %s199_s9 = sshll.u32 %s192_s7, 4  ;;  %s5345_s9 = int_to_ptr.vmem [resolvable:$true] %s199_s9 }
  0x32   : > { %s189_s8 = scalar_lea.sflag [#allocation7], %s5278_s29  ;;  %s5073_s10 = scalar_lea.hbm %s5341_s6, 1024 }
  0x33   : > { %p5074_p3 = scmp.ne.s32.totalorder %s5341_s6, %s5073_s10  ;;  %s5078_s30 = scalar_lea.hbm %s7671_s1, 2048 }
  0x34   : > { %p5079_p0 = scmp.lt.u32.totalorder %s5341_s6, %s7671_s1  ;;  %p5080_p2 = scmp.lt.u32.totalorder %s5078_s30, %s5073_s10 }
  0x35   : > { %p5076_p8 = pnand %p5074_p3, %p5045_p1  ;;  %p5082_p5 = scmp.lt.u32.totalorder %s5073_s10, %s5341_s6 }
  0x36   : > { %p5081_p4 = por %p5080_p2, %p5079_p0 }
  0x37   : > { %p5077_p10 = pneg %p5076_p8 }
  0x38   : > { %p5083_p7 = por %p5082_p5, %p5081_p4 }
  0x3a   : > { %p5084_p9 = pnand %p5083_p7, %p5077_p10 }
  0x3c   : > { %5087 = shalt.err (!%p5084_p9)
}
  0x3d   : > { %s5088_s5 = scalar_lea.vmem %s5345_s9, 1024  ;;  %s5178_s7 = smov [#allocation6]  }
  0x3e   : > { %p5089_p11 = scmp.ne.s32.totalorder %s5345_s9, %s5088_s5  ;;  %s5093_s12 = sshll.u32 %s5178_s7, 4  ;;  %s5094_s12 = int_to_ptr.vmem [resolvable:$false] %s5093_s12 }
  0x3f   : > { %s5095_s14 = scalar_lea.vmem %s5094_s12, 2048  ;;  %p5096_p6 = scmp.lt.s32.totalorder %s5345_s9, %s5094_s12 }
  0x40   : > { %p5091_p3 = pnand %p5089_p11, %p5045_p1  ;;  %p5097_p0 = scmp.lt.s32.totalorder %s5095_s14, %s5088_s5 }
  0x42   : > { %p5092_p8 = pneg %p5091_p3  ;;  %p5098_p2 = por %p5097_p0, %p5096_p6 }
  0x44   : > { %p5099_p4 = pnand %p5098_p2, %p5092_p8 }
  0x46   : > { %5102 = shalt.err (!%p5099_p4)
}
  0x47   : > { %4925 = dma.hbm_to_vmem [thread:$0]  (!%p5293_p13), %s5341_s6, 1024, %s5345_s9, %s189_s8, %s5176_s13, %s5176_s13, %s5177_s20  }
  0x48   : > { %211 = sbr.rel (%p5332_p12) target bundleno = 1008 (0x3f0), region = 36 }
  0x4f   : > { %s5379_s10 = sand.u32 1, %s5165_s16   ;;  %p7825_p6 = scmp.ne.s32.totalorder %s7820_s26, 0 }
  0x50   : > { %s4867_s30 = sshll.u32 %s5379_s10, 6  ;;  %s214_s23 = scalar_lea.sflag [#allocation4], %s5379_s10 }
  0x51   : > { %s5383_s11 = scalar_lea.vmem [#allocation3], %s4867_s30 }
  0x52   : > { %5148 = dma.done.wait (%p7825_p6), %s214_s23, 1024  }
  0x53   : > { %5150 = vsyncadd (%p7825_p6), %s214_s23, 4294966272  ;;  %s223_s29 = scalar_lea.sflag [#allocation7], %s5379_s10  ;;  %s5390_s13 = scalar_lea.vmem [#allocation6], %s4867_s30 }
  0x54   : > { %5152 = dma.done.wait (%p7825_p6), %s223_s29, 1024  }
  0x55   : > { %5154 = vsyncadd (%p7825_p6), %s223_s29, 4294966272  ;;  %vm256_vm0 = vcmask 139264   ;;  %vm273_vm1 = vcmask 7168   ;;  %v5179_v0 = vmov 0   ;;  %vm299_vm2 = vcmask 146568   ;;  %v327_v2 = vld [vmem:[%s5383_s11 + $0x10] sm:$0xff] }
  0x56   : > { %4980 = vset.pattern.permute.xlu0 %v5179_v0  ;;  %v7677_v1 = vmov 0.0   ;;  %vm276_vm3 = vcmask 1024   ;;  %vm302_vm4 = vcmask 140424   ;;  %v325_v3 = vld [vmem:[%s5383_s11] sm:$0xff]  ;;  %s5181_s26 = smov 1   ;;  %v328_v4 = vld [vmem:[%s5383_s11 + $0x18] sm:$0xff]  ;;  %v450_v48 = vlaneseq }
  0x57   : > { %258 = vst.msk [vmem:[#allocation2 + $0x18] sm:$0x1] %vm256_vm0, %v7677_v1  ;;  %257 = vst.msk [vmem:[#allocation2] sm:$0x1] %vm256_vm0, %v7677_v1  ;;  %2799 = vmatprep.mubr.f32.mxu0 %v7677_v1  ;;  %863 = vmatprep.mubr.f32.mxu1 %v7677_v1  ;;  %v326_v5 = vld [vmem:[%s5383_s11 + $0x8] sm:$0xff]  ;;  %v329_v7 = vld [vmem:[%s5383_s11 + $0x20] sm:$0xff] }
  0x58   : > { %279 = vst.msk [vmem:[#allocation2 + $0x20] sm:$0xff] %vm273_vm1, %v7677_v1  ;;  %275 = vst.msk [vmem:[#allocation2 + $0x8] sm:$0xff] %vm273_vm1, %v7677_v1  ;;  %345 = vrot.lane.b32.xlu1 %v327_v2, %s5181_s26  ;;  %341 = vrot.lane.b32.xlu0 %v325_v3, %s5181_s26  ;;  %v330_v6 = vld [vmem:[%s5383_s11 + $0x28] sm:$0xff]  ;;  %v332_v8 = vld [vmem:[%s5383_s11 + $0x38] sm:$0xff]  ;;  %vm365_vm5 = vcmask 138248   ;;  %s5182_s6 = smov 127  }
  0x59   : > { %259 = vst.msk [vmem:[#allocation2 + $0x30] sm:$0x1] %vm256_vm0, %v7677_v1  ;;  %260 = vst.msk [vmem:[#allocation2 + $0x48] sm:$0x1] %vm256_vm0, %v7677_v1  ;;  %v331_v9 = vld [vmem:[%s5383_s11 + $0x30] sm:$0xff]  ;;  %v375_v10 = vld [vmem:[%s5390_s13 + $0x8] sm:$0xff] }
  0x5a   : > { %261 = vst.msk [vmem:[#allocation2 + $0x60] sm:$0x1] %vm256_vm0, %v7677_v1  ;;  %262 = vst.msk [vmem:[#allocation2 + $0x78] sm:$0x1] %vm256_vm0, %v7677_v1  ;;  %v374_v11 = vld [vmem:[%s5390_s13] sm:$0xff]  ;;  %v377_v12 = vld [vmem:[%s5390_s13 + $0x18] sm:$0xff] }
  0x5b   : > { %263 = vst.msk [vmem:[#allocation2 + $0x90] sm:$0x1] %vm256_vm0, %v7677_v1  ;;  %264 = vst.msk [vmem:[#allocation2 + $0xa8] sm:$0x1] %vm256_vm0, %v7677_v1  ;;  %v376_v13 = vld [vmem:[%s5390_s13 + $0x10] sm:$0xff]  ;;  %v379_v14 = vld [vmem:[%s5390_s13 + $0x28] sm:$0xff] }
  0x5c   : > { %265 = vst.msk [vmem:[#allocation2 + $0x11] sm:$0x1] %vm256_vm0, %v7677_v1  ;;  %266 = vst.msk [vmem:[#allocation2 + $0x29] sm:$0x1] %vm256_vm0, %v7677_v1  ;;  %347 = vrot.lane.b32.xlu1 %v328_v4, %s5181_s26  ;;  %343 = vrot.lane.b32.xlu0 %v326_v5, %s5181_s26  ;;  %v378_v15 = vld [vmem:[%s5390_s13 + $0x20] sm:$0xff]  ;;  %v381_v16 = vld [vmem:[%s5390_s13 + $0x38] sm:$0xff] }
  0x5d   : > { %267 = vst.msk [vmem:[#allocation2 + $0x41] sm:$0x1] %vm256_vm0, %v7677_v1  ;;  %268 = vst.msk [vmem:[#allocation2 + $0x59] sm:$0x1] %vm256_vm0, %v7677_v1  ;;  %v380_v17 = vld [vmem:[%s5390_s13 + $0x30] sm:$0xff]  ;;  %v451_v52 = vshrl.u32 %v450_v48, 7 }
  0x5e   : > { %269 = vst.msk [vmem:[#allocation2 + $0x71] sm:$0x1] %vm256_vm0, %v7677_v1  ;;  %270 = vst.msk [vmem:[#allocation2 + $0x89] sm:$0x1] %vm256_vm0, %v7677_v1  ;;  %v423_v18 = vld [vmem:[%s7673_s3] sm:$0xf] }
  0x5f   : > { %271 = vst.msk [vmem:[#allocation2 + $0xa1] sm:$0x1] %vm256_vm0, %v7677_v1  ;;  %272 = vst.msk [vmem:[#allocation2 + $0xb9] sm:$0x1] %vm256_vm0, %v7677_v1  ;;  %v5183_v46 = vmov 1983009808  }
  0x60   : > { %282 = vst.msk [vmem:[#allocation2 + $0x38] sm:$0xff] %vm273_vm1, %v7677_v1  ;;  %285 = vst.msk [vmem:[#allocation2 + $0x50] sm:$0xff] %vm273_vm1, %v7677_v1  ;;  %351 = vrot.lane.b32.xlu1 %v330_v6, %s5181_s26  ;;  %349 = vrot.lane.b32.xlu0 %v329_v7, %s5181_s26  ;;  %v448_v47 = vunpack.c.l.s4 %v5183_v46  ;;  %v5184_v55 = vmov 1934713408   ;;  %s5185_s9 = smov 126   ;;  %s5186_s8 = smov 48  }
  0x61   : > { %288 = vst.msk [vmem:[#allocation2 + $0x68] sm:$0xff] %vm273_vm1, %v7677_v1  ;;  %291 = vst.msk [vmem:[#allocation2 + $0x80] sm:$0xff] %vm273_vm1, %v7677_v1  ;;  %v512_v56 = vunpack.c.l.s4 %v5184_v55  ;;  %s5187_s25 = smov 80   ;;  %s5188_s5 = smov 16   ;;  %vm773_vm6 = vcmask 130048   ;;  %vm775_vm7 = vcmask 261120  }
  0x62   : > { %294 = vst.msk [vmem:[#allocation2 + $0x98] sm:$0xff] %vm273_vm1, %v7677_v1  ;;  %297 = vst.msk [vmem:[#allocation2 + $0xb0] sm:$0xff] %vm273_vm1, %v7677_v1  ;;  %v449_v51 = vunpack.c.0.s8 %v448_v47  ;;  %s5189_s7 = smov 112   ;;  %s5190_s12 = smov 32   ;;  %vm777_vm8 = vcmask 392192   ;;  %vm779_vm9 = vcmask 523264  }
  0x63   : > { %278 = vst.msk [vmem:[#allocation2 + $0x18] sm:$0xff] %vm273_vm1, %v7677_v1  ;;  %274 = vst.msk [vmem:[#allocation2] sm:$0xff] %vm273_vm1, %v7677_v1  ;;  %v513_v5 = vunpack.c.0.s8 %v512_v56  ;;  %s5191_s14 = smov 64   ;;  %s5192_s30 = smov 96   ;;  %vm781_vm10 = vcmask 654336   ;;  %vm783_vm11 = vcmask 785408  }
  0x64   : > { %305 = vst.msk [vmem:[#allocation2 + $0x20] sm:$0xff] %vm299_vm2, %v7677_v1  ;;  %301 = vst.msk [vmem:[#allocation2 + $0x8] sm:$0xff] %vm299_vm2, %v7677_v1  ;;  %355 = vrot.lane.b32.xlu1 %v332_v8, %s5181_s26  ;;  %353 = vrot.lane.b32.xlu0 %v331_v9, %s5181_s26  ;;  %v5627_v62 = vsub.s32 %v449_v51, %v451_v52  ;;  %vm785_vm12 = vcmask 916480   ;;  %vm795_vm13 = vcmask 64512   ;;  %s4869_s29 = sshll.u32 %s5379_s10, 3  ;;  %s4894_s13 = sshll.u32 %s5240_s19, 7 }
  0x65   : > { %281 = vst.msk [vmem:[#allocation2 + $0x30] sm:$0xff] %vm273_vm1, %v7677_v1  ;;  %284 = vst.msk [vmem:[#allocation2 + $0x48] sm:$0xff] %vm273_vm1, %v7677_v1  ;;  %p8087_p1 = scmp.ne.s32.totalorder %s7821_s27, 0  ;;  %s5193_s19 = smov [#allocation8]  }
  0x66   : > { %287 = vst.msk [vmem:[#allocation2 + $0x60] sm:$0xff] %vm273_vm1, %v7677_v1  ;;  %290 = vst.msk [vmem:[#allocation2 + $0x78] sm:$0xff] %vm273_vm1, %v7677_v1 }
  0x67   : > { %293 = vst.msk [vmem:[#allocation2 + $0x90] sm:$0xff] %vm273_vm1, %v7677_v1  ;;  %296 = vst.msk [vmem:[#allocation2 + $0xa8] sm:$0xff] %vm273_vm1, %v7677_v1 }
  0x68   : > { %308 = vst.msk [vmem:[#allocation2 + $0x38] sm:$0xff] %vm299_vm2, %v7677_v1  ;;  %311 = vst.msk [vmem:[#allocation2 + $0x50] sm:$0xff] %vm299_vm2, %v7677_v1  ;;  %392 = vrot.lane.b32.xlu1 %v375_v10, %s5181_s26  ;;  %390 = vrot.lane.b32.xlu0 %v374_v11, %s5181_s26 }
  0x69   : > { %314 = vst.msk [vmem:[#allocation2 + $0x68] sm:$0xff] %vm299_vm2, %v7677_v1  ;;  %317 = vst.msk [vmem:[#allocation2 + $0x80] sm:$0xff] %vm299_vm2, %v7677_v1 }
  0x6a   : > { %320 = vst.msk [vmem:[#allocation2 + $0x98] sm:$0xff] %vm299_vm2, %v7677_v1  ;;  %323 = vst.msk [vmem:[#allocation2 + $0xb0] sm:$0xff] %vm299_vm2, %v7677_v1 }
  0x6b   : > { %280 = vst.msk [vmem:[#allocation2 + $0x28] sm:$0x3] %vm276_vm3, %v7677_v1  ;;  %277 = vst.msk [vmem:[#allocation2 + $0x10] sm:$0x3] %vm276_vm3, %v7677_v1 }
  0x6c   : > { %283 = vst.msk [vmem:[#allocation2 + $0x40] sm:$0x3] %vm276_vm3, %v7677_v1  ;;  %286 = vst.msk [vmem:[#allocation2 + $0x58] sm:$0x3] %vm276_vm3, %v7677_v1  ;;  %396 = vrot.lane.b32.xlu1 %v377_v12, %s5181_s26  ;;  %394 = vrot.lane.b32.xlu0 %v376_v13, %s5181_s26 }
  0x6d   : > { %289 = vst.msk [vmem:[#allocation2 + $0x70] sm:$0x3] %vm276_vm3, %v7677_v1  ;;  %292 = vst.msk [vmem:[#allocation2 + $0x88] sm:$0x3] %vm276_vm3, %v7677_v1 }
  0x6e   : > { %295 = vst.msk [vmem:[#allocation2 + $0xa0] sm:$0x3] %vm276_vm3, %v7677_v1  ;;  %298 = vst.msk [vmem:[#allocation2 + $0xb8] sm:$0x3] %vm276_vm3, %v7677_v1 }
  0x6f   : > { %304 = vst.msk [vmem:[#allocation2 + $0x18] sm:$0xff] %vm299_vm2, %v7677_v1  ;;  %300 = vst.msk [vmem:[#allocation2] sm:$0xff] %vm299_vm2, %v7677_v1 }
  0x70   : > { %306 = vst.msk [vmem:[#allocation2 + $0x28] sm:$0x3] %vm302_vm4, %v7677_v1  ;;  %303 = vst.msk [vmem:[#allocation2 + $0x10] sm:$0x3] %vm302_vm4, %v7677_v1  ;;  %400 = vrot.lane.b32.xlu1 %v379_v14, %s5181_s26  ;;  %398 = vrot.lane.b32.xlu0 %v378_v15, %s5181_s26  ;;  %v5673_v15 = vsub.s32 %v513_v5, %v451_v52 }
  0x71   : > { %307 = vst.msk [vmem:[#allocation2 + $0x30] sm:$0xff] %vm299_vm2, %v7677_v1  ;;  %310 = vst.msk [vmem:[#allocation2 + $0x48] sm:$0xff] %vm299_vm2, %v7677_v1 }
  0x72   : > { %313 = vst.msk [vmem:[#allocation2 + $0x60] sm:$0xff] %vm299_vm2, %v7677_v1  ;;  %316 = vst.msk [vmem:[#allocation2 + $0x78] sm:$0xff] %vm299_vm2, %v7677_v1 }
  0x73   : > { %319 = vst.msk [vmem:[#allocation2 + $0x90] sm:$0xff] %vm299_vm2, %v7677_v1  ;;  %322 = vst.msk [vmem:[#allocation2 + $0xa8] sm:$0xff] %vm299_vm2, %v7677_v1 }
  0x74   : > { %309 = vst.msk [vmem:[#allocation2 + $0x40] sm:$0x3] %vm302_vm4, %v7677_v1  ;;  %312 = vst.msk [vmem:[#allocation2 + $0x58] sm:$0x3] %vm302_vm4, %v7677_v1  ;;  %404 = vrot.lane.b32.xlu1 %v381_v16, %s5181_s26  ;;  %402 = vrot.lane.b32.xlu0 %v380_v17, %s5181_s26  ;;  %s255_s26 = scalar_lea.vmem [#allocation8], %s4869_s29 }
  0x75   : > { %315 = vst.msk [vmem:[#allocation2 + $0x70] sm:$0x3] %vm302_vm4, %v7677_v1  ;;  %318 = vst.msk [vmem:[#allocation2 + $0x88] sm:$0x3] %vm302_vm4, %v7677_v1  ;;  %s4764_s20 = sshll.u32 %s255_s26, 4  ;;  %s7628_s20 = int_to_ptr.vmem [resolvable:$true] %s4764_s20 }
  0x76   : > { %321 = vst.msk [vmem:[#allocation2 + $0xa0] sm:$0x3] %vm302_vm4, %v7677_v1  ;;  %324 = vst.msk [vmem:[#allocation2 + $0xb8] sm:$0x3] %vm302_vm4, %v7677_v1 }
  0x78   : > { %426 = vperm.xlu0 %4980, %v423_v18  }
  0xca   : > { %v346_v19 = vpop.permute.xlu1 %345  ;;  %v342_v20 = vpop.permute.xlu0 %341 }
  0xcb   : > { %368 = vst.msk [vmem:[#allocation2 + $0x19] sm:$0xff] %vm365_vm5, %v346_v19  ;;  %366 = vst.msk [vmem:[#allocation2 + $0x1] sm:$0xff] %vm365_vm5, %v342_v20 }
  0xce   : > { %v348_v21 = vpop.permute.xlu1 %347  ;;  %v344_v22 = vpop.permute.xlu0 %343 }
  0xcf   : > { %369 = vst.msk [vmem:[#allocation2 + $0x21] sm:$0xff] %vm365_vm5, %v348_v21  ;;  %367 = vst.msk [vmem:[#allocation2 + $0x9] sm:$0xff] %vm365_vm5, %v344_v22 }
  0xd2   : > { %v352_v23 = vpop.permute.xlu1 %351  ;;  %v350_v24 = vpop.permute.xlu0 %349  ;;  %v5549_v25 = vld [vmem:[#allocation2] sm:$0xff]  ;;  %v5555_v26 = vld [vmem:[#allocation2 + $0x18] sm:$0xff] }
  0xd3   : > { %371 = vst.msk [vmem:[#allocation2 + $0x39] sm:$0xff] %vm365_vm5, %v352_v23  ;;  %370 = vst.msk [vmem:[#allocation2 + $0x31] sm:$0xff] %vm365_vm5, %v350_v24  ;;  %904 = vrot.lane.b32.xlu0 %v5549_v25, %s5182_s6 }
  0xd6   : > { %v356_v27 = vpop.permute.xlu1 %355  ;;  %v354_v28 = vpop.permute.xlu0 %353  ;;  %v5557_v29 = vld [vmem:[#allocation2 + $0x8] sm:$0xff]  ;;  %v5565_v32 = vld [vmem:[#allocation2 + $0x20] sm:$0xff] }
  0xd7   : > { %373 = vst.msk [vmem:[#allocation2 + $0x51] sm:$0xff] %vm365_vm5, %v356_v27  ;;  %372 = vst.msk [vmem:[#allocation2 + $0x49] sm:$0xff] %vm365_vm5, %v354_v28  ;;  %906 = vrot.lane.b32.xlu1 %v5557_v29, %s5182_s6  ;;  %908 = vrot.lane.b32.xlu0 %v5555_v26, %s5182_s6  ;;  %v5656_v10 = vld [vmem:[#allocation2 + $0x9] sm:$0xff]  ;;  %v5681_v19 = vld [vmem:[#allocation2 + $0x21] sm:$0xff] }
  0xd8   : > { %v5739_v56 = vld [vmem:[#allocation2 + $0x2] sm:$0xff]  ;;  %v5774_v1 = vld [vmem:[#allocation2 + $0xa] sm:$0xff] }
  0xd9   : > { %7836 = vst [vmem:[#allocation22_spill] sm:$0xff] %v5739_v56 }
  0xda   : > { %v393_v30 = vpop.permute.xlu1 %392  ;;  %v391_v31 = vpop.permute.xlu0 %390  ;;  %v5567_v33 = vld [vmem:[#allocation2 + $0x30] sm:$0xff]  ;;  %v5575_v36 = vld [vmem:[#allocation2 + $0x38] sm:$0xff] }
  0xdb   : > { %416 = vst.msk [vmem:[#allocation2 + $0x69] sm:$0xff] %vm365_vm5, %v393_v30  ;;  %415 = vst.msk [vmem:[#allocation2 + $0x61] sm:$0xff] %vm365_vm5, %v391_v31  ;;  %910 = vrot.lane.b32.xlu1 %v5565_v32, %s5182_s6  ;;  %912 = vrot.lane.b32.xlu0 %v5567_v33, %s5182_s6  ;;  %v445_v61 = vcombine.low %v5549_v25, %v5567_v33  ;;  %v581_v63 = vcombine.low %v5557_v29, %v5575_v36  ;;  %v5683_v20 = vld [vmem:[#allocation2 + $0x39] sm:$0xff] }
  0xdd   : > { %v5659_v11 = vrot.slane %v445_v61, %v5627_v62  ;;  %v5668_v13 = vrot.slane %v581_v63, %v5627_v62  ;;  %v5745_v61 = vld [vmem:[#allocation2 + $0x22] sm:$0xff] }
  0xde   : > { %v397_v34 = vpop.permute.xlu1 %396  ;;  %v395_v35 = vpop.permute.xlu0 %394  ;;  %v5577_v37 = vld [vmem:[#allocation2 + $0x48] sm:$0xff]  ;;  %v5585_v40 = vld [vmem:[#allocation2 + $0x50] sm:$0xff]  ;;  %7838 = vst [vmem:[#allocation24_spill] sm:$0xff] %v5745_v61 }
  0xdf   : > { %418 = vst.msk [vmem:[#allocation2 + $0x81] sm:$0xff] %vm365_vm5, %v397_v34  ;;  %417 = vst.msk [vmem:[#allocation2 + $0x79] sm:$0xff] %vm365_vm5, %v395_v35  ;;  %914 = vrot.lane.b32.xlu1 %v5575_v36, %s5182_s6  ;;  %916 = vrot.lane.b32.xlu0 %v5577_v37, %s5182_s6  ;;  %v461_v54 = vcombine.low %v5555_v26, %v5577_v37  ;;  %v597_v58 = vcombine.low %v5565_v32, %v5585_v40  ;;  %v5699_v27 = vld [vmem:[#allocation2 + $0x4a] sm:$0xff]  ;;  %v5711_v35 = vld [vmem:[#allocation2 + $0x32] sm:$0xff] }
  0xe0   : > { %7828 = vst [vmem:[#allocation14_spill] sm:$0xff] %v5699_v27  ;;  %v5703_v30 = vld [vmem:[#allocation2 + $0x51] sm:$0xff]  ;;  %7830 = vst [vmem:[#allocation16_spill] sm:$0xff] %v5711_v35  ;;  %v3324_v63 = vcombine.low %v5739_v56, %v5711_v35  ;;  %v5810_v35 = vld [vmem:[#allocation2 + $0x19] sm:$0xff] }
  0xe1   : > { %v5642_v4 = vrot.slane %v461_v54, %v5627_v62  ;;  %v5651_v8 = vrot.slane %v597_v58, %v5627_v62  ;;  %v5729_v48 = vld [vmem:[#allocation2 + $0x52] sm:$0xff]  ;;  %v5743_v58 = vld [vmem:[#allocation2 + $0x3a] sm:$0xff] }
  0xe2   : > { %v401_v38 = vpop.permute.xlu1 %400  ;;  %v399_v39 = vpop.permute.xlu0 %398  ;;  %v5587_v41 = vld [vmem:[#allocation2 + $0x60] sm:$0xff]  ;;  %v5595_v42 = vld [vmem:[#allocation2 + $0x68] sm:$0xff]  ;;  %7834 = vst [vmem:[#allocation20_spill] sm:$0xff] %v5729_v48  ;;  %v5777_v47 = vrot.slane %v3324_v63, %v5627_v62 }
  0xe3   : > { %420 = vst.msk [vmem:[#allocation2 + $0x99] sm:$0xff] %vm365_vm5, %v401_v38  ;;  %419 = vst.msk [vmem:[#allocation2 + $0x91] sm:$0xff] %vm365_vm5, %v399_v39  ;;  %918 = vrot.lane.b32.xlu1 %v5585_v40, %s5182_s6  ;;  %920 = vrot.lane.b32.xlu0 %v5587_v41, %s5182_s6  ;;  %v509_v16 = vcombine.low %v5659_v11, %v5642_v4  ;;  %v645_v17 = vcombine.low %v5668_v13, %v5651_v8  ;;  %v5713_v38 = vld [vmem:[#allocation2 + $0x1a] sm:$0xff] }
  0xe4   : > { %7831 = vst [vmem:[#allocation17_spill] sm:$0xff] %v5713_v38  ;;  %v3340_v52 = vcombine.low %v5713_v38, %v5699_v27  ;;  %7842 = vst [vmem:[#allocation28_spill] sm:$0xff] %v5777_v47  ;;  %v5011_v56 = vld [vmem:[#allocation2 + $0x9] ss:$48 sps:$4 sm:$0xff]  }
  0xe5   : > { %v5695_v23 = vrot.slane %v509_v16, %v5673_v15  ;;  %v5706_v31 = vrot.slane %v645_v17, %v5673_v15  ;;  %v3476_v16 = vcombine.low %v5745_v61, %v5729_v48 }
  0xe6   : > { %v405_v43 = vpop.permute.xlu1 %404  ;;  %v403_v44 = vpop.permute.xlu0 %402  ;;  %v5597_v45 = vld [vmem:[#allocation2 + $0x78] sm:$0xff]  ;;  %v5605_v49 = vld [vmem:[#allocation2 + $0x80] sm:$0xff]  ;;  %v5767_v17 = vrot.slane %v3340_v52, %v5627_v62 }
  0xe7   : > { %422 = vst.msk [vmem:[#allocation2 + $0xb1] sm:$0xff] %vm365_vm5, %v405_v43  ;;  %421 = vst.msk [vmem:[#allocation2 + $0xa9] sm:$0xff] %vm365_vm5, %v403_v44  ;;  %922 = vrot.lane.b32.xlu1 %v5595_v42, %s5182_s6  ;;  %924 = vrot.lane.b32.xlu0 %v5597_v45, %s5182_s6  ;;  %v5701_v28 = vld [vmem:[#allocation2 + $0x7a] sm:$0xff]  ;;  %v5717_v43 = vld [vmem:[#allocation2 + $0x69] sm:$0xff] }
  0xe8   : > { %7829 = vst [vmem:[#allocation15_spill] sm:$0xff] %v5701_v28  ;;  %v5719_v44 = vld [vmem:[#allocation2 + $0x62] sm:$0xff]  ;;  %7840 = vst [vmem:[#allocation26_spill] sm:$0xff] %v5767_v17  ;;  %v3388_v63 = vcombine.low %v5777_v47, %v5767_v17  ;;  %v5812_v47 = vld [vmem:[#allocation2 + $0x31] sm:$0xff] }
  0xe9   : > { %7832 = vst [vmem:[#allocation18_spill] sm:$0xff] %v5719_v44 }
  0xea   : > { %v5607_v50 = vld [vmem:[#allocation2 + $0x90] sm:$0xff]  ;;  %v5613_v53 = vld [vmem:[#allocation2 + $0x98] sm:$0xff] }
  0xeb   : > { %926 = vrot.lane.b32.xlu1 %v5605_v49, %s5182_s6  ;;  %928 = vrot.lane.b32.xlu0 %v5607_v50, %s5182_s6  ;;  %v477_v57 = vcombine.low %v5587_v41, %v5607_v50  ;;  %v613_v2 = vcombine.low %v5595_v42, %v5613_v53  ;;  %v5697_v24 = vld [vmem:[#allocation2 + $0x92] sm:$0xff]  ;;  %v5737_v55 = vld [vmem:[#allocation2 + $0x9a] sm:$0xff] }
  0xec   : > { %7827 = vst [vmem:[#allocation13_spill] sm:$0xff] %v5697_v24  ;;  %v3356_v54 = vcombine.low %v5719_v44, %v5697_v24  ;;  %7835 = vst [vmem:[#allocation21_spill] sm:$0xff] %v5737_v55  ;;  %v5756_v5 = vld [vmem:[#allocation2 + $0x99] sm:$0xff]  ;;  %v5007_v38 = vld [vmem:[#allocation2 + $0x61] ss:$48 sps:$4 sm:$0xff]  }
  0xed   : > { %v5645_v6 = vrot.slane %v477_v57, %v5627_v62  ;;  %v5671_v14 = vrot.slane %v613_v2, %v5627_v62  ;;  %v5741_v57 = vld [vmem:[#allocation2 + $0x82] sm:$0xff] }
  0xee   : > { %v5621_v59 = vld [vmem:[#allocation2 + $0xa8] sm:$0xff]  ;;  %v5623_v60 = vld [vmem:[#allocation2 + $0xb0] sm:$0xff]  ;;  %7837 = vst [vmem:[#allocation23_spill] sm:$0xff] %v5741_v57 }
  0xef   : > { %930 = vrot.lane.b32.xlu1 %v5613_v53, %s5182_s6  ;;  %932 = vrot.lane.b32.xlu0 %v5621_v59, %s5182_s6  ;;  %v493_v0 = vcombine.low %v5597_v45, %v5621_v59  ;;  %v629_v3 = vcombine.low %v5605_v49, %v5623_v60  ;;  %v5688_v22 = vld [vmem:[#allocation2 + $0xaa] sm:$0xff]  ;;  %v5721_v46 = vld [vmem:[#allocation2 + $0xb2] sm:$0xff] }
  0xf0   : > { %7826 = vst [vmem:[#allocation12_spill] sm:$0xff] %v5688_v22  ;;  %v3372_v39 = vcombine.low %v5701_v28, %v5688_v22  ;;  %7833 = vst [vmem:[#allocation19_spill] sm:$0xff] %v5721_v46  ;;  %v3508_v2 = vcombine.low %v5741_v57, %v5721_v46  ;;  %v3460_v22 = vcombine.low %v5774_v1, %v5743_v58  ;;  %v5786_v28 = vld [vmem:[#allocation2 + $0xb1] sm:$0xff]  ;;  %v5009_v27 = vld [vmem:[#allocation2 + $0x79] ss:$48 sps:$4 sm:$0xff]  }
  0xf1   : > { %v5648_v7 = vrot.slane %v493_v0, %v5627_v62  ;;  %v5654_v9 = vrot.slane %v629_v3, %v5627_v62  ;;  %v5754_v3 = vld [vmem:[#allocation2 + $0x81] sm:$0xff] }
  0xf2   : > { %v5750_v0 = vrot.slane %v3372_v39, %v5627_v62  ;;  %v5784_v52 = vrot.slane %v3508_v2, %v5627_v62  ;;  %v5806_v46 = vrot.slane %v3460_v22, %v5627_v62  ;;  %v5017_v57 = vld [vmem:[#allocation2 + $0x81] ss:$48 sps:$4 sm:$0xff]   ;;  %v5822_v22 = vrot.slane %v3388_v63, %v5673_v15 }
  0xf3   : > { %934 = vrot.lane.b32.xlu1 %v5623_v60, %s5182_s6  ;;  %2342 = vrot.lane.b32.xlu0 %v5656_v10, %s5182_s6  ;;  %v541_v12 = vcombine.low %v5645_v6, %v5648_v7  ;;  %v677_v18 = vcombine.low %v5671_v14, %v5654_v9  ;;  %v5836_v61 = vrot.slane %v5017_v57, %v5627_v62 }
  0xf4   : > { %7839 = vst [vmem:[#allocation25_spill] sm:$0xff] %v5750_v0  ;;  %7843 = vst [vmem:[#allocation29_spill] sm:$0xff] %v5784_v52 }
  0xf5   : > { %v5686_v21 = vrot.slane %v541_v12, %v5673_v15  ;;  %v5709_v34 = vrot.slane %v677_v18, %v5673_v15  ;;  %v5758_v12 = vld [vmem:[#allocation2 + $0x6a] sm:$0xff]  ;;  %v5770_v18 = vrot.slane %v3356_v54, %v5627_v62  ;;  %v5788_v54 = vld [vmem:[#allocation2 + $0x1] sm:$0xff]  ;;  %7847 = vst [vmem:[#allocation33_spill] sm:$0xff] %v5806_v46  ;;  %7849 = vst [vmem:[#allocation35_spill] sm:$0xff] %v5822_v22 }
  0xf6   : > { %v3492_v39 = vcombine.low %v5758_v12, %v5737_v55  ;;  %7853 = vst [vmem:[#allocation39_spill] sm:$0xff] %v5836_v61  ;;  %v5840_v55 = vld [vmem:[#allocation2 + $0x49] sm:$0xff]  ;;  %v5873_v22 = vld [vmem:[#allocation2 + $0x91] sm:$0xff] }
  0xf7   : > { %2346 = vrot.lane.b32.xlu1 %v5681_v19, %s5182_s6  ;;  %2350 = vrot.lane.b32.xlu0 %v5683_v20, %s5182_s6  ;;  %7841 = vst [vmem:[#allocation27_spill] sm:$0xff] %v5770_v18  ;;  %v3420_v51 = vcombine.low %v5770_v18, %v5750_v0  ;;  %v5797_v18 = vrot.slane %v3476_v16, %v5627_v62  ;;  %v5005_v0 = vld [vmem:[#allocation2 + $0x19] ss:$48 sps:$4 sm:$0xff]   ;;  %v5003_v16 = vld [vmem:[#allocation2 + $0x1] ss:$48 sps:$4 sm:$0xff]  }
  0xf8   : > { %v5800_v2 = vrot.slane %v3492_v39, %v5627_v62  ;;  %v5815_v39 = vrot.slane %v5009_v27, %v5627_v62  ;;  %v5827_v17 = vrot.slane %v5005_v0, %v5627_v62  ;;  %v5830_v27 = vrot.slane %v5007_v38, %v5627_v62 }
  0xf9   : > { %7844 = vst [vmem:[#allocation30_spill] sm:$0xff] %v5797_v18  ;;  %v5803_v24 = vrot.slane %v3420_v51, %v5673_v15  ;;  %v3524_v51 = vcombine.low %v5806_v46, %v5797_v18  ;;  %v5842_v46 = vld [vmem:[#allocation2 + $0x61] sm:$0xff]  ;;  %v5845_v0 = vrot.slane %v5003_v16, %v5627_v62 }
  0xfa   : > { %7845 = vst [vmem:[#allocation31_spill] sm:$0xff] %v5800_v2  ;;  %v3556_v44 = vcombine.low %v5800_v2, %v5784_v52  ;;  %7848 = vst [vmem:[#allocation34_spill] sm:$0xff] %v5815_v39  ;;  %v5013_v2 = vld [vmem:[#allocation2 + $0x21] ss:$48 sps:$4 sm:$0xff]   ;;  %v5015_v52 = vld [vmem:[#allocation2 + $0x69] ss:$48 sps:$4 sm:$0xff]   ;;  %v1984_v38 = vcombine.low %v5830_v27, %v5815_v39 }
  0xfb   : > { %2354 = vrot.lane.b32.xlu1 %v5703_v30, %s5182_s6  ;;  %2358 = vrot.lane.b32.xlu0 %v5717_v43, %s5182_s6  ;;  %7846 = vst [vmem:[#allocation32_spill] sm:$0xff] %v5803_v24  ;;  %7850 = vst [vmem:[#allocation36_spill] sm:$0xff] %v5827_v17  ;;  %v5857_v57 = vrot.slane %v5013_v2, %v5627_v62  ;;  %v5860_v63 = vrot.slane %v5015_v52, %v5627_v62  ;;  %v7899_v24 = vld [vmem:[#allocation23_spill] sm:$0xff] }
  0xfc   : > { %7851 = vst [vmem:[#allocation37_spill] sm:$0xff] %v5830_v27  ;;  %v5833_v48 = vrot.slane %v3556_v44, %v5673_v15  ;;  %7854 = vst [vmem:[#allocation40_spill] sm:$0xff] %v5845_v0  ;;  %v5854_v44 = vrot.slane %v3524_v51, %v5673_v15  ;;  %v1952_v16 = vcombine.low %v5845_v0, %v5827_v17  ;;  %v5871_v51 = vld [vmem:[#allocation2 + $0x79] sm:$0xff]  ;;  %v5890_v0 = vld [vmem:[#allocation2 + $0xa9] sm:$0xff] }
  0xfd   : > { %7856 = vst [vmem:[#allocation42_spill] sm:$0xff] %v5857_v57  ;;  %7857 = vst [vmem:[#allocation43_spill] sm:$0xff] %v5860_v63  ;;  %v5865_v27 = vrot.slane %v5011_v56, %v5627_v62  ;;  %v2120_v39 = vcombine.low %v5860_v63, %v5836_v61  ;;  %v5876_v2 = vrot.slane %v1984_v38, %v5673_v15  ;;  %v7894_v61 = vld [vmem:[#allocation22_spill] sm:$0xff] }
  0xfe   : > { %7852 = vst [vmem:[#allocation38_spill] sm:$0xff] %v5833_v48  ;;  %7855 = vst [vmem:[#allocation41_spill] sm:$0xff] %v5854_v44  ;;  %v5885_v52 = vrot.slane %v1952_v16, %v5673_v15  ;;  %v494_v16 = vcombine.high %v5597_v45, %v5621_v59  ;;  %v462_v38 = vcombine.high %v5555_v26, %v5577_v37  ;;  %v7898_v48 = vld [vmem:[#allocation16_spill] sm:$0xff] }
  0xff   : > { %2362 = vrot.lane.b32.xlu1 %v5754_v3, %s5182_s6  ;;  %2366 = vrot.lane.b32.xlu0 %v5756_v5, %s5182_s6  ;;  %7858 = vst [vmem:[#allocation44_spill] sm:$0xff] %v5865_v27  ;;  %7859 = vst [vmem:[#allocation45_spill] sm:$0xff] %v5876_v2  ;;  %v2088_v56 = vcombine.low %v5865_v27, %v5857_v57  ;;  %v5888_v18 = vrot.slane %v2120_v39, %v5673_v15 }
 0x100   : > { %7860 = vst [vmem:[#allocation46_spill] sm:$0xff] %v5885_v52  ;;  %v446_v27 = vcombine.high %v5549_v25, %v5567_v33  ;;  %v508_v39 = vrot.slane %v494_v16, %v5627_v62 }
 0x101   : > { %7861 = vst [vmem:[#allocation47_spill] sm:$0xff] %v5888_v18  ;;  %v5899_v17 = vrot.slane %v2088_v56, %v5673_v15  ;;  %v542_v56 = vcombine.high %v5645_v6, %v5648_v7 }
 0x102   : > { %v460_v7 = vrot.slane %v446_v27, %v5627_v62  ;;  %v598_v27 = vcombine.high %v5565_v32, %v5585_v40 }
 0x103   : > { %2370 = vrot.lane.b32.xlu1 %v5786_v28, %s5182_s6  ;;  %2340 = vrot.lane.b32.xlu0 %v5788_v54, %s5182_s6  ;;  %7862 = vst [vmem:[#allocation48_spill] sm:$0xff] %v5899_v17  ;;  %v556_v6 = vrot.slane %v542_v56, %v5673_v15  ;;  %v582_v56 = vcombine.high %v5557_v29, %v5575_v36 }
 0x107   : > { %2344 = vrot.lane.b32.xlu1 %v5810_v35, %s5182_s6  ;;  %2348 = vrot.lane.b32.xlu0 %v5812_v47, %s5182_s6 }
 0x10b   : > { %2352 = vrot.lane.b32.xlu1 %v5840_v55, %s5182_s6  ;;  %2356 = vrot.lane.b32.xlu0 %v5842_v46, %s5182_s6 }
 0x10f   : > { %2360 = vrot.lane.b32.xlu1 %v5871_v51, %s5182_s6  ;;  %2364 = vrot.lane.b32.xlu0 %v5873_v22, %s5182_s6 }
 0x113   : > { %2368 = vrot.lane.b32.xlu1 %v5890_v0, %s5182_s6  ;;  %2842 = vrot.lane.b32.xlu0 %v5656_v10, %s5185_s9  ;;  %v478_v10 = vcombine.high %v5587_v41, %v5607_v50 }
 0x115   : > { %v492_v17 = vrot.slane %v478_v10, %v5627_v62  ;;  %v614_v10 = vcombine.high %v5595_v42, %v5613_v53 }
 0x117   : > { %2846 = vrot.lane.b32.xlu1 %v5681_v19, %s5185_s9  ;;  %2850 = vrot.lane.b32.xlu0 %v5683_v20, %s5185_s9  ;;  %v510_v19 = vcombine.high %v5659_v11, %v5642_v4  ;;  %v476_v20 = vrot.slane %v462_v38, %v5627_v62  ;;  %v557_v18 = vcombine.low %v492_v17, %v508_v39 }
 0x118   : > { %v630_v4 = vcombine.high %v5605_v49, %v5623_v60  ;;  %v558_v16 = vcombine.high %v492_v17, %v508_v39  ;;  %v574_v39 = vcombine.high %v5695_v23, %v5686_v21 }
 0x119   : > { %v565_v38 = vrot.slane %v557_v18, %v5673_v15 }
 0x11a   : > { %v644_v17 = vrot.slane %v630_v4, %v5627_v62  ;;  %v628_v4 = vrot.slane %v614_v10, %v5627_v62 }
 0x11b   : > { %2854 = vrot.lane.b32.xlu1 %v5703_v30, %s5185_s9  ;;  %2858 = vrot.lane.b32.xlu0 %v5717_v43, %s5185_s9  ;;  %v524_v30 = vrot.slane %v510_v19, %v5673_v15  ;;  %v525_v43 = vcombine.low %v460_v7, %v476_v20  ;;  %v678_v19 = vcombine.high %v5671_v14, %v5654_v9 }
 0x11c   : > { %v693_v14 = vcombine.low %v628_v4, %v644_v17  ;;  %v694_v10 = vcombine.high %v628_v4, %v644_v17  ;;  %v710_v17 = vcombine.high %v5706_v31, %v5709_v34 }
 0x11d   : > { %v576_v11 = vcombine.high %v524_v30, %v556_v6  ;;  %v575_v57 = vcombine.low %v524_v30, %v556_v6  ;;  %v692_v9 = vrot.slane %v678_v19, %v5673_v15 }
 0x11f   : > { %2862 = vrot.lane.b32.xlu1 %v5754_v3, %s5185_s9  ;;  %2866 = vrot.lane.b32.xlu0 %v5756_v5, %s5185_s9  ;;  %v533_v3 = vrot.slane %v525_v43, %v5673_v15  ;;  %v526_v5 = vcombine.high %v460_v7, %v476_v20  ;;  %v612_v43 = vrot.slane %v598_v27, %v5627_v62 }
 0x120   : > { %v646_v7 = vcombine.high %v5668_v13, %v5651_v8  ;;  %v701_v13 = vrot.slane %v693_v14, %v5673_v15 }
 0x121   : > { %v578_v18 = vcombine.high %v533_v3, %v565_v38  ;;  %v540_v20 = vrot.slane %v526_v5, %v5673_v15  ;;  %v577_v8 = vcombine.low %v533_v3, %v565_v38 }
 0x122   : > { %v660_v27 = vrot.slane %v646_v7, %v5673_v15 }
 0x123   : > { %2870 = vrot.lane.b32.xlu1 %v5786_v28, %s5185_s9  ;;  %726 = vrot.lane.b32.xlu0 %v576_v11, %s5186_s8  ;;  %v572_v28 = vrot.slane %v558_v16, %v5673_v15  ;;  %v596_v11 = vrot.slane %v582_v56, %v5627_v62 }
 0x124   : > { %v712_v19 = vcombine.high %v660_v27, %v692_v9 }
 0x125   : > { %v580_v16 = vcombine.high %v540_v20, %v572_v28  ;;  %v661_v5 = vcombine.low %v596_v11, %v612_v43  ;;  %v662_v30 = vcombine.high %v596_v11, %v612_v43  ;;  %v5982_v43 = vpop.permute.xlu0 %426 }
 0x126   : > { %7863 = vst [vmem:[#allocation49_spill] sm:$0xff] %v5982_v43 }
 0x127   : > { %734 = vrot.lane.b32.xlu0 %v578_v18, %s5187_s25  ;;  %718 = vrot.lane.b32.xlu1 %v574_v39, %s5188_s5  ;;  %v711_v18 = vcombine.low %v660_v27, %v692_v9  ;;  %v669_v6 = vrot.slane %v661_v5, %v5673_v15  ;;  %v579_v39 = vcombine.low %v540_v20, %v572_v28 }
 0x128   : > { %v676_v38 = vrot.slane %v662_v30, %v5673_v15 }
 0x129   : > { %v713_v56 = vcombine.low %v669_v6, %v701_v13  ;;  %v714_v28 = vcombine.high %v669_v6, %v701_v13 }
 0x12b   : > { %742 = vrot.lane.b32.xlu0 %v580_v16, %s5189_s7  ;;  %722 = vrot.lane.b32.xlu1 %v575_v57, %s5190_s12  ;;  %v708_v57 = vrot.slane %v694_v10, %v5673_v15 }
 0x12d   : > { %v715_v3 = vcombine.low %v676_v38, %v708_v57  ;;  %v716_v20 = vcombine.high %v676_v38, %v708_v57 }
 0x12f   : > { %750 = vrot.lane.b32.xlu0 %v711_v18, %s5190_s12  ;;  %730 = vrot.lane.b32.xlu1 %v577_v8, %s5191_s14 }
 0x133   : > { %758 = vrot.lane.b32.xlu0 %v713_v56, %s5191_s14  ;;  %738 = vrot.lane.b32.xlu1 %v579_v39, %s5192_s30 }
 0x137   : > { %766 = vrot.lane.b32.xlu0 %v715_v3, %s5192_s30  ;;  %746 = vrot.lane.b32.xlu1 %v710_v17, %s5188_s5 }
 0x13b   : > { %2840 = vrot.lane.b32.xlu0 %v5788_v54, %s5185_s9  ;;  %754 = vrot.lane.b32.xlu1 %v712_v19, %s5186_s8 }
 0x13f   : > { %2848 = vrot.lane.b32.xlu0 %v5812_v47, %s5185_s9  ;;  %762 = vrot.lane.b32.xlu1 %v714_v28, %s5187_s25 }
 0x143   : > { %2856 = vrot.lane.b32.xlu0 %v5842_v46, %s5185_s9  ;;  %770 = vrot.lane.b32.xlu1 %v716_v20, %s5189_s7 }
 0x145   : > { %v5987_v7 = vpop.permute.xlu0 %904 }
 0x146   : > { %7864 = vst [vmem:[#allocation50_spill] sm:$0xff] %v5987_v7 }
 0x147   : > { %2864 = vrot.lane.b32.xlu0 %v5873_v22, %s5185_s9  ;;  %2844 = vrot.lane.b32.xlu1 %v5810_v35, %s5185_s9 }
 0x149   : > { %v5993_v54 = vpop.permute.xlu1 %906  ;;  %v5995_v47 = vpop.permute.xlu0 %908 }
 0x14a   : > { %7865 = vst [vmem:[#allocation51_spill] sm:$0xff] %v5993_v54  ;;  %7866 = vst [vmem:[#allocation52_spill] sm:$0xff] %v5995_v47 }
 0x14b   : > { %1406 = vrot.lane.b32.xlu0 %v5557_v29, %s5185_s9  ;;  %2852 = vrot.lane.b32.xlu1 %v5840_v55, %s5185_s9 }
 0x14d   : > { %v6001_v46 = vpop.permute.xlu1 %910  ;;  %v6003_v4 = vpop.permute.xlu0 %912 }
 0x14e   : > { %7867 = vst [vmem:[#allocation53_spill] sm:$0xff] %v6001_v46  ;;  %7868 = vst [vmem:[#allocation54_spill] sm:$0xff] %v6003_v4 }
 0x14f   : > { %1414 = vrot.lane.b32.xlu0 %v5575_v36, %s5185_s9  ;;  %2860 = vrot.lane.b32.xlu1 %v5871_v51, %s5185_s9 }
 0x151   : > { %v6009_v35 = vpop.permute.xlu1 %914  ;;  %v6011_v22 = vpop.permute.xlu0 %916 }
 0x152   : > { %7869 = vst [vmem:[#allocation55_spill] sm:$0xff] %v6009_v35  ;;  %7870 = vst [vmem:[#allocation56_spill] sm:$0xff] %v6011_v22 }
 0x153   : > { %1422 = vrot.lane.b32.xlu0 %v5595_v42, %s5185_s9  ;;  %2868 = vrot.lane.b32.xlu1 %v5890_v0, %s5185_s9 }
 0x155   : > { %v6017_v29 = vpop.permute.xlu1 %918  ;;  %v6019_v55 = vpop.permute.xlu0 %920 }
 0x156   : > { %7871 = vst [vmem:[#allocation57_spill] sm:$0xff] %v6017_v29  ;;  %7872 = vst [vmem:[#allocation58_spill] sm:$0xff] %v6019_v55  ;;  %v1104_v11 = vcombine.low %v6001_v46, %v6017_v29  ;;  %v7901_v29 = vld [vmem:[#allocation19_spill] sm:$0xff] }
 0x157   : > { %1430 = vrot.lane.b32.xlu0 %v5613_v53, %s5185_s9  ;;  %1410 = vrot.lane.b32.xlu1 %v5565_v32, %s5185_s9 }
 0x158   : > { %v6074_v18 = vrot.slane %v1104_v11, %v5627_v62 }
 0x159   : > { %v6025_v36 = vpop.permute.xlu1 %922  ;;  %v6027_v51 = vpop.permute.xlu0 %924 }
 0x15a   : > { %7873 = vst [vmem:[#allocation59_spill] sm:$0xff] %v6025_v36  ;;  %7874 = vst [vmem:[#allocation60_spill] sm:$0xff] %v6027_v51 }
 0x15b   : > { %1404 = vrot.lane.b32.xlu0 %v5549_v25, %s5185_s9  ;;  %1418 = vrot.lane.b32.xlu1 %v5585_v40, %s5185_s9  ;;  %v968_v40 = vcombine.low %v5995_v47, %v6011_v22  ;;  %7882 = vst [vmem:[#allocation68_spill] sm:$0xff] %v6074_v18 }
 0x15d   : > { %v6033_v42 = vpop.permute.xlu1 %926  ;;  %v6035_v0 = vpop.permute.xlu0 %928 }
 0x15e   : > { %7875 = vst [vmem:[#allocation61_spill] sm:$0xff] %v6033_v42  ;;  %7876 = vst [vmem:[#allocation62_spill] sm:$0xff] %v6035_v0  ;;  %v984_v16 = vcombine.low %v6019_v55, %v6035_v0 }
 0x15f   : > { %1412 = vrot.lane.b32.xlu0 %v5567_v33, %s5185_s9  ;;  %1426 = vrot.lane.b32.xlu1 %v5605_v49, %s5185_s9  ;;  %v952_v33 = vcombine.low %v5987_v7, %v6003_v4  ;;  %v1088_v49 = vcombine.low %v5993_v54, %v6009_v35  ;;  %v7903_v4 = vld [vmem:[#allocation13_spill] sm:$0xff] }
 0x161   : > { %v6041_v32 = vpop.permute.xlu1 %930  ;;  %v6043_v53 = vpop.permute.xlu0 %932  ;;  %v6084_v13 = vrot.slane %v952_v33, %v5627_v62  ;;  %v6089_v10 = vrot.slane %v1088_v49, %v5627_v62 }
 0x162   : > { %7877 = vst [vmem:[#allocation63_spill] sm:$0xff] %v6041_v32  ;;  %7878 = vst [vmem:[#allocation64_spill] sm:$0xff] %v6043_v53  ;;  %v1000_v25 = vcombine.low %v6027_v51, %v6043_v53  ;;  %v1120_v9 = vcombine.low %v6025_v36, %v6041_v32  ;;  %v7900_v32 = vld [vmem:[#allocation18_spill] sm:$0xff] }
 0x163   : > { %1420 = vrot.lane.b32.xlu0 %v5587_v41, %s5185_s9  ;;  %1434 = vrot.lane.b32.xlu1 %v5623_v60, %s5185_s9  ;;  %v6071_v41 = vrot.slane %v968_v40, %v5627_v62  ;;  %v6077_v60 = vrot.slane %v984_v16, %v5627_v62  ;;  %7884 = vst [vmem:[#allocation70_spill] sm:$0xff] %v6084_v13  ;;  %7885 = vst [vmem:[#allocation71_spill] sm:$0xff] %v6089_v10  ;;  %v7893_v16 = vld [vmem:[#allocation24_spill] sm:$0xff] }
 0x164   : > { %v6064_v14 = vrot.slane %v1000_v25, %v5627_v62  ;;  %v6092_v6 = vrot.slane %v1120_v9, %v5627_v62 }
 0x165   : > { %v6066_v27 = vpop.permute.xlu1 %934  ;;  %v6068_v5 = vpop.permute.xlu0 %2342  ;;  %7881 = vst [vmem:[#allocation67_spill] sm:$0xff] %v6071_v41  ;;  %7883 = vst [vmem:[#allocation69_spill] sm:$0xff] %v6077_v60  ;;  %v1016_v57 = vcombine.low %v6084_v13, %v6071_v41 }
 0x166   : > { %7879 = vst [vmem:[#allocation65_spill] sm:$0xff] %v6064_v14  ;;  %7880 = vst [vmem:[#allocation66_spill] sm:$0xff] %v6066_v27  ;;  %v1136_v8 = vcombine.low %v6033_v42, %v6066_v27  ;;  %v1048_v30 = vcombine.low %v6077_v60, %v6064_v14  ;;  %v7910_v14 = vld [vmem:[#allocation15_spill] sm:$0xff] }
 0x167   : > { %1428 = vrot.lane.b32.xlu0 %v5607_v50, %s5185_s9  ;;  %1408 = vrot.lane.b32.xlu1 %v5555_v26, %s5185_s9  ;;  %7886 = vst [vmem:[#allocation72_spill] sm:$0xff] %v6092_v6  ;;  %v1152_v26 = vcombine.low %v6089_v10, %v6074_v18  ;;  %v6126_v20 = vrot.slane %v1016_v57, %v5673_v15  ;;  %v7912_v10 = vld [vmem:[#allocation12_spill] sm:$0xff] }
 0x168   : > { %v6097_v56 = vrot.slane %v1136_v8, %v5627_v62  ;;  %v6118_v19 = vrot.slane %v1048_v30, %v5673_v15 }
 0x169   : > { %v6099_v39 = vpop.permute.xlu1 %2346  ;;  %v6101_v50 = vpop.permute.xlu0 %2350  ;;  %7890 = vst [vmem:[#allocation76_spill] sm:$0xff] %v6126_v20  ;;  %v6129_v25 = vrot.slane %v1152_v26, %v5673_v15  ;;  %v7892_v26 = vld [vmem:[#allocation21_spill] sm:$0xff] }
 0x16a   : > { %7887 = vst [vmem:[#allocation73_spill] sm:$0xff] %v6097_v56  ;;  %v1184_v38 = vcombine.low %v6092_v6, %v6097_v56  ;;  %7888 = vst [vmem:[#allocation74_spill] sm:$0xff] %v6118_v19  ;;  %v2524_v49 = vcombine.low %v6068_v5, %v6101_v50 }
 0x16b   : > { %3778 = vrot.lane.b32.xlu0 %v5774_v1, %s5182_s6  ;;  %1416 = vrot.lane.b32.xlu1 %v5577_v37, %s5185_s9  ;;  %7891 = vst [vmem:[#allocation77_spill] sm:$0xff] %v6129_v25 }
 0x16c   : > { %v6121_v28 = vrot.slane %v1184_v38, %v5673_v15  ;;  %v6163_v38 = vrot.slane %v2524_v49, %v5627_v62 }
 0x16d   : > { %v6113_v3 = vpop.permute.xlu1 %2354  ;;  %v6115_v17 = vpop.permute.xlu0 %2358 }
 0x16e   : > { %7889 = vst [vmem:[#allocation75_spill] sm:$0xff] %v6121_v28  ;;  %v2540_v33 = vcombine.low %v6099_v39, %v6113_v3  ;;  %v7904_v28 = vld [vmem:[#allocation17_spill] sm:$0xff] }
 0x16f   : > { %3786 = vrot.lane.b32.xlu0 %v5743_v58, %s5182_s6  ;;  %1424 = vrot.lane.b32.xlu1 %v5597_v45, %s5185_s9 }
 0x170   : > { %v6156_v30 = vrot.slane %v2540_v33, %v5627_v62 }
 0x171   : > { %v6133_v37 = vpop.permute.xlu1 %2362  ;;  %v6135_v40 = vpop.permute.xlu0 %2366 }
 0x172   : > { %v2556_v45 = vcombine.low %v6115_v17, %v6135_v40  ;;  %v2588_v63 = vcombine.low %v6163_v38, %v6156_v30 }
 0x173   : > { %3794 = vrot.lane.b32.xlu0 %v5758_v12, %s5182_s6  ;;  %1432 = vrot.lane.b32.xlu1 %v5621_v59, %s5185_s9 }
 0x174   : > { %v6166_v11 = vrot.slane %v2556_v45, %v5627_v62  ;;  %v7895_v45 = vld [vmem:[#allocation20_spill] sm:$0xff]  ;;  %v6193_v44 = vrot.slane %v2588_v63, %v5673_v15 }
 0x175   : > { %v6151_v9 = vpop.permute.xlu1 %2370  ;;  %v6153_v8 = vpop.permute.xlu0 %2340 }
 0x176   : > { %v2572_v57 = vcombine.low %v6133_v37, %v6151_v9  ;;  %7897 = vst [vmem:[#allocation24_spill] sm:$0xff] %v6193_v44 }
 0x177   : > { %3802 = vrot.lane.b32.xlu0 %v7892_v26, %s5182_s6  ;;  %3782 = vrot.lane.b32.xlu1 %v7893_v16, %s5182_s6 }
 0x178   : > { %v6169_v59 = vrot.slane %v2572_v57, %v5627_v62 }
 0x179   : > { %v6173_v33 = vpop.permute.xlu1 %2344  ;;  %v6175_v43 = vpop.permute.xlu0 %2348 }
 0x17a   : > { %v2620_v49 = vcombine.low %v6166_v11, %v6169_v59  ;;  %v2388_v63 = vcombine.low %v6153_v8, %v6175_v43 }
 0x17b   : > { %3776 = vrot.lane.b32.xlu0 %v7894_v61, %s5182_s6  ;;  %3790 = vrot.lane.b32.xlu1 %v7895_v45, %s5182_s6 }
 0x17c   : > { %v6186_v57 = vrot.slane %v2620_v49, %v5673_v15  ;;  %v6227_v55 = vrot.slane %v2388_v63, %v5627_v62 }
 0x17d   : > { %v6188_v52 = vpop.permute.xlu1 %2352  ;;  %v6190_v2 = vpop.permute.xlu0 %2356 }
 0x17e   : > { %7896 = vst [vmem:[#allocation21_spill] sm:$0xff] %v6186_v57  ;;  %v2404_v36 = vcombine.low %v6173_v33, %v6188_v52 }
 0x17f   : > { %3784 = vrot.lane.b32.xlu0 %v7898_v48, %s5182_s6  ;;  %3798 = vrot.lane.b32.xlu1 %v7899_v24, %s5182_s6 }
 0x180   : > { %v6220_v27 = vrot.slane %v2404_v36, %v5627_v62 }
 0x181   : > { %v6201_v35 = vpop.permute.xlu1 %2360  ;;  %v6203_v49 = vpop.permute.xlu0 %2364 }
 0x182   : > { %v2420_v46 = vcombine.low %v6190_v2, %v6203_v49  ;;  %v2452_v41 = vcombine.low %v6227_v55, %v6220_v27 }
 0x183   : > { %3792 = vrot.lane.b32.xlu0 %v7900_v32, %s5182_s6  ;;  %3806 = vrot.lane.b32.xlu1 %v7901_v29, %s5182_s6 }
 0x184   : > { %v6230_v0 = vrot.slane %v2420_v46, %v5627_v62  ;;  %v7906_v46 = vld [vmem:[#allocation14_spill] sm:$0xff]  ;;  %v6257_v60 = vrot.slane %v2452_v41, %v5673_v15 }
 0x185   : > { %v6215_v54 = vpop.permute.xlu1 %2368  ;;  %v6217_v42 = vpop.permute.xlu0 %2842 }
 0x186   : > { %7902 = vst [vmem:[#allocation22_spill] sm:$0xff] %v6217_v42  ;;  %v2436_v7 = vcombine.low %v6201_v35, %v6215_v54  ;;  %7909 = vst [vmem:[#allocation18_spill] sm:$0xff] %v6257_v60 }
 0x187   : > { %3800 = vrot.lane.b32.xlu0 %v7903_v4, %s5182_s6  ;;  %3780 = vrot.lane.b32.xlu1 %v7904_v28, %s5182_s6 }
 0x188   : > { %v6233_v25 = vrot.slane %v2436_v7, %v5627_v62 }
 0x189   : > { %v6237_v36 = vpop.permute.xlu1 %2846  ;;  %v6239_v13 = vpop.permute.xlu0 %2850 }
 0x18a   : > { %7905 = vst [vmem:[#allocation20_spill] sm:$0xff] %v6239_v13  ;;  %v2484_v63 = vcombine.low %v6230_v0, %v6233_v25  ;;  %v3024_v41 = vcombine.low %v6217_v42, %v6239_v13 }
 0x18b   : > { %4278 = vrot.lane.b32.xlu0 %v5774_v1, %s5185_s9  ;;  %3788 = vrot.lane.b32.xlu1 %v7906_v46, %s5182_s6 }
 0x18c   : > { %v6250_v7 = vrot.slane %v2484_v63, %v5673_v15 }
 0x18d   : > { %v6252_v47 = vpop.permute.xlu1 %2854  ;;  %v6254_v22 = vpop.permute.xlu0 %2858 }
 0x18e   : > { %7907 = vst [vmem:[#allocation16_spill] sm:$0xff] %v6250_v7  ;;  %7908 = vst [vmem:[#allocation23_spill] sm:$0xff] %v6254_v22  ;;  %v3040_v53 = vcombine.low %v6237_v36, %v6252_v47 }
 0x18f   : > { %4286 = vrot.lane.b32.xlu0 %v5743_v58, %s5185_s9  ;;  %3796 = vrot.lane.b32.xlu1 %v7910_v14, %s5182_s6 }
 0x190   : > { %v6282_v20 = vrot.slane %v3040_v53, %v5627_v62 }
 0x191   : > { %v6265_v51 = vpop.permute.xlu1 %2862  ;;  %v6267_v63 = vpop.permute.xlu0 %2866 }
 0x192   : > { %7911 = vst [vmem:[#allocation19_spill] sm:$0xff] %v6267_v63  ;;  %v3056_v58 = vcombine.low %v6254_v22, %v6267_v63 }
 0x193   : > { %4294 = vrot.lane.b32.xlu0 %v5758_v12, %s5185_s9  ;;  %3804 = vrot.lane.b32.xlu1 %v7912_v10, %s5182_s6  ;;  %v6289_v12 = vrot.slane %v3024_v41, %v5627_v62 }
 0x194   : > { %v6292_v6 = vrot.slane %v3056_v58, %v5627_v62 }
 0x195   : > { %v6279_v1 = vpop.permute.xlu1 %2870  ;;  %v727_v18 = vpop.permute.xlu0 %726  ;;  %v3088_v13 = vcombine.low %v6289_v12, %v6282_v20 }
 0x196   : > { %v3072_v19 = vcombine.low %v6265_v51, %v6279_v1 }
 0x197   : > { %4302 = vrot.lane.b32.xlu0 %v7892_v26, %s5185_s9  ;;  %4282 = vrot.lane.b32.xlu1 %v7893_v16, %s5185_s9  ;;  %v6315_v58 = vrot.slane %v3088_v13, %v5673_v15  ;;  %v2573_v13 = vcombine.high %v6133_v37, %v6151_v9 }
 0x198   : > { %v6295_v56 = vrot.slane %v3072_v19, %v5627_v62 }
 0x199   : > { %v6299_v53 = vpop.permute.xlu0 %734  ;;  %v719_v42 = vpop.permute.xlu1 %718  ;;  %7914 = vst [vmem:[#allocation17_spill] sm:$0xff] %v6315_v58  ;;  %v6344_v37 = vrot.slane %v2573_v13, %v5627_v62 }
 0x19a   : > { %v3120_v26 = vcombine.low %v6292_v6, %v6295_v56 }
 0x19b   : > { %4276 = vrot.lane.b32.xlu0 %v7894_v61, %s5185_s9  ;;  %4290 = vrot.lane.b32.xlu1 %v7895_v45, %s5185_s9  ;;  %v2589_v61 = vcombine.high %v6163_v38, %v6156_v30 }
 0x19c   : > { %v6310_v19 = vrot.slane %v3120_v26, %v5673_v15 }
 0x19d   : > { %v6312_v41 = vpop.permute.xlu0 %742  ;;  %v723_v16 = vpop.permute.xlu1 %722  ;;  %v2603_v30 = vrot.slane %v2589_v61, %v5673_v15 }
 0x19e   : > { %7913 = vst [vmem:[#allocation13_spill] sm:$0xff] %v6310_v19 }
 0x19f   : > { %4284 = vrot.lane.b32.xlu0 %v7898_v48, %s5185_s9  ;;  %4298 = vrot.lane.b32.xlu1 %v7899_v24, %s5185_s9  ;;  %v2621_v48 = vcombine.high %v6166_v11, %v6169_v59  ;;  %v2541_v24 = vcombine.high %v6099_v39, %v6113_v3  ;;  %v2653_v11 = vcombine.high %v6193_v44, %v6186_v57  ;;  %v7981_v57 = vld [vmem:[#allocation29_spill] sm:$0xff] }
 0x1a1   : > { %v751_v22 = vpop.permute.xlu0 %750  ;;  %v731_v45 = vpop.permute.xlu1 %730 }
 0x1a3   : > { %4292 = vrot.lane.b32.xlu0 %v7900_v32, %s5185_s9  ;;  %4306 = vrot.lane.b32.xlu1 %v7901_v29, %s5185_s9  ;;  %v2557_v32 = vcombine.high %v6115_v17, %v6135_v40  ;;  %v2525_v29 = vcombine.high %v6068_v5, %v6101_v50  ;;  %v2635_v17 = vrot.slane %v2621_v48, %v5673_v15 }
 0x1a4   : > { %v7916_v50 = vcombine.low %v5695_v23, %v5686_v21 }
 0x1a5   : > { %v759_v26 = vpop.permute.xlu0 %758  ;;  %v739_v63 = vpop.permute.xlu1 %738  ;;  %v2571_v5 = vrot.slane %v2557_v32, %v5627_v62  ;;  %v2655_v32 = vcombine.high %v2603_v30, %v2635_v17 }
 0x1a6   : > { %v774_v9 = vsel %vm773_vm6, %v7916_v50, %v719_v42  ;;  %v2654_v42 = vcombine.low %v2603_v30, %v2635_v17  ;;  %v2453_v17 = vcombine.high %v6227_v55, %v6220_v27 }
 0x1a7   : > { %4300 = vrot.lane.b32.xlu0 %v7903_v4, %s5185_s9  ;;  %4280 = vrot.lane.b32.xlu1 %v7904_v28, %s5185_s9  ;;  %v7915_v4 = vcombine.low %v5706_v31, %v5709_v34  ;;  %v6354_v28 = vrot.slane %v2541_v24, %v5627_v62  ;;  %v776_v38 = vsel %vm775_vm7, %v774_v9, %v723_v16 }
 0x1a8   : > { %v2539_v31 = vrot.slane %v2525_v29, %v5627_v62  ;;  %v2636_v34 = vcombine.low %v2571_v5, %v6344_v37  ;;  %v778_v16 = vsel %vm777_vm8, %v776_v38, %v727_v18  ;;  %v2437_v18 = vcombine.high %v6201_v35, %v6215_v54 }
 0x1a9   : > { %v767_v39 = vpop.permute.xlu0 %766  ;;  %v747_v3 = vpop.permute.xlu1 %746  ;;  %v2421_v54 = vcombine.high %v6190_v2, %v6203_v49  ;;  %v2517_v2 = vcombine.high %v6257_v60, %v6250_v7 }
 0x1aa   : > { %v787_v40 = vsel %vm773_vm6, %v7915_v4, %v747_v3  ;;  %v2604_v61 = vcombine.low %v2539_v31, %v6354_v28  ;;  %v2644_v29 = vrot.slane %v2636_v34, %v5673_v15  ;;  %v2485_v3 = vcombine.high %v6230_v0, %v6233_v25 }
 0x1ab   : > { %2689 = vrot.lane.b32.xlu0 %v2653_v11, %s5188_s5  ;;  %4288 = vrot.lane.b32.xlu1 %v7906_v46, %s5185_s9  ;;  %v788_v21 = vsel %vm775_vm7, %v787_v40, %v751_v22  ;;  %v780_v46 = vsel %vm779_vm9, %v778_v16, %v731_v45  ;;  %v2637_v0 = vcombine.high %v2571_v5, %v6344_v37 }
 0x1ac   : > { %v2612_v11 = vrot.slane %v2604_v61, %v5673_v15  ;;  %v2389_v25 = vcombine.high %v6153_v8, %v6175_v43  ;;  %v2451_v55 = vrot.slane %v2437_v18, %v5627_v62  ;;  %v2605_v49 = vcombine.high %v2539_v31, %v6354_v28 }
 0x1ad   : > { %v6368_v59 = vpop.permute.xlu0 %2840  ;;  %v755_v23 = vpop.permute.xlu1 %754  ;;  %v2467_v37 = vrot.slane %v2453_v17, %v5673_v15  ;;  %v2651_v5 = vrot.slane %v2637_v0, %v5673_v15  ;;  %v3073_v61 = vcombine.high %v6265_v51, %v6279_v1  ;;  %v3121_v16 = vcombine.high %v6292_v6, %v6295_v56  ;;  %v7920_v51 = vld [vmem:[#allocation23_spill] sm:$0xff]  ;;  %v7922_v17 = vld [vmem:[#allocation22_spill] sm:$0xff] }
 0x1ae   : > { %v789_v13 = vsel %vm777_vm8, %v788_v21, %v755_v23  ;;  %v2657_v28 = vcombine.high %v2612_v11, %v2644_v29  ;;  %v2403_v50 = vrot.slane %v2389_v25, %v5627_v62  ;;  %v2619_v30 = vrot.slane %v2605_v49, %v5673_v15 }
 0x1af   : > { %2693 = vrot.lane.b32.xlu0 %v2654_v42, %s5190_s12  ;;  %4296 = vrot.lane.b32.xlu1 %v7910_v14, %s5185_s9  ;;  %v790_v22 = vsel %vm779_vm9, %v789_v13, %v759_v26  ;;  %v782_v14 = vsel %vm781_vm10, %v780_v46, %v6299_v53  ;;  %v2405_v26 = vcombine.high %v6173_v33, %v6188_v52 }
 0x1b0   : > { %v784_v35 = vsel %vm783_vm11, %v782_v14, %v739_v63  ;;  %v2656_v52 = vcombine.low %v2612_v11, %v2644_v29  ;;  %v2435_v63 = vrot.slane %v2421_v54, %v5627_v62  ;;  %v2658_v21 = vcombine.low %v2619_v30, %v2651_v5  ;;  %v7919_v14 = vld [vmem:[#allocation19_spill] sm:$0xff] }
 0x1b1   : > { %v6378_v48 = vpop.permute.xlu0 %2848  ;;  %v763_v24 = vpop.permute.xlu1 %762  ;;  %v786_v43 = vsel %vm785_vm12, %v784_v35, %v6312_v41  ;;  %v2419_v8 = vrot.slane %v2405_v26, %v5627_v62  ;;  %v3057_v1 = vcombine.high %v7920_v51, %v7919_v14  ;;  %v7921_v26 = vld [vmem:[#allocation20_spill] sm:$0xff]  ;;  %v3153_v54 = vcombine.high %v6315_v58, %v6310_v19  ;;  %v7966_v58 = vld [vmem:[#allocation51_spill] sm:$0xff] }
 0x1b2   : > { %v791_v45 = vsel %vm781_vm10, %v790_v22, %v763_v24  ;;  %v2500_v9 = vcombine.low %v2435_v63, %v2451_v55  ;;  %v2659_v24 = vcombine.high %v2619_v30, %v2651_v5  ;;  %v2888_v56 = vcombine.low %v6368_v59, %v6378_v48 }
 0x1b3   : > { %2697 = vrot.lane.b32.xlu0 %v2655_v32, %s5186_s8  ;;  %4304 = vrot.lane.b32.xlu1 %v7912_v10, %s5185_s9  ;;  %v792_v33 = vsel %vm783_vm11, %v791_v45, %v767_v39  ;;  %v2499_v10 = vrot.slane %v2485_v3, %v5673_v15  ;;  %v2468_v38 = vcombine.low %v2403_v50, %v2419_v8  ;;  %s7626_s9 = scalar_lea.hbm %s7674_s4, %s4894_s13 }
 0x1b4   : > { %v2508_v42 = vrot.slane %v2500_v9, %v5673_v15  ;;  %v2501_v32 = vcombine.high %v2435_v63, %v2451_v55  ;;  %v3041_v3 = vcombine.high %v6237_v36, %v6252_v47  ;;  %v3089_v45 = vcombine.high %v6289_v12, %v6282_v20 }
 0x1b5   : > { %v6403_v53 = vpop.permute.xlu0 %2856  ;;  %v771_v4 = vpop.permute.xlu1 %770  ;;  %v2518_v41 = vcombine.low %v2467_v37, %v2499_v10  ;;  %v2519_v23 = vcombine.high %v2467_v37, %v2499_v10  ;;  %v2476_v13 = vrot.slane %v2468_v38, %v5673_v15  ;;  %v2469_v6 = vcombine.high %v2403_v50, %v2419_v8 }
 0x1b6   : > { %v793_v27 = vsel %vm785_vm12, %v792_v33, %v771_v4  ;;  %v3025_v47 = vcombine.high %v7922_v17, %v7921_v26  ;;  %v3087_v36 = vrot.slane %v3073_v61, %v5627_v62  ;;  %v3135_v35 = vrot.slane %v3121_v16, %v5673_v15 }
 0x1b7   : > { %2701 = vrot.lane.b32.xlu0 %v2656_v52, %s5191_s14  ;;  %799 = vmatprep.subr.mxu1 %v793_v27  ;;  %v2520_v18 = vcombine.low %v2476_v13, %v2508_v42  ;;  %v2521_v4 = vcombine.high %v2476_v13, %v2508_v42  ;;  %v2515_v52 = vrot.slane %v2501_v32, %v5673_v15 }
 0x1b8   : > { %2661 = vrot.lane.b32.xlu1 %v2517_v2, %s5188_s5  ;;  %800 = vmatpush1.msra.mxu1 %v786_v43  ;;  %v6467_v33 = vrot.slane %v3041_v3, %v5627_v62  ;;  %v3071_v55 = vrot.slane %v3057_v1, %v5627_v62  ;;  %v3103_v2 = vrot.slane %v3089_v45, %v5673_v15 }
 0x1b9   : > { %v6419_v39 = vpop.permute.xlu0 %2864  ;;  %v6421_v40 = vpop.permute.xlu1 %2844  ;;  %v2896_v27 = vrot.slane %v2888_v56, %v5627_v62  ;;  %v2483_v43 = vrot.slane %v2469_v6, %v5673_v15  ;;  %v3039_v8 = vrot.slane %v3025_v47, %v5627_v62  ;;  %v2889_v51 = vcombine.high %v6368_v59, %v6378_v48 }
 0x1ba   : > { %v2920_v11 = vcombine.low %v6403_v53, %v6419_v39  ;;  %v3136_v63 = vcombine.low %v3071_v55, %v3087_v36  ;;  %v3154_v5 = vcombine.low %v3103_v2, %v3135_v35  ;;  %v3155_v42 = vcombine.high %v3103_v2, %v3135_v35 }
 0x1bb   : > { %2705 = vrot.lane.b32.xlu0 %v2657_v28, %s5187_s25  ;;  %v3104_v30 = vcombine.low %v3039_v8, %v6467_v33  ;;  %v3137_v3 = vcombine.high %v3071_v55, %v3087_v36  ;;  %v3105_v56 = vcombine.high %v3039_v8, %v6467_v33  ;;  %v2903_v47 = vrot.slane %v2889_v51, %v5627_v62  ;;  %v7933_v51 = vld [vmem:[#allocation73_spill] sm:$0xff] }
 0x1bc   : > { %2665 = vrot.lane.b32.xlu1 %v2518_v41, %s5190_s12  ;;  %v2928_v10 = vrot.slane %v2920_v11, %v5627_v62  ;;  %v2522_v41 = vcombine.low %v2483_v43, %v2515_v52  ;;  %v3144_v13 = vrot.slane %v3136_v63, %v5673_v15 }
 0x1bd   : > { %v6428_v31 = vpop.permute.xlu0 %1406  ;;  %v6430_v34 = vpop.permute.xlu1 %2852  ;;  %v6524_v17 = vrot.slane %v3137_v3, %v5673_v15  ;;  %v6539_v2 = vrot.slane %v3105_v56, %v5673_v15  ;;  %v7937_v56 = vld [vmem:[#allocation76_spill] sm:$0xff] }
 0x1be   : > { %7917 = vst [vmem:[#allocation14_spill] sm:$0xff] %v6428_v31  ;;  %v2904_v29 = vcombine.low %v6421_v40, %v6430_v34 }
 0x1bf   : > { %2709 = vrot.lane.b32.xlu0 %v2658_v21, %s5192_s30  ;;  %v3158_v63 = vcombine.low %v6539_v2, %v6524_v17 }
 0x1c0   : > { %2669 = vrot.lane.b32.xlu1 %v2519_v23, %s5186_s8  ;;  %v2912_v0 = vrot.slane %v2904_v29, %v5627_v62  ;;  %v2921_v29 = vcombine.high %v6403_v53, %v6419_v39 }
 0x1c1   : > { %v6440_v46 = vpop.permute.xlu0 %1414  ;;  %v2861_v22 = vpop.permute.xlu1 %2860 }
 0x1c2   : > { %7918 = vst [vmem:[#allocation15_spill] sm:$0xff] %v6440_v46  ;;  %v2952_v50 = vcombine.low %v2896_v27, %v2912_v0  ;;  %v2953_v45 = vcombine.high %v2896_v27, %v2912_v0  ;;  %v2935_v11 = vrot.slane %v2921_v29, %v5627_v62  ;;  %v1588_v0 = vcombine.low %v6428_v31, %v6440_v46 }
 0x1c3   : > { %2713 = vrot.lane.b32.xlu0 %v2659_v24, %s5189_s7  ;;  %v2523_v24 = vcombine.high %v2483_v43, %v2515_v52 }
 0x1c4   : > { %2673 = vrot.lane.b32.xlu1 %v2520_v18, %s5191_s14  ;;  %v6494_v32 = vrot.slane %v2952_v50, %v5673_v15  ;;  %v2905_v18 = vcombine.high %v6421_v40, %v6430_v34  ;;  %v2967_v48 = vrot.slane %v2953_v45, %v5673_v15  ;;  %v6557_v50 = vrot.slane %v1588_v0, %v5627_v62  ;;  %v7940_v0 = vld [vmem:[#allocation64_spill] sm:$0xff] }
 0x1c5   : > { %v6459_v20 = vpop.permute.xlu0 %1422  ;;  %v2869_v12 = vpop.permute.xlu1 %2868 }
 0x1c6   : > { %7923 = vst [vmem:[#allocation12_spill] sm:$0xff] %v6459_v20  ;;  %v2936_v25 = vcombine.low %v2861_v22, %v2869_v12  ;;  %v2937_v21 = vcombine.high %v2861_v22, %v2869_v12  ;;  %7928 = vst [vmem:[#allocation78_spill] sm:$0xff] %v6494_v32  ;;  %v3112_v22 = vrot.slane %v3104_v30, %v5673_v15 }
 0x1c7   : > { %3189 = vrot.lane.b32.xlu0 %v3153_v54, %s5188_s5  ;;  %v2919_v26 = vrot.slane %v2905_v18, %v5627_v62 }
 0x1c8   : > { %v2944_v49 = vrot.slane %v2936_v25, %v5627_v62  ;;  %2677 = vrot.lane.b32.xlu1 %v2521_v4, %s5187_s25  ;;  %v2951_v1 = vrot.slane %v2937_v21, %v5627_v62  ;;  %v3156_v39 = vcombine.low %v3112_v22, %v3144_v13  ;;  %v3157_v35 = vcombine.high %v3112_v22, %v3144_v13 }
 0x1c9   : > { %v6478_v37 = vpop.permute.xlu0 %1430  ;;  %v6480_v28 = vpop.permute.xlu1 %1410  ;;  %v2969_v33 = vcombine.high %v2903_v47, %v2919_v26  ;;  %v2968_v27 = vcombine.low %v2903_v47, %v2919_v26  ;;  %v7938_v47 = vld [vmem:[#allocation68_spill] sm:$0xff] }
 0x1ca   : > { %7924 = vst [vmem:[#allocation19_spill] sm:$0xff] %v6478_v37  ;;  %7925 = vst [vmem:[#allocation23_spill] sm:$0xff] %v6480_v28  ;;  %v2984_v9 = vcombine.low %v2928_v10, %v2944_v49  ;;  %v2985_v61 = vcombine.high %v2928_v10, %v2944_v49  ;;  %v3001_v36 = vcombine.high %v2935_v11, %v2951_v1 }
 0x1cb   : > { %3193 = vrot.lane.b32.xlu0 %v3154_v5, %s5190_s12  ;;  %v1620_v12 = vcombine.low %v6459_v20, %v6478_v37  ;;  %v3000_v25 = vcombine.low %v2935_v11, %v2951_v1  ;;  %v7934_v1 = vld [vmem:[#allocation72_spill] sm:$0xff]  ;;  %v5034_v20 = vld [vmem:[#allocation2 + $0x2] sm:$0xff] }
 0x1cc   : > { %2681 = vrot.lane.b32.xlu1 %v2522_v41, %s5192_s30  ;;  %v6486_v38 = vrot.slane %v2984_v9, %v5673_v15  ;;  %v2999_v6 = vrot.slane %v2985_v61, %v5673_v15  ;;  %v3015_v5 = vrot.slane %v3001_v36, %v5673_v15  ;;  %v2976_v61 = vrot.slane %v2968_v27, %v5673_v15  ;;  %v7939_v36 = vld [vmem:[#allocation71_spill] sm:$0xff] }
 0x1cd   : > { %v6488_v23 = vpop.permute.xlu0 %1404  ;;  %v6491_v16 = vpop.permute.xlu1 %1418  ;;  %v6546_v49 = vrot.slane %v1620_v12, %v5627_v62  ;;  %v3008_v30 = vrot.slane %v3000_v25, %v5673_v15  ;;  %v1153_v12 = vcombine.high %v7939_v36, %v7938_v47  ;;  %v7941_v25 = vld [vmem:[#allocation60_spill] sm:$0xff]  ;;  %v7950_v36 = vld [vmem:[#allocation77_spill] sm:$0xff] }
 0x1ce   : > { %7926 = vst [vmem:[#allocation20_spill] sm:$0xff] %v6486_v38  ;;  %7927 = vst [vmem:[#allocation22_spill] sm:$0xff] %v6491_v16  ;;  %v3017_v34 = vcombine.high %v6494_v32, %v6486_v38  ;;  %v1604_v59 = vcombine.low %v6480_v28, %v6491_v16  ;;  %v3018_v52 = vcombine.low %v2967_v48, %v2999_v6  ;;  %v7973_v32 = vld [vmem:[#allocation27_spill] sm:$0xff] }
 0x1cf   : > { %3197 = vrot.lane.b32.xlu0 %v3155_v42, %s5186_s8  ;;  %v3019_v41 = vcombine.high %v2967_v48, %v2999_v6  ;;  %v2983_v42 = vrot.slane %v2969_v33, %v5673_v15  ;;  %v3020_v22 = vcombine.low %v2976_v61, %v3008_v30  ;;  %v7936_v6 = vld [vmem:[#allocation74_spill] sm:$0xff]  ;;  %v7942_v33 = vld [vmem:[#allocation65_spill] sm:$0xff] }
 0x1d0   : > { %2685 = vrot.lane.b32.xlu1 %v2523_v24, %s5189_s7  ;;  %v6542_v10 = vrot.slane %v1604_v59, %v5627_v62  ;;  %v1081_v11 = vcombine.high %v7937_v56, %v7936_v6  ;;  %v3021_v59 = vcombine.high %v2976_v61, %v3008_v30  ;;  %v7945_v61 = vld [vmem:[#allocation56_spill] sm:$0xff]  ;;  %v7959_v6 = vld [vmem:[#allocation57_spill] sm:$0xff]  ;;  %v7961_v56 = vld [vmem:[#allocation63_spill] sm:$0xff] }
 0x1d1   : > { %v6508_v53 = vpop.permute.xlu0 %1412  ;;  %v6510_v40 = vpop.permute.xlu1 %1426  ;;  %v3022_v29 = vcombine.low %v2983_v42, %v3015_v5 }
 0x1d2   : > { %7929 = vst [vmem:[#allocation79_spill] sm:$0xff] %v6510_v40  ;;  %v1652_v13 = vcombine.low %v6557_v50, %v6542_v10 }
 0x1d3   : > { %3201 = vrot.lane.b32.xlu0 %v3156_v39, %s5191_s14  ;;  %v1185_v39 = vcombine.high %v7934_v1, %v7933_v51  ;;  %v7947_v51 = vld [vmem:[#allocation67_spill] sm:$0xff]  ;;  %v7948_v1 = vld [vmem:[#allocation70_spill] sm:$0xff] }
 0x1d4   : > { %3161 = vrot.lane.b32.xlu1 %v3017_v34, %s5188_s5  ;;  %v6580_v45 = vrot.slane %v1652_v13, %v5673_v15 }
 0x1d5   : > { %v6529_v54 = vpop.permute.xlu0 %1420  ;;  %v6533_v4 = vpop.permute.xlu1 %1434  ;;  %v1199_v13 = vrot.slane %v1185_v39, %v5673_v15  ;;  %v7953_v39 = vld [vmem:[#allocation54_spill] sm:$0xff] }
 0x1d6   : > { %v1636_v55 = vcombine.low %v6510_v40, %v6533_v4  ;;  %7932 = vst [vmem:[#allocation82_spill] sm:$0xff] %v6580_v45 }
 0x1d7   : > { %3205 = vrot.lane.b32.xlu0 %v3157_v35, %s5187_s25 }
 0x1d8   : > { %3165 = vrot.lane.b32.xlu1 %v3018_v52, %s5190_s12  ;;  %v6549_v43 = vrot.slane %v1636_v55, %v5627_v62  ;;  %v1001_v52 = vcombine.high %v7941_v25, %v7940_v0  ;;  %v7943_v55 = vld [vmem:[#allocation69_spill] sm:$0xff]  ;;  %v7951_v25 = vld [vmem:[#allocation62_spill] sm:$0xff] }
 0x1d9   : > { %v6551_v8 = vpop.permute.xlu0 %1428  ;;  %v6559_v9 = vpop.permute.xlu1 %1408  ;;  %v1049_v27 = vcombine.high %v7943_v55, %v7942_v33  ;;  %v7952_v33 = vld [vmem:[#allocation58_spill] sm:$0xff] }
 0x1da   : > { %v1684_v21 = vcombine.low %v6546_v49, %v6549_v43  ;;  %v985_v55 = vcombine.high %v7952_v33, %v7951_v25 }
 0x1db   : > { %3209 = vrot.lane.b32.xlu0 %v3158_v63, %s5192_s30  ;;  %v1452_v63 = vcombine.low %v6488_v23, %v6508_v53 }
 0x1dc   : > { %3169 = vrot.lane.b32.xlu1 %v3019_v41, %s5186_s8  ;;  %v6575_v3 = vrot.slane %v1684_v21, %v5673_v15  ;;  %v1484_v41 = vcombine.low %v6529_v54, %v6551_v8  ;;  %v3023_v21 = vcombine.high %v2983_v42, %v3015_v5  ;;  %v1167_v42 = vrot.slane %v1153_v12, %v5673_v15 }
 0x1dd   : > { %v6570_v24 = vpop.permute.xlu0 %3778  ;;  %v6572_v18 = vpop.permute.xlu1 %1416 }
 0x1de   : > { %7930 = vst [vmem:[#allocation80_spill] sm:$0xff] %v6570_v24  ;;  %7931 = vst [vmem:[#allocation81_spill] sm:$0xff] %v6575_v3  ;;  %v1468_v35 = vcombine.low %v6559_v9, %v6572_v18  ;;  %v6637_v25 = vrot.slane %v1484_v41, %v5627_v62  ;;  %v1219_v33 = vcombine.high %v1167_v42, %v1199_v13 }
 0x1df   : > { %3181 = vrot.lane.b32.xlu0 %v3022_v29, %s5192_s30  ;;  %v7946_v29 = vld [vmem:[#allocation52_spill] sm:$0xff] }
 0x1e0   : > { %3173 = vrot.lane.b32.xlu1 %v3020_v22, %s5191_s14  ;;  %v969_v22 = vcombine.high %v7946_v29, %v7945_v61  ;;  %v6620_v48 = vrot.slane %v1468_v35, %v5627_v62  ;;  %v7954_v61 = vld [vmem:[#allocation50_spill] sm:$0xff]  ;;  %v6634_v35 = vrot.slane %v1452_v63, %v5627_v62  ;;  %v6654_v63 = vrot.slane %v985_v55, %v5627_v62 }
 0x1e1   : > { %v6584_v34 = vpop.permute.xlu0 %3786  ;;  %v6588_v26 = vpop.permute.xlu1 %1424  ;;  %v953_v29 = vcombine.high %v7954_v61, %v7953_v39  ;;  %v7957_v61 = vld [vmem:[#allocation61_spill] sm:$0xff] }
 0x1e2   : > { %7935 = vst [vmem:[#allocation73_spill] sm:$0xff] %v6584_v34  ;;  %v6645_v39 = vrot.slane %v969_v22, %v5627_v62  ;;  %v1516_v41 = vcombine.low %v6634_v35, %v6620_v48 }
 0x1e3   : > { %1225 = vrot.lane.b32.xlu0 %v1081_v11, %s5188_s5  ;;  %v1017_v11 = vcombine.high %v7948_v1, %v7947_v51  ;;  %v6629_v51 = vrot.slane %v1001_v52, %v5627_v62  ;;  %v1063_v1 = vrot.slane %v1049_v27, %v5673_v15  ;;  %v7956_v52 = vld [vmem:[#allocation66_spill] sm:$0xff]  ;;  %v3159_v27 = vcombine.high %v6539_v2, %v6524_v17 }
 0x1e4   : > { %3177 = vrot.lane.b32.xlu1 %v3021_v59, %s5187_s25  ;;  %v7949_v59 = vld [vmem:[#allocation75_spill] sm:$0xff]  ;;  %v6668_v17 = vrot.slane %v953_v29, %v5627_v62 }
 0x1e5   : > { %v6606_v30 = vpop.permute.xlu0 %3794  ;;  %v6613_v47 = vpop.permute.xlu1 %1432  ;;  %v1217_v0 = vcombine.high %v7950_v36, %v7949_v59  ;;  %v1031_v22 = vrot.slane %v1017_v11, %v5673_v15  ;;  %v7962_v59 = vld [vmem:[#allocation59_spill] sm:$0xff]  ;;  %v1064_v2 = vcombine.low %v6654_v63, %v6629_v51 }
 0x1e6   : > { %7944 = vst [vmem:[#allocation72_spill] sm:$0xff] %v6606_v30  ;;  %v1500_v5 = vcombine.low %v6588_v26, %v6613_v47  ;;  %v1121_v36 = vcombine.high %v7962_v59, %v7961_v56  ;;  %v7965_v11 = vld [vmem:[#allocation55_spill] sm:$0xff]  ;;  %v1218_v59 = vcombine.low %v1167_v42, %v1199_v13  ;;  %v1032_v29 = vcombine.low %v6668_v17, %v6645_v39 }
 0x1e7   : > { %3185 = vrot.lane.b32.xlu0 %v3023_v21, %s5189_s7  ;;  %v1083_v19 = vcombine.high %v1031_v22, %v1063_v1  ;;  %v7971_v13 = vld [vmem:[#allocation35_spill] sm:$0xff]  ;;  %v1082_v60 = vcombine.low %v1031_v22, %v1063_v1 }
 0x1e8   : > { %1253 = vrot.lane.b32.xlu1 %v1217_v0, %s5188_s5  ;;  %v6640_v21 = vrot.slane %v1500_v5, %v5627_v62  ;;  %v1137_v0 = vcombine.high %v7957_v61, %v7956_v52  ;;  %v7960_v52 = vld [vmem:[#allocation53_spill] sm:$0xff]  ;;  %v6694_v38 = vrot.slane %v1121_v36, %v5627_v62 }
 0x1e9   : > { %v6642_v12 = vpop.permute.xlu0 %3802  ;;  %v6649_v14 = vpop.permute.xlu1 %3782  ;;  %v1105_v61 = vcombine.high %v7960_v52, %v7959_v6  ;;  %v1089_v6 = vcombine.high %v7966_v58, %v7965_v11  ;;  %v6702_v11 = vrot.slane %v1064_v2, %v5673_v15  ;;  %v1040_v2 = vrot.slane %v1032_v29, %v5673_v15 }
 0x1ea   : > { %7955 = vst [vmem:[#allocation68_spill] sm:$0xff] %v6642_v12  ;;  %7958 = vst [vmem:[#allocation71_spill] sm:$0xff] %v6649_v14  ;;  %v1548_v5 = vcombine.low %v6637_v25, %v6640_v21  ;;  %v6680_v52 = vrot.slane %v1137_v0, %v5627_v62  ;;  %v7970_v0 = vld [vmem:[#allocation32_spill] sm:$0xff]  ;;  %v3992_v1 = vcombine.low %v6606_v30, %v6642_v12 }
 0x1eb   : > { %1261 = vrot.lane.b32.xlu0 %v1219_v33, %s5186_s8  ;;  %v3453_v42 = vcombine.high %v7971_v13, %v7970_v0  ;;  %v6709_v7 = vrot.slane %v1089_v6, %v5627_v62 }
 0x1ec   : > { %3213 = vrot.lane.b32.xlu1 %v3159_v27, %s5189_s7  ;;  %v6675_v33 = vrot.slane %v1548_v5, %v5673_v15  ;;  %v6688_v27 = vrot.slane %v1516_v41, %v5673_v15  ;;  %v6691_v5 = vrot.slane %v1105_v61, %v5627_v62  ;;  %v1200_v36 = vcombine.low %v6694_v38, %v6680_v52 }
 0x1ed   : > { %v6672_v55 = vpop.permute.xlu0 %3776  ;;  %v6682_v56 = vpop.permute.xlu1 %3790  ;;  %v3960_v61 = vcombine.low %v6570_v24, %v6584_v34  ;;  %v7982_v24 = vld [vmem:[#allocation31_spill] sm:$0xff]  ;;  %v1201_v40 = vcombine.high %v6694_v38, %v6680_v52 }
 0x1ee   : > { %7963 = vst [vmem:[#allocation64_spill] sm:$0xff] %v6672_v55  ;;  %7964 = vst [vmem:[#allocation60_spill] sm:$0xff] %v6675_v33  ;;  %v3976_v0 = vcombine.low %v6649_v14, %v6682_v56  ;;  %v1168_v6 = vcombine.low %v6709_v7, %v6691_v5  ;;  %v3557_v34 = vcombine.high %v7982_v24, %v7981_v57  ;;  %v5027_v57 = vld [vmem:[#allocation2 + $0xaa] sm:$0xff]  ;;  %v5028_v24 = vld [vmem:[#allocation2 + $0x7a] sm:$0xff] }
 0x1ef   : > { %7967 = vst [vmem:[#allocation65_spill] sm:$0xff] %v6682_v56  ;;  %1233 = vrot.lane.b32.xlu0 %v1083_v19, %s5186_s8  ;;  %7968 = vst [vmem:[#allocation69_spill] sm:$0xff] %v6688_v27  ;;  %v7972_v19 = vld [vmem:[#allocation25_spill] sm:$0xff]  ;;  %v6759_v31 = vrot.slane %v3960_v61, %v5627_v62  ;;  %v5029_v61 = vld [vmem:[#allocation2 + $0x4a] sm:$0xff]  ;;  %v1169_v38 = vcombine.high %v6709_v7, %v6691_v5 }
 0x1f0   : > { %1257 = vrot.lane.b32.xlu1 %v1218_v59, %s5190_s12  ;;  %v3421_v41 = vcombine.high %v7973_v32, %v7972_v19  ;;  %v7975_v32 = vld [vmem:[#allocation26_spill] sm:$0xff]  ;;  %v7976_v19 = vld [vmem:[#allocation28_spill] sm:$0xff]  ;;  %v6744_v30 = vrot.slane %v3976_v0, %v5627_v62  ;;  %v3373_v0 = vcombine.high %v5028_v24, %v5027_v57 }
 0x1f1   : > { %v6697_v58 = vpop.permute.xlu0 %3784  ;;  %v6713_v59 = vpop.permute.xlu1 %3798  ;;  %v3389_v13 = vcombine.high %v7976_v19, %v7975_v32  ;;  %v7979_v32 = vld [vmem:[#allocation38_spill] sm:$0xff]  ;;  %v7980_v19 = vld [vmem:[#allocation41_spill] sm:$0xff]  ;;  %7986 = vst [vmem:[#allocation58_spill] sm:$0xff] %v6759_v31 }
 0x1f2   : > { %7969 = vst [vmem:[#allocation56_spill] sm:$0xff] %v6697_v58  ;;  %7974 = vst [vmem:[#allocation52_spill] sm:$0xff] %v6713_v59  ;;  %v6732_v29 = vrot.slane %v3421_v41, %v5673_v15  ;;  %v3589_v56 = vcombine.high %v7980_v19, %v7979_v32  ;;  %v6754_v32 = vrot.slane %v1168_v6, %v5673_v15  ;;  %v7985_v19 = vld [vmem:[#allocation33_spill] sm:$0xff] }
 0x1f3   : > { %3597 = vrot.lane.b32.xlu0 %v3453_v42, %s5188_s5  ;;  %v1084_v42 = vcombine.low %v1040_v2, %v6702_v11  ;;  %7983 = vst [vmem:[#allocation62_spill] sm:$0xff] %v6744_v30  ;;  %v6750_v41 = vrot.slane %v3389_v13, %v5673_v15  ;;  %v5030_v57 = vld [vmem:[#allocation2 + $0x1a] sm:$0xff]  ;;  %v5031_v24 = vld [vmem:[#allocation2 + $0x92] sm:$0xff]  ;;  %v4024_v46 = vcombine.low %v6759_v31, %v6744_v30 }
 0x1f4   : > { %1229 = vrot.lane.b32.xlu1 %v1082_v60, %s5190_s12  ;;  %v6739_v60 = vrot.slane %v1200_v36, %v5673_v15  ;;  %v7984_v36 = vld [vmem:[#allocation30_spill] sm:$0xff] }
 0x1f5   : > { %v6728_v22 = vpop.permute.xlu0 %3792  ;;  %v6734_v14 = vpop.permute.xlu1 %3806  ;;  %v3525_v44 = vcombine.high %v7985_v19, %v7984_v36  ;;  %v6776_v36 = vrot.slane %v3557_v34, %v5673_v15  ;;  %v5033_v34 = vld [vmem:[#allocation2 + $0x32] sm:$0xff] }
 0x1f6   : > { %7977 = vst [vmem:[#allocation67_spill] sm:$0xff] %v6728_v22  ;;  %7978 = vst [vmem:[#allocation70_spill] sm:$0xff] %v6734_v14  ;;  %v4008_v12 = vcombine.low %v6713_v59, %v6734_v14  ;;  %v6762_v59 = vrot.slane %v3992_v1, %v5627_v62  ;;  %v1220_v19 = vcombine.low %v6754_v32, %v6739_v60  ;;  %v5032_v14 = vld [vmem:[#allocation2 + $0x62] sm:$0xff] }
 0x1f7   : > { %1237 = vrot.lane.b32.xlu0 %v1084_v42, %s5191_s14  ;;  %v3341_v1 = vcombine.high %v5030_v57, %v5029_v61  ;;  %v3539_v16 = vrot.slane %v3525_v44, %v5673_v15  ;;  %v3325_v37 = vcombine.high %v5034_v20, %v5033_v34  ;;  %v6786_v61 = vrot.slane %v3373_v0, %v5627_v62  ;;  %v5035_v0 = vld [vmem:[#allocation2 + $0xb2] sm:$0xff]  ;;  %v5036_v34 = vld [vmem:[#allocation2 + $0x82] sm:$0xff] }
 0x1f8   : > { %3625 = vrot.lane.b32.xlu1 %v3589_v56, %s5188_s5  ;;  %7987 = vst [vmem:[#allocation54_spill] sm:$0xff] %v6762_v59  ;;  %v6765_v13 = vrot.slane %v4008_v12, %v5627_v62  ;;  %v3454_v56 = vcombine.low %v6750_v41, %v6732_v29  ;;  %v3357_v12 = vcombine.high %v5032_v14, %v5031_v24 }
 0x1f9   : > { %v6767_v42 = vpop.permute.xlu0 %3800  ;;  %v6771_v6 = vpop.permute.xlu1 %3780  ;;  %v1065_v14 = vcombine.high %v6654_v63, %v6629_v51  ;;  %v1085_v24 = vcombine.high %v1040_v2, %v6702_v11  ;;  %v3590_v44 = vcombine.low %v3539_v16, %v6776_v36  ;;  %v3509_v51 = vcombine.high %v5036_v34, %v5035_v0  ;;  %v5039_v0 = vld [vmem:[#allocation2 + $0x9a] sm:$0xff]  ;;  %v5040_v34 = vld [vmem:[#allocation2 + $0x6a] sm:$0xff] }
 0x1fa   : > { %7988 = vst [vmem:[#allocation50_spill] sm:$0xff] %v6765_v13  ;;  %7989 = vst [vmem:[#allocation66_spill] sm:$0xff] %v6771_v6  ;;  %v4056_v28 = vcombine.low %v6762_v59, %v6765_v13  ;;  %v6803_v20 = vrot.slane %v3357_v12, %v5627_v62  ;;  %v1033_v63 = vcombine.high %v6668_v17, %v6645_v39  ;;  %v5038_v12 = vld [vmem:[#allocation2 + $0x22] sm:$0xff] }
 0x1fb   : > { %3601 = vrot.lane.b32.xlu0 %v3454_v56, %s5190_s12  ;;  %v6813_v11 = vrot.slane %v3325_v37, %v5627_v62  ;;  %v3493_v59 = vcombine.high %v5040_v34, %v5039_v0  ;;  %v1079_v17 = vrot.slane %v1065_v14, %v5673_v15  ;;  %v3856_v34 = vcombine.low %v6728_v22, %v6767_v42 }
 0x1fc   : > { %1265 = vrot.lane.b32.xlu1 %v1220_v19, %s5191_s14  ;;  %v6794_v31 = vrot.slane %v4056_v28, %v5673_v15  ;;  %v6800_v19 = vrot.slane %v3341_v1, %v5627_v62  ;;  %v6809_v28 = vrot.slane %v4024_v46, %v5673_v15  ;;  %v3436_v2 = vcombine.low %v6803_v20, %v6786_v61  ;;  %v5037_v1 = vld [vmem:[#allocation2 + $0x52] sm:$0xff] }
 0x1fd   : > { %v6790_v57 = vpop.permute.xlu0 %4278  ;;  %v6796_v56 = vpop.permute.xlu1 %3788  ;;  %v3477_v30 = vcombine.high %v5038_v12, %v5037_v1  ;;  %v3455_v46 = vcombine.high %v6750_v41, %v6732_v29  ;;  %v1221_v12 = vcombine.high %v6754_v32, %v6739_v60  ;;  %v3523_v29 = vrot.slane %v3509_v51, %v5627_v62 }
 0x1fe   : > { %7990 = vst [vmem:[#allocation61_spill] sm:$0xff] %v6790_v57  ;;  %7991 = vst [vmem:[#allocation57_spill] sm:$0xff] %v6794_v31  ;;  %v3404_v0 = vcombine.low %v6813_v11, %v6800_v19  ;;  %v3840_v41 = vcombine.low %v6771_v6, %v6796_v56  ;;  %v1047_v14 = vrot.slane %v1033_v63, %v5673_v15  ;;  %v7997_v6 = vmov 0.0  }
 0x1ff   : > { %7992 = vst [vmem:[#allocation53_spill] sm:$0xff] %v6796_v56  ;;  %1241 = vrot.lane.b32.xlu0 %v1085_v24, %s5187_s25  ;;  %7993 = vst [vmem:[#allocation63_spill] sm:$0xff] %v6809_v28  ;;  %v5041_v24 = vld [vmem:[#allocation2 + $0x3a] sm:$0xff]  ;;  %v6841_v52 = vrot.slane %v3436_v2, %v5673_v15  ;;  %v3491_v32 = vrot.slane %v3477_v30, %v5627_v62  ;;  %v3507_v60 = vrot.slane %v3493_v59, %v5627_v62 }
 0x200   : > { %3629 = vrot.lane.b32.xlu1 %v3590_v44, %s5190_s12  ;;  %v5042_v44 = vld [vmem:[#allocation2 + $0xa] sm:$0xff]  ;;  %v3824_v51 = vcombine.low %v6672_v55, %v6697_v58  ;;  %v1086_v63 = vcombine.low %v1047_v14, %v1079_v17  ;;  %v3591_v2 = vcombine.high %v3539_v16, %v6776_v36  ;;  %v1215_v30 = vrot.slane %v1201_v40, %v5673_v15  ;;  %v794_v40 = vld [vmem:[%s7672_s2] sm:$0xf] }
 0x201   : > { %v6817_v39 = vpop.permute.xlu0 %4286  ;;  %v3461_v37 = vcombine.high %v5042_v44, %v5041_v24  ;;  %v6826_v1 = vpop.permute.xlu1 %3796  ;;  %v6856_v24 = vrot.slane %v3404_v0, %v5673_v15  ;;  %v3572_v59 = vcombine.low %v3507_v60, %v3523_v29  ;;  %v6860_v44 = vrot.slane %v3840_v41, %v5627_v62  ;;  %4870 = vmatmul.mubr.msk.f32.vlgmr.msra.gmra.mrb[0].mxu1 %vm795_vm13, %v794_v40 }
 0x202   : > { %7994 = vst [vmem:[#allocation59_spill] sm:$0xff] %v6817_v39  ;;  %v1183_v16 = vrot.slane %v1169_v38, %v5673_v15  ;;  %v6873_v0 = vrot.slane %v3824_v51, %v5627_v62  ;;  %v6876_v41 = vrot.slane %v3856_v34, %v5627_v62  ;;  %v3573_v13 = vcombine.high %v3507_v60, %v3523_v29 }
 0x203   : > { %3605 = vrot.lane.b32.xlu0 %v3455_v46, %s5186_s8  ;;  %v3475_v7 = vrot.slane %v3461_v37, %v5627_v62  ;;  %v3456_v37 = vcombine.low %v6856_v24, %v6841_v52  ;;  %v3580_v58 = vrot.slane %v3572_v59, %v5673_v15  ;;  %1363 = vmatprep.mubr.f32.mxu1 %v7997_v6 }
 0x204   : > { %1269 = vrot.lane.b32.xlu1 %v1221_v12, %s5187_s25  ;;  %v1222_v55 = vcombine.low %v1183_v16, %v1215_v30  ;;  %v3888_v51 = vcombine.low %v6873_v0, %v6860_v44  ;;  %v1087_v40 = vcombine.high %v1047_v14, %v1079_v17  ;;  %v6898_v59 = vrot.slane %v3573_v13, %v5673_v15 }
 0x205   : > { %v6849_v46 = vpop.permute.xlu0 %4294  ;;  %v6852_v5 = vpop.permute.xlu1 %3804  ;;  %v3540_v36 = vcombine.low %v3475_v7, %v3491_v32  ;;  %v3437_v6 = vcombine.high %v6803_v20, %v6786_v61  ;;  %v3405_v17 = vcombine.high %v6813_v11, %v6800_v19 }
 0x206   : > { %7995 = vst [vmem:[#allocation55_spill] sm:$0xff] %v6849_v46  ;;  %v3872_v12 = vcombine.low %v6826_v1, %v6852_v5  ;;  %v6914_v13 = vrot.slane %v3888_v51, %v5673_v15  ;;  %v4460_v51 = vcombine.low %v6790_v57, %v6817_v39 }
 0x207   : > { %1245 = vrot.lane.b32.xlu0 %v1086_v63, %s5192_s30  ;;  %v3548_v29 = vrot.slane %v3540_v36, %v5673_v15  ;;  %v3451_v14 = vrot.slane %v3437_v6, %v5673_v15  ;;  %v1223_v36 = vcombine.high %v1183_v16, %v1215_v30  ;;  %v3419_v11 = vrot.slane %v3405_v17, %v5673_v15 }
 0x208   : > { %3633 = vrot.lane.b32.xlu1 %v3591_v2, %s5186_s8  ;;  %v6879_v63 = vrot.slane %v3872_v12, %v5627_v62  ;;  %v3541_v12 = vcombine.high %v3475_v7, %v3491_v32  ;;  %8000 = vst [vmem:[#allocation26_spill] sm:$0xff] %v6914_v13  ;;  %v1685_v17 = vcombine.high %v6546_v49, %v6549_v43 }
 0x209   : > { %v6881_v2 = vpop.permute.xlu0 %4302  ;;  %v6884_v38 = vpop.permute.xlu1 %4282  ;;  %v3593_v30 = vcombine.high %v3548_v29, %v3580_v58  ;;  %v3457_v49 = vcombine.high %v6856_v24, %v6841_v52  ;;  %v1653_v43 = vcombine.high %v6557_v50, %v6542_v10  ;;  %v3459_v24 = vcombine.high %v3419_v11, %v3451_v14 }
 0x20a   : > { %7996 = vst [vmem:[#allocation51_spill] sm:$0xff] %v6884_v38  ;;  %v3920_v34 = vcombine.low %v6876_v41, %v6879_v63  ;;  %v4492_v6 = vcombine.low %v6849_v46, %v6881_v2  ;;  %v1699_v10 = vrot.slane %v1685_v17, %v5673_v15  ;;  %v1485_v32 = vcombine.high %v6529_v54, %v6551_v8 }
 0x20b   : > { %3609 = vrot.lane.b32.xlu0 %v3456_v37, %s5191_s14  ;;  %v3592_v37 = vcombine.low %v3548_v29, %v3580_v58  ;;  %v1453_v8 = vcombine.high %v6488_v23, %v6508_v53 }
 0x20c   : > { %1273 = vrot.lane.b32.xlu1 %v1222_v55, %s5192_s30  ;;  %v6903_v56 = vrot.slane %v3920_v34, %v5673_v15  ;;  %v6909_v55 = vrot.slane %v3541_v12, %v5673_v15  ;;  %v3458_v12 = vcombine.low %v3419_v11, %v3451_v14 }
 0x20d   : > { %v6895_v60 = vpop.permute.xlu0 %4276  ;;  %v6905_v22 = vpop.permute.xlu1 %4290 }
 0x20e   : > { %7998 = vst [vmem:[#allocation25_spill] sm:$0xff] %v6903_v56  ;;  %7999 = vst [vmem:[#allocation27_spill] sm:$0xff] %v6905_v22  ;;  %v3594_v20 = vcombine.low %v6909_v55, %v6898_v59  ;;  %v4476_v19 = vcombine.low %v6884_v38, %v6905_v22  ;;  %v8012_v22 = vld [vmem:[#allocation24_spill] sm:$0xff] }
 0x20f   : > { %1249 = vrot.lane.b32.xlu0 %v1087_v40, %s5189_s7 }
 0x210   : > { %3637 = vrot.lane.b32.xlu1 %v3592_v37, %s5191_s14  ;;  %v6940_v16 = vrot.slane %v4476_v19, %v5627_v62  ;;  %v1581_v19 = vcombine.high %v6688_v27, %v6675_v33 }
 0x211   : > { %v6917_v61 = vpop.permute.xlu0 %4284  ;;  %v6924_v7 = vpop.permute.xlu1 %4298 }
 0x213   : > { %3645 = vrot.lane.b32.xlu0 %v3594_v20, %s5192_s30  ;;  %v6949_v20 = vrot.slane %v4460_v51, %v5627_v62 }
 0x214   : > { %1277 = vrot.lane.b32.xlu1 %v1223_v36, %s5189_s7  ;;  %v6952_v36 = vrot.slane %v4492_v6, %v5627_v62 }
 0x215   : > { %v6935_v34 = vpop.permute.xlu0 %4292  ;;  %v6937_v40 = vpop.permute.xlu1 %4306  ;;  %v4524_v51 = vcombine.low %v6949_v20, %v6940_v16 }
 0x216   : > { %v4508_v37 = vcombine.low %v6924_v7, %v6937_v40 }
 0x217   : > { %3617 = vrot.lane.b32.xlu0 %v3458_v12, %s5192_s30  ;;  %v6996_v14 = vrot.slane %v4524_v51, %v5673_v15  ;;  %v3595_v51 = vcombine.high %v6909_v55, %v6898_v59  ;;  %v7033_v59 = vrot.slane %v1453_v8, %v5627_v62  ;;  %v4324_v55 = vcombine.low %v6895_v60, %v6917_v61 }
 0x218   : > { %3641 = vrot.lane.b32.xlu1 %v3593_v30, %s5187_s25  ;;  %v6955_v58 = vrot.slane %v4508_v37, %v5627_v62  ;;  %v1501_v30 = vcombine.high %v6588_v26, %v6613_v47  ;;  %v1549_v37 = vcombine.high %v6637_v25, %v6640_v21  ;;  %v1717_v26 = vcombine.high %v6580_v45, %v6575_v3 }
 0x219   : > { %v6957_v29 = vpop.permute.xlu0 %4300  ;;  %v6961_v12 = vpop.permute.xlu1 %4280  ;;  %v1469_v47 = vcombine.high %v6559_v9, %v6572_v18  ;;  %v1517_v25 = vcombine.high %v6634_v35, %v6620_v48  ;;  %v1667_v21 = vrot.slane %v1653_v43, %v5673_v15  ;;  %v8001_v35 = vld [vmem:[#allocation79_spill] sm:$0xff] }
 0x21a   : > { %v4556_v6 = vcombine.low %v6952_v36, %v6955_v58  ;;  %v6999_v54 = vrot.slane %v1501_v30, %v5627_v62  ;;  %v1563_v18 = vrot.slane %v1549_v37, %v5673_v15  ;;  %v1637_v17 = vcombine.high %v8001_v35, %v6533_v4  ;;  %v8002_v30 = vld [vmem:[#allocation19_spill] sm:$0xff]  ;;  %v8003_v4 = vld [vmem:[#allocation12_spill] sm:$0xff] }
 0x21b   : > { %1725 = vrot.lane.b32.xlu0 %v1581_v19, %s5188_s5  ;;  %v1719_v9 = vcombine.high %v1667_v21, %v1699_v10  ;;  %v7019_v23 = vrot.slane %v1469_v47, %v5627_v62  ;;  %v1621_v37 = vcombine.high %v8003_v4, %v8002_v30  ;;  %v4356_v47 = vcombine.low %v6935_v34, %v6957_v29  ;;  %v8006_v30 = vld [vmem:[#allocation15_spill] sm:$0xff]  ;;  %v8007_v4 = vld [vmem:[#allocation14_spill] sm:$0xff] }
 0x21c   : > { %3613 = vrot.lane.b32.xlu1 %v3457_v49, %s5187_s25  ;;  %v6981_v50 = vrot.slane %v4556_v6, %v5673_v15  ;;  %v7012_v49 = vrot.slane %v1485_v32, %v5627_v62  ;;  %v1531_v6 = vrot.slane %v1517_v25, %v5673_v15  ;;  %v8004_v32 = vld [vmem:[#allocation22_spill] sm:$0xff]  ;;  %v1589_v48 = vcombine.high %v8007_v4, %v8006_v30 }
 0x21d   : > { %v6977_v52 = vpop.permute.xlu0 %2689  ;;  %v6985_v19 = vpop.permute.xlu1 %4288  ;;  %v1532_v8 = vcombine.low %v7033_v59, %v7019_v23  ;;  %v7055_v3 = vrot.slane %v1621_v37, %v5627_v62  ;;  %v7068_v30 = vrot.slane %v4356_v47, %v5627_v62 }
 0x21e   : > { %v4340_v53 = vcombine.low %v6961_v12, %v6985_v19  ;;  %v1564_v35 = vcombine.low %v7012_v49, %v6999_v54  ;;  %v7076_v4 = vrot.slane %v1589_v48, %v5627_v62 }
 0x21f   : > { %3621 = vrot.lane.b32.xlu0 %v3459_v24, %s5189_s7  ;;  %v8005_v24 = vld [vmem:[#allocation23_spill] sm:$0xff]  ;;  %v1540_v48 = vrot.slane %v1532_v8, %v5673_v15  ;;  %v4089_v8 = vcombine.high %v6809_v28, %v6794_v31  ;;  %v8017_v28 = vld [vmem:[#allocation66_spill] sm:$0xff] }
 0x220   : > { %1753 = vrot.lane.b32.xlu1 %v1717_v26, %s5188_s5  ;;  %v1605_v26 = vcombine.high %v8005_v24, %v8004_v32  ;;  %v7042_v32 = vrot.slane %v1637_v17, %v5627_v62  ;;  %v7049_v33 = vrot.slane %v4340_v53, %v5627_v62  ;;  %v7065_v53 = vrot.slane %v4324_v55, %v5627_v62 }
 0x221   : > { %v7004_v11 = vpop.permute.xlu0 %2693  ;;  %v7014_v43 = vpop.permute.xlu1 %4296  ;;  %v3889_v55 = vcombine.high %v6873_v0, %v6860_v44  ;;  %v8008_v0 = vld [vmem:[#allocation50_spill] sm:$0xff] }
 0x222   : > { %v7058_v17 = vrot.slane %v1605_v26, %v5627_v62  ;;  %v3953_v26 = vcombine.high %v6914_v13, %v6903_v56  ;;  %v8009_v13 = vld [vmem:[#allocation54_spill] sm:$0xff] }
 0x223   : > { %1761 = vrot.lane.b32.xlu0 %v1719_v9, %s5186_s8  ;;  %v1583_v9 = vcombine.high %v1531_v6, %v1563_v18  ;;  %v4057_v45 = vcombine.high %v8009_v13, %v8008_v0  ;;  %v8013_v13 = vld [vmem:[#allocation21_spill] sm:$0xff] }
 0x224   : > { %3649 = vrot.lane.b32.xlu1 %v3595_v51, %s5189_s7  ;;  %v1718_v51 = vcombine.low %v1667_v21, %v1699_v10  ;;  %v3921_v10 = vcombine.high %v6876_v41, %v6879_v63  ;;  %v1572_v21 = vrot.slane %v1564_v35, %v5673_v15  ;;  %v1700_v41 = vcombine.low %v7055_v3, %v7042_v32 }
 0x225   : > { %v2698_v25 = vpop.permute.xlu0 %2697  ;;  %v7044_v24 = vpop.permute.xlu1 %4304  ;;  %v1582_v35 = vcombine.low %v1531_v6, %v1563_v18  ;;  %v8014_v0 = vcombine.low %v8012_v22, %v8013_v13 }
 0x226   : > { %v4372_v27 = vcombine.low %v7014_v43, %v7044_v24  ;;  %v1584_v18 = vcombine.low %v1540_v48, %v1572_v21  ;;  %v3935_v6 = vrot.slane %v3921_v10, %v5673_v15  ;;  %v8010_v10 = vld [vmem:[#allocation62_spill] sm:$0xff] }
 0x227   : > { %1733 = vrot.lane.b32.xlu0 %v1583_v9, %s5186_s8  ;;  %v2723_v46 = vsel %vm773_vm6, %v8014_v0, %v6977_v52  ;;  %v4071_v52 = vrot.slane %v4057_v45, %v5673_v15  ;;  %v8016_v0 = vld [vmem:[#allocation53_spill] sm:$0xff]  ;;  %v8018_v45 = vld [vmem:[#allocation56_spill] sm:$0xff] }
 0x228   : > { %1757 = vrot.lane.b32.xlu1 %v1718_v51, %s5190_s12  ;;  %v7071_v9 = vrot.slane %v4372_v27, %v5627_v62  ;;  %v4388_v27 = vcombine.low %v7065_v53, %v7049_v33  ;;  %v1668_v51 = vcombine.low %v7076_v4, %v7058_v17 }
 0x229   : > { %v2702_v37 = vpop.permute.xlu0 %2701 }
 0x22a   : > { %v7080_v63 = vpop.permute.xlu1 %2661  ;;  %v4420_v47 = vcombine.low %v7068_v30, %v7071_v9  ;;  %v7107_v39 = vrot.slane %v4388_v27, %v5673_v15 }
 0x22b   : > { %4097 = vrot.lane.b32.xlu0 %v3953_v26, %s5188_s5  ;;  %v1708_v26 = vrot.slane %v1700_v41, %v5673_v15  ;;  %v1676_v41 = vrot.slane %v1668_v51, %v5673_v15 }
 0x22c   : > { %1729 = vrot.lane.b32.xlu1 %v1582_v35, %s5190_s12  ;;  %v7095_v44 = vrot.slane %v4420_v47, %v5673_v15  ;;  %v3903_v35 = vrot.slane %v3889_v55, %v5673_v15  ;;  %v8011_v47 = vld [vmem:[#allocation58_spill] sm:$0xff]  ;;  %v2724_v55 = vsel %vm775_vm7, %v2723_v46, %v7004_v11  ;;  %v1565_v46 = vcombine.high %v7012_v49, %v6999_v54 }
 0x22d   : > { %v2706_v56 = vpop.permute.xlu0 %2705  ;;  %v4025_v38 = vcombine.high %v8011_v47, %v8010_v10  ;;  %v2725_v47 = vsel %vm777_vm8, %v2724_v55, %v2698_v25  ;;  %v1720_v13 = vcombine.low %v1676_v41, %v1708_v26  ;;  %v8019_v55 = vld [vmem:[#allocation64_spill] sm:$0xff] }
 0x22e   : > { %v7099_v57 = vpop.permute.xlu1 %2665  ;;  %v3954_v31 = vcombine.low %v3903_v35, %v3935_v6  ;;  %v3825_v10 = vcombine.high %v8019_v55, %v8018_v45  ;;  %v8025_v45 = vld [vmem:[#allocation71_spill] sm:$0xff] }
 0x22f   : > { %1737 = vrot.lane.b32.xlu0 %v1584_v18, %s5191_s14  ;;  %v3873_v18 = vcombine.high %v6826_v1, %v6852_v5  ;;  %v3841_v1 = vcombine.high %v8017_v28, %v8016_v0  ;;  %v2726_v5 = vsel %vm779_vm9, %v2725_v47, %v2702_v37  ;;  %v4039_v25 = vrot.slane %v4025_v38, %v5673_v15 }
 0x230   : > { %4125 = vrot.lane.b32.xlu1 %v4089_v8, %s5188_s5  ;;  %v8015_v8 = vld [vmem:[#allocation67_spill] sm:$0xff]  ;;  %v2727_v11 = vsel %vm781_vm10, %v2726_v5, %v2706_v56  ;;  %v1585_v47 = vcombine.high %v1540_v48, %v1572_v21  ;;  %v1533_v38 = vcombine.high %v7033_v59, %v7019_v23  ;;  %v1701_v21 = vcombine.high %v7055_v3, %v7042_v32  ;;  %v8022_v48 = vld [vmem:[#allocation68_spill] sm:$0xff]  ;;  %v8026_v3 = vld [vmem:[#allocation73_spill] sm:$0xff] }
 0x231   : > { %v2710_v27 = vpop.permute.xlu0 %2709  ;;  %v3857_v51 = vcombine.high %v8015_v8, %v6767_v42  ;;  %v7140_v42 = vrot.slane %v3873_v18, %v5627_v62  ;;  %v8021_v8 = vld [vmem:[#allocation52_spill] sm:$0xff]  ;;  %v4090_v49 = vcombine.low %v4039_v25, %v4071_v52  ;;  %v7152_v18 = vrot.slane %v3841_v1, %v5627_v62 }
 0x232   : > { %v2670_v22 = vpop.permute.xlu1 %2669  ;;  %v2728_v28 = vsel %vm783_vm11, %v2727_v11, %v2710_v27  ;;  %v8023_v27 = vld [vmem:[#allocation72_spill] sm:$0xff]  ;;  %v8024_v11 = vld [vmem:[#allocation65_spill] sm:$0xff]  ;;  %v7163_v23 = vrot.slane %v3825_v10, %v5627_v62  ;;  %v3955_v1 = vcombine.high %v3903_v35, %v3935_v6  ;;  %v1547_v10 = vrot.slane %v1533_v38, %v5673_v15 }
 0x233   : > { %4101 = vrot.lane.b32.xlu0 %v3954_v31, %s5190_s12  ;;  %v8020_v31 = vld [vmem:[#allocation70_spill] sm:$0xff]  ;;  %v3993_v5 = vcombine.high %v8023_v27, %v8022_v48  ;;  %v3977_v55 = vcombine.high %v8025_v45, %v8024_v11  ;;  %v8027_v32 = vld [vmem:[#allocation80_spill] sm:$0xff]  ;;  %v1715_v38 = vrot.slane %v1701_v21, %v5673_v15 }
 0x234   : > { %1765 = vrot.lane.b32.xlu1 %v1720_v13, %s5191_s14  ;;  %v4009_v0 = vcombine.high %v8021_v8, %v8020_v31  ;;  %v7149_v13 = vrot.slane %v3857_v51, %v5627_v62  ;;  %v1721_v8 = vcombine.high %v1676_v41, %v1708_v26 }
 0x235   : > { %v2714_v37 = vpop.permute.xlu0 %2713  ;;  %v4007_v6 = vrot.slane %v3993_v5, %v5627_v62  ;;  %v3991_v35 = vrot.slane %v3977_v55, %v5627_v62  ;;  %v4091_v55 = vcombine.high %v4039_v25, %v4071_v52 }
 0x236   : > { %v2674_v54 = vpop.permute.xlu1 %2673  ;;  %v2729_v56 = vsel %vm785_vm12, %v2728_v28, %v2714_v37  ;;  %v3936_v59 = vcombine.low %v7149_v13, %v7140_v42  ;;  %v1579_v28 = vrot.slane %v1565_v46, %v5673_v15  ;;  %v3961_v37 = vcombine.high %v8027_v32, %v8026_v3  ;;  %v8028_v46 = vld [vmem:[#allocation18_spill] sm:$0xff] }
 0x237   : > { %2735 = vmatprep.subr.mxu0 %v2729_v56  ;;  %1741 = vrot.lane.b32.xlu0 %v1585_v47, %s5187_s25  ;;  %v4023_v47 = vrot.slane %v4009_v0, %v5627_v62  ;;  %v3904_v56 = vcombine.low %v7163_v23, %v7152_v18  ;;  %v8029_v0 = vld [vmem:[#allocation16_spill] sm:$0xff] }
 0x238   : > { %4129 = vrot.lane.b32.xlu1 %v4090_v49, %s5190_s12  ;;  %v1669_v49 = vcombine.high %v7076_v4, %v7058_v17  ;;  %v8030_v26 = vcombine.low %v8028_v46, %v8029_v0  ;;  %v1586_v27 = vcombine.low %v1547_v10, %v1579_v28  ;;  %v3944_v11 = vrot.slane %v3936_v59, %v5673_v15 }
 0x239   : > { %v7167_v51 = vpop.permute.xlu0 %3189  ;;  %v3975_v17 = vrot.slane %v3961_v37, %v5627_v62  ;;  %v4072_v4 = vcombine.low %v4007_v6, %v4023_v47  ;;  %v4073_v59 = vcombine.high %v4007_v6, %v4023_v47  ;;  %v1587_v0 = vcombine.high %v1547_v10, %v1579_v28 }
 0x23a   : > { %v2678_v31 = vpop.permute.xlu1 %2677  ;;  %v2716_v41 = vsel %vm773_vm6, %v8030_v26, %v7080_v63  ;;  %v3912_v63 = vrot.slane %v3904_v56, %v5673_v15  ;;  %v1683_v21 = vrot.slane %v1669_v49, %v5673_v15  ;;  %v3937_v49 = vcombine.high %v7149_v13, %v7140_v42 }
 0x23b   : > { %4105 = vrot.lane.b32.xlu0 %v3955_v1, %s5186_s8  ;;  %v2717_v5 = vsel %vm775_vm7, %v2716_v41, %v7099_v57  ;;  %v4040_v3 = vcombine.low %v3975_v17, %v3991_v35  ;;  %v4080_v46 = vrot.slane %v4072_v4, %v5673_v15  ;;  %v4041_v56 = vcombine.high %v3975_v17, %v3991_v35 }
 0x23c   : > { %1769 = vrot.lane.b32.xlu1 %v1721_v8, %s5187_s25  ;;  %v2718_v1 = vsel %vm777_vm8, %v2717_v5, %v2670_v22  ;;  %v3956_v57 = vcombine.low %v3912_v63, %v3944_v11  ;;  %v1722_v25 = vcombine.low %v1683_v21, %v1715_v38  ;;  %v7217_v26 = vrot.slane %v4073_v59, %v5673_v15  ;;  %v8033_v59 = vld [vmem:[#allocation46_spill] sm:$0xff] }
 0x23d   : > { %v7187_v48 = vpop.permute.xlu0 %3193  ;;  %v2719_v32 = vsel %vm779_vm9, %v2718_v1, %v2674_v54  ;;  %v4877_v54 = vld [vmem:[%s7672_s2 + $0x10] sm:$0xf]  ;;  %v3905_v17 = vcombine.high %v7163_v23, %v7152_v18  ;;  %v4055_v4 = vrot.slane %v4041_v56, %v5673_v15  ;;  %v3951_v28 = vrot.slane %v3937_v49, %v5673_v15 }
 0x23e   : > { %v2682_v45 = vpop.permute.xlu1 %2681  ;;  %v2720_v37 = vsel %vm781_vm10, %v2719_v32, %v2678_v31  ;;  %v4048_v31 = vrot.slane %v4040_v3, %v5673_v15  ;;  %v1723_v5 = vcombine.high %v1683_v21, %v1715_v38  ;;  %v8032_v32 = vld [vmem:[#allocation45_spill] sm:$0xff]  ;;  %v8035_v38 = vld [vmem:[#allocation43_spill] sm:$0xff] }
 0x23f   : > { %1745 = vrot.lane.b32.xlu0 %v1586_v27, %s5192_s30  ;;  %v2721_v52 = vsel %vm783_vm11, %v2720_v37, %v2682_v45  ;;  %v8031_v27 = vmov 0.0   ;;  %v4094_v13 = vcombine.low %v4055_v4, %v7217_v26  ;;  %v3919_v45 = vrot.slane %v3905_v17, %v5673_v15  ;;  %v5022_v17 = vld [vmem:[#allocation2 + $0x7d] ss:$48 sps:$4 sm:$0xff]  }
 0x240   : > { %4133 = vrot.lane.b32.xlu1 %v4091_v55, %s5186_s8  ;;  %v4092_v41 = vcombine.low %v4048_v31, %v4080_v46  ;;  %v4093_v1 = vcombine.high %v4048_v31, %v4080_v46  ;;  %v2017_v37 = vcombine.high %v8033_v59, %v8032_v32  ;;  %v8038_v46 = vld [vmem:[#allocation34_spill] sm:$0xff] }
 0x241   : > { %v7201_v8 = vpop.permute.xlu0 %3197  ;;  %v3958_v23 = vcombine.low %v3919_v45, %v3951_v28  ;;  %v5019_v59 = vld [vmem:[#allocation2 + $0x5] ss:$48 sps:$4 sm:$0xff]  }
 0x242   : > { %v2686_v22 = vpop.permute.xlu1 %2685 }
 0x243   : > { %4109 = vrot.lane.b32.xlu0 %v3956_v57, %s5191_s14  ;;  %v2722_v47 = vsel %vm785_vm12, %v2721_v52, %v2686_v22  ;;  %v8034_v57 = vld [vmem:[#allocation39_spill] sm:$0xff]  ;;  %v3957_v22 = vcombine.high %v3912_v63, %v3944_v11  ;;  %v8042_v63 = vld [vmem:[#allocation36_spill] sm:$0xff] }
 0x244   : > { %1773 = vrot.lane.b32.xlu1 %v1722_v25, %s5192_s30  ;;  %2736 = vmatpush1.msra.mxu0 %v2722_v47  ;;  %v2121_v21 = vcombine.high %v8035_v38, %v8034_v57  ;;  %v8036_v25 = vld [vmem:[#allocation42_spill] sm:$0xff]  ;;  %v8039_v47 = vld [vmem:[#allocation37_spill] sm:$0xff] }
 0x245   : > { %v7214_v6 = vpop.permute.xlu0 %3201  ;;  %4878 = vmatmul.mubr.msk.f32.vlgmr.msra.gmra.mrb[0].mxu0 %vm795_vm13, %v4877_v54  ;;  %v8037_v54 = vld [vmem:[#allocation44_spill] sm:$0xff]  ;;  %v1985_v31 = vcombine.high %v8039_v47, %v8038_v46  ;;  %v8048_v47 = vld [vmem:[#allocation13_spill] sm:$0xff] }
 0x246   : > { %v3162_v35 = vpop.permute.xlu1 %3161  ;;  %3299 = vmatprep.mubr.f32.mxu0 %v8031_v27  ;;  %v2089_v56 = vcombine.high %v8037_v54, %v8036_v25  ;;  %v5020_v38 = vld [vmem:[#allocation2 + $0x1d] ss:$48 sps:$4 sm:$0xff]  }
 0x247   : > { %1749 = vrot.lane.b32.xlu0 %v1587_v0, %s5189_s7  ;;  %v3959_v0 = vcombine.high %v3919_v45, %v3951_v28  ;;  %v8044_v25 = vld [vmem:[#allocation78_spill] sm:$0xff]  ;;  %v8045_v54 = vld [vmem:[#allocation20_spill] sm:$0xff]  ;;  %v1999_v45 = vrot.slane %v1985_v31, %v5673_v15 }
 0x248   : > { %4137 = vrot.lane.b32.xlu1 %v4092_v41, %s5191_s14  ;;  %v2135_v41 = vrot.slane %v2121_v21, %v5673_v15  ;;  %v2103_v57 = vrot.slane %v2089_v56, %v5673_v15  ;;  %v8046_v46 = vcombine.low %v8044_v25, %v8045_v54  ;;  %v8047_v21 = vld [vmem:[#allocation17_spill] sm:$0xff]  ;;  %v4095_v25 = vcombine.high %v4055_v4, %v7217_v26 }
 0x249   : > { %v3206_v42 = vpop.permute.xlu0 %3205  ;;  %v8049_v32 = vcombine.low %v8047_v21, %v8048_v47  ;;  %v5024_v4 = vld [vmem:[#allocation2 + $0x25] ss:$48 sps:$4 sm:$0xff]  }
 0x24a   : > { %v3166_v10 = vpop.permute.xlu1 %3165  ;;  %v3216_v28 = vsel %vm773_vm6, %v8046_v46, %v3162_v35  ;;  %v2154_v21 = vcombine.low %v2103_v57, %v2135_v41 }
 0x24b   : > { %4145 = vrot.lane.b32.xlu0 %v4094_v13, %s5192_s30 }
 0x24c   : > { %1777 = vrot.lane.b32.xlu1 %v1723_v5, %s5189_s7  ;;  %v8040_v5 = vld [vmem:[#allocation47_spill] sm:$0xff] }
 0x24d   : > { %v3210_v18 = vpop.permute.xlu0 %3209 }
 0x24e   : > { %v3170_v55 = vpop.permute.xlu1 %3169 }
 0x24f   : > { %4117 = vrot.lane.b32.xlu0 %v3958_v23, %s5192_s30  ;;  %v8041_v23 = vld [vmem:[#allocation48_spill] sm:$0xff] }
 0x250   : > { %4141 = vrot.lane.b32.xlu1 %v4093_v1, %s5187_s25  ;;  %v2153_v11 = vcombine.high %v8041_v23, %v8040_v5  ;;  %v8043_v1 = vld [vmem:[#allocation40_spill] sm:$0xff]  ;;  %v7265_v5 = vrot.slane %v5022_v17, %v5627_v62  ;;  %v7279_v17 = vrot.slane %v5020_v38, %v5627_v62  ;;  %v7292_v38 = vrot.slane %v5019_v59, %v5627_v62 }
 0x251   : > { %v3182_v3 = vpop.permute.xlu0 %3181 }
 0x252   : > { %v3174_v52 = vpop.permute.xlu1 %3173  ;;  %v1968_v59 = vcombine.low %v7292_v38, %v7279_v17 }
 0x253   : > { %2161 = vrot.lane.b32.xlu0 %v2017_v37, %s5188_s5  ;;  %v1953_v37 = vcombine.high %v8043_v1, %v8042_v63  ;;  %v3223_v63 = vsel %vm773_vm6, %v8049_v32, %v7167_v51  ;;  %v2155_v1 = vcombine.high %v2103_v57, %v2135_v41  ;;  %v5026_v51 = vld [vmem:[#allocation2 + $0x85] ss:$48 sps:$4 sm:$0xff]   ;;  %v7311_v41 = vrot.slane %v5024_v4, %v5627_v62 }
 0x254   : > { %4113 = vrot.lane.b32.xlu1 %v3957_v22, %s5187_s25  ;;  %v5021_v22 = vld [vmem:[#allocation2 + $0x65] ss:$48 sps:$4 sm:$0xff]   ;;  %v3224_v35 = vsel %vm775_vm7, %v3223_v63, %v7187_v48  ;;  %v7298_v47 = vrot.slane %v5026_v51, %v5627_v62  ;;  %v4421_v57 = vcombine.high %v7068_v30, %v7071_v9  ;;  %v4389_v30 = vcombine.high %v7065_v53, %v7049_v33 }
 0x255   : > { %v7243_v49 = vpop.permute.xlu0 %1225  ;;  %v1967_v54 = vrot.slane %v1953_v37, %v5673_v15  ;;  %v7282_v48 = vrot.slane %v5021_v22, %v5627_v62  ;;  %v5025_v37 = vld [vmem:[#allocation2 + $0x6d] ss:$48 sps:$4 sm:$0xff]   ;;  %v1976_v9 = vrot.slane %v1968_v59, %v5673_v15  ;;  %v4589_v53 = vcombine.high %v6996_v14, %v6981_v50 }
 0x256   : > { %v3178_v13 = vpop.permute.xlu1 %3177 }
 0x257   : > { %4121 = vrot.lane.b32.xlu0 %v3959_v0, %s5189_s7  ;;  %v3217_v0 = vsel %vm775_vm7, %v3216_v28, %v3166_v10  ;;  %v3225_v10 = vsel %vm777_vm8, %v3224_v35, %v7201_v8  ;;  %v2019_v46 = vcombine.high %v1967_v54, %v1999_v45  ;;  %v2000_v22 = vcombine.low %v7282_v48, %v7265_v5 }
 0x258   : > { %2189 = vrot.lane.b32.xlu1 %v2153_v11, %s5188_s5  ;;  %v3218_v11 = vsel %vm777_vm8, %v3217_v0, %v3170_v55  ;;  %v3226_v55 = vsel %vm779_vm9, %v3225_v10, %v7214_v6  ;;  %v4879_v0 = vld [vmem:[%s7672_s2 + $0x14] sm:$0xf]  ;;  %v4453_v35 = vcombine.high %v7107_v39, %v7095_v44 }
 0x259   : > { %v3186_v56 = vpop.permute.xlu0 %3185  ;;  %v3219_v32 = vsel %vm779_vm9, %v3218_v11, %v3174_v52  ;;  %v3227_v8 = vsel %vm781_vm10, %v3226_v55, %v3206_v42  ;;  %v4435_v55 = vrot.slane %v4421_v57, %v5673_v15 }
 0x25a   : > { %v7270_v31 = vpop.permute.xlu1 %1253  ;;  %v3220_v26 = vsel %vm781_vm10, %v3219_v32, %v3178_v13  ;;  %v3228_v28 = vsel %vm783_vm11, %v3227_v8, %v3210_v18  ;;  %v5023_v13 = vld [vmem:[#allocation2 + $0xd] ss:$48 sps:$4 sm:$0xff]   ;;  %v4525_v8 = vcombine.high %v6949_v20, %v6940_v16  ;;  %v4341_v16 = vcombine.high %v6961_v12, %v6985_v19 }
 0x25b   : > { %2197 = vrot.lane.b32.xlu0 %v2155_v1, %s5186_s8  ;;  %v3221_v63 = vsel %vm783_vm11, %v3220_v26, %v3182_v3  ;;  %v7314_v3 = vrot.slane %v5025_v37, %v5627_v62  ;;  %v7326_v51 = vrot.slane %v5023_v13, %v5627_v62  ;;  %v4557_v26 = vcombine.high %v6952_v36, %v6955_v58 }
 0x25c   : > { %4149 = vrot.lane.b32.xlu1 %v4095_v25, %s5189_s7  ;;  %v3222_v18 = vsel %vm785_vm12, %v3221_v63, %v3186_v56  ;;  %v2008_v56 = vrot.slane %v2000_v22, %v5673_v15  ;;  %v2018_v25 = vcombine.low %v1967_v54, %v1999_v45  ;;  %v4403_v37 = vrot.slane %v4389_v30, %v5673_v15 }
 0x25d   : > { %v7289_v52 = vpop.permute.xlu0 %1261  ;;  %v2136_v10 = vcombine.low %v7314_v3, %v7298_v47  ;;  %v2104_v45 = vcombine.low %v7326_v51, %v7311_v41  ;;  %v4373_v36 = vcombine.high %v7014_v43, %v7044_v24  ;;  %v4357_v13 = vcombine.high %v6935_v34, %v6957_v29 }
 0x25e   : > { %v3214_v6 = vpop.permute.xlu1 %3213  ;;  %v2020_v32 = vcombine.low %v1976_v9, %v2008_v56  ;;  %v4454_v22 = vcombine.low %v4403_v37, %v4435_v55  ;;  %v4539_v20 = vrot.slane %v4525_v8, %v5673_v15  ;;  %v4325_v43 = vcombine.high %v6895_v60, %v6917_v61 }
 0x25f   : > { %2169 = vrot.lane.b32.xlu0 %v2019_v46, %s5186_s8  ;;  %v3229_v42 = vsel %vm785_vm12, %v3228_v28, %v3214_v6  ;;  %v2144_v4 = vrot.slane %v2136_v10, %v5673_v15  ;;  %v2112_v46 = vrot.slane %v2104_v45, %v5673_v15  ;;  %v7372_v24 = vrot.slane %v4373_v36, %v5627_v62 }
 0x260   : > { %2193 = vrot.lane.b32.xlu1 %v2154_v21, %s5190_s12  ;;  %3235 = vmatprep.subr.mxu0 %v3229_v42  ;;  %v4571_v21 = vrot.slane %v4557_v26, %v5673_v15  ;;  %v2021_v42 = vcombine.high %v1976_v9, %v2008_v56  ;;  %v2001_v34 = vcombine.high %v7282_v48, %v7265_v5  ;;  %v8051_v48 = vld [vmem:[#allocation27_spill] sm:$0xff] }
 0x261   : > { %3236 = vmatpush1.msra.mxu0 %v3222_v18  ;;  %v7318_v1 = vpop.permute.xlu0 %1233  ;;  %v2156_v6 = vcombine.low %v2112_v46, %v2144_v4  ;;  %v4509_v29 = vcombine.high %v6924_v7, %v6937_v40  ;;  %v7383_v59 = vrot.slane %v4357_v13, %v5627_v62  ;;  %v7386_v60 = vrot.slane %v4341_v16, %v5627_v62  ;;  %v8052_v18 = vld [vmem:[#allocation51_spill] sm:$0xff] }
 0x262   : > { %v7323_v11 = vpop.permute.xlu1 %1257  ;;  %4880 = vmatmul.mubr.msk.f32.vlgmr.msra.gmra.mrb[0].mxu0 %vm795_vm13, %v4879_v0  ;;  %v4590_v19 = vcombine.low %v4539_v20, %v4571_v21  ;;  %v1969_v61 = vcombine.high %v7292_v38, %v7279_v17  ;;  %v8050_v0 = vld [vmem:[#allocation55_spill] sm:$0xff]  ;;  %v4477_v7 = vcombine.high %v8052_v18, %v8051_v48  ;;  %v7397_v40 = vrot.slane %v4325_v43, %v5627_v62  ;;  %v8054_v38 = vld [vmem:[#allocation61_spill] sm:$0xff] }
 0x263   : > { %4597 = vrot.lane.b32.xlu0 %v4453_v35, %s5188_s5  ;;  %3735 = vmatprep.mubr.f32.mxu0 %v8031_v27  ;;  %v4493_v5 = vcombine.high %v8050_v0, %v6881_v2  ;;  %v4436_v57 = vcombine.low %v7383_v59, %v7372_v24  ;;  %v4455_v56 = vcombine.high %v4403_v37, %v4435_v55  ;;  %v8053_v17 = vld [vmem:[#allocation59_spill] sm:$0xff]  ;;  %v8055_v18 = vld [vmem:[#allocation77_spill] sm:$0xff] }
 0x264   : > { %2165 = vrot.lane.b32.xlu1 %v2018_v25, %s5190_s12  ;;  %v2015_v25 = vrot.slane %v2001_v34, %v5673_v15  ;;  %v4461_v10 = vcombine.high %v8054_v38, %v8053_v17  ;;  %v4523_v2 = vrot.slane %v4509_v29, %v5627_v62  ;;  %v2157_v9 = vcombine.high %v2112_v46, %v2144_v4  ;;  %v8058_v38 = vld [vmem:[#allocation76_spill] sm:$0xff] }
 0x265   : > { %v7339_v54 = vpop.permute.xlu0 %3597  ;;  %v2137_v45 = vcombine.high %v7314_v3, %v7298_v47  ;;  %v1983_v55 = vrot.slane %v1969_v61, %v5673_v15  ;;  %v4507_v26 = vrot.slane %v4493_v5, %v5627_v62  ;;  %v2105_v37 = vcombine.high %v7326_v51, %v7311_v41 }
 0x266   : > { %v7344_v33 = vpop.permute.xlu1 %1229  ;;  %v7423_v47 = vrot.slane %v4436_v57, %v5673_v15  ;;  %v4475_v3 = vrot.slane %v4461_v10, %v5627_v62  ;;  %v8059_v10 = vld [vmem:[#allocation74_spill] sm:$0xff] }
 0x267   : > { %2173 = vrot.lane.b32.xlu0 %v2020_v32, %s5191_s14  ;;  %v4404_v32 = vcombine.low %v7397_v40, %v7386_v60  ;;  %v2022_v8 = vcombine.low %v1983_v55, %v2015_v25  ;;  %v4572_v46 = vcombine.low %v4507_v26, %v4523_v2  ;;  %v2119_v41 = vrot.slane %v2105_v37, %v5673_v15 }
 0x268   : > { %4625 = vrot.lane.b32.xlu1 %v4589_v53, %s5188_s5  ;;  %v4491_v53 = vrot.slane %v4477_v7, %v5627_v62  ;;  %v4573_v51 = vcombine.high %v4507_v26, %v4523_v2  ;;  %v2023_v61 = vcombine.high %v1983_v55, %v2015_v25  ;;  %v8056_v7 = vld [vmem:[#allocation75_spill] sm:$0xff]  ;;  %v8060_v2 = vcombine.low %v8058_v38, %v8059_v10  ;;  %s5107_s5 = sshll.u32 %s5193_s19, 4  ;;  %s5108_s5 = int_to_ptr.vmem [resolvable:$false] %s5107_s5 }
 0x269   : > { %v7357_v58 = vpop.permute.xlu0 %1237  ;;  %v4412_v13 = vrot.slane %v4404_v32, %v5673_v15  ;;  %v8057_v57 = vcombine.low %v8055_v18, %v8056_v7  ;;  %p5110_p5 = scmp.lt.s32.totalorder %s7628_s20, %s5108_s5 }
 0x26a   : > { %v7359_v28 = vpop.permute.xlu1 %3625  ;;  %v4540_v16 = vcombine.low %v4475_v3, %v4491_v53  ;;  %v4587_v0 = vrot.slane %v4573_v51, %v5673_v15  ;;  %v1280_v25 = vsel %vm773_vm6, %v8060_v2, %v7243_v49  ;;  %v4881_v2 = vld [vmem:[%s7672_s2 + $0x18] sm:$0xf] }
 0x26b   : > { %4601 = vrot.lane.b32.xlu0 %v4454_v22, %s5190_s12  ;;  %v4591_v22 = vcombine.high %v4539_v20, %v4571_v21  ;;  %v4580_v21 = vrot.slane %v4572_v46, %v5673_v15  ;;  %v4541_v20 = vcombine.high %v4475_v3, %v4491_v53 }
 0x26c   : > { %2201 = vrot.lane.b32.xlu1 %v2156_v6, %s5191_s14  ;;  %v2151_v6 = vrot.slane %v2137_v45, %v5673_v15  ;;  %v4548_v29 = vrot.slane %v4540_v16, %v5673_v15  ;;  %v1281_v45 = vsel %vm775_vm7, %v1280_v25, %v7344_v33 }
 0x26d   : > { %v7374_v63 = vpop.permute.xlu0 %3601  ;;  %v4555_v17 = vrot.slane %v4541_v20, %v5673_v15  ;;  %v1282_v49 = vsel %vm777_vm8, %v1281_v45, %v7318_v1 }
 0x26e   : > { %v7380_v12 = vpop.permute.xlu1 %1265  ;;  %v2158_v62 = vcombine.low %v2119_v41, %v2151_v6  ;;  %v4592_v48 = vcombine.low %v4548_v29, %v4580_v21  ;;  %v2159_v26 = vcombine.high %v2119_v41, %v2151_v6  ;;  %v1283_v33 = vsel %vm779_vm9, %v1282_v49, %v7357_v58 }
 0x26f   : > { %2177 = vrot.lane.b32.xlu0 %v2021_v42, %s5187_s25  ;;  %v4456_v42 = vcombine.low %v4412_v13, %v7423_v47  ;;  %v4595_v3 = vcombine.high %v4555_v17, %v4587_v0  ;;  %v4593_v6 = vcombine.high %v4548_v29, %v4580_v21  ;;  %v4457_v41 = vcombine.high %v4412_v13, %v7423_v47  ;;  %v8062_v21 = vld [vmem:[#allocation38_spill] sm:$0xff]  ;;  %v8064_v47 = vld [vmem:[#allocation35_spill] sm:$0xff]  ;;  %v8065_v13 = vld [vmem:[#allocation32_spill] sm:$0xff] }
 0x270   : > { %4629 = vrot.lane.b32.xlu1 %v4590_v19, %s5190_s12 }
 0x271   : > { %v7401_v35 = vpop.permute.xlu0 %1241 }
 0x272   : > { %v7407_v30 = vpop.permute.xlu1 %3629  ;;  %v1284_v46 = vsel %vm781_vm10, %v1283_v33, %v7401_v35 }
 0x273   : > { %4605 = vrot.lane.b32.xlu0 %v4455_v56, %s5186_s8  ;;  %v1287_v56 = vsel %vm773_vm6, %v8057_v57, %v7270_v31  ;;  %v4594_v31 = vcombine.low %v4555_v17, %v4587_v0 }
 0x274   : > { %2205 = vrot.lane.b32.xlu1 %v2157_v9, %s5187_s25  ;;  %v1288_v9 = vsel %vm775_vm7, %v1287_v56, %v7323_v11 }
 0x275   : > { %v7420_v4 = vpop.permute.xlu0 %3605  ;;  %v1289_v53 = vsel %vm777_vm8, %v1288_v9, %v7289_v52  ;;  %v4437_v52 = vcombine.high %v7383_v59, %v7372_v24  ;;  %v4405_v24 = vcombine.high %v7397_v40, %v7386_v60 }
 0x276   : > { %v1270_v36 = vpop.permute.xlu1 %1269  ;;  %v1290_v11 = vsel %vm779_vm9, %v1289_v53, %v7380_v12 }
 0x277   : > { %2181 = vrot.lane.b32.xlu0 %v2022_v8, %s5192_s30  ;;  %v1291_v37 = vsel %vm781_vm10, %v1290_v11, %v1270_v36  ;;  %v4871_v36 = vld [vmem:[%s7672_s2 + $0x4] sm:$0xf]  ;;  %v4451_v51 = vrot.slane %v4437_v52, %v5673_v15  ;;  %v4419_v60 = vrot.slane %v4405_v24, %v5673_v15 }
 0x278   : > { %4633 = vrot.lane.b32.xlu1 %v4591_v22, %s5186_s8  ;;  %s4750_s8 = scalar_lea.sflag [#allocation5], %s5379_s10 }
 0x279   : > { %v1246_v43 = vpop.permute.xlu0 %1245  ;;  %v4459_v56 = vcombine.high %v4419_v60, %v4451_v51 }
 0x27a   : > { %v7432_v34 = vpop.permute.xlu1 %3633  ;;  %v1285_v12 = vsel %vm783_vm11, %v1284_v46, %v1246_v43 }
 0x27b   : > { %4609 = vrot.lane.b32.xlu0 %v4456_v42, %s5191_s14  ;;  %v4458_v42 = vcombine.low %v4419_v60, %v4451_v51 }
 0x27c   : > { %2209 = vrot.lane.b32.xlu1 %v2158_v62, %s5192_s30  ;;  %v8061_v62 = vld [vmem:[#allocation41_spill] sm:$0xff] }
 0x27d   : > { %v3610_v19 = vpop.permute.xlu0 %3609  ;;  %v8063_v20 = vcombine.low %v8061_v62, %v8062_v21 }
 0x27e   : > { %v1274_v5 = vpop.permute.xlu1 %1273 }
 0x27f   : > { %2185 = vrot.lane.b32.xlu0 %v2023_v61, %s5189_s7  ;;  %v1292_v1 = vsel %vm783_vm11, %v1291_v37, %v1274_v5  ;;  %v3659_v29 = vsel %vm773_vm6, %v8063_v20, %v7359_v28  ;;  %v8066_v61 = vcombine.low %v8064_v47, %v8065_v13 }
 0x280   : > { %4637 = vrot.lane.b32.xlu1 %v4592_v48, %s5191_s14  ;;  %v3660_v5 = vsel %vm775_vm7, %v3659_v29, %v7407_v30 }
 0x281   : > { %v1250_v32 = vpop.permute.xlu0 %1249  ;;  %v3652_v0 = vsel %vm773_vm6, %v8066_v61, %v7339_v54  ;;  %v3661_v48 = vsel %vm777_vm8, %v3660_v5, %v7432_v34 }
 0x282   : > { %v3638_v55 = vpop.permute.xlu1 %3637  ;;  %v1286_v59 = vsel %vm785_vm12, %v1285_v12, %v1250_v32  ;;  %v3653_v15 = vsel %vm775_vm7, %v3652_v0, %v7374_v63  ;;  %v4873_v0 = vld [vmem:[%s7672_s2 + $0x8] sm:$0xf] }
 0x283   : > { %4645 = vrot.lane.b32.xlu0 %v4594_v31, %s5192_s30  ;;  %v3654_v28 = vsel %vm777_vm8, %v3653_v15, %v7420_v4  ;;  %v3662_v7 = vsel %vm779_vm9, %v3661_v48, %v3638_v55 }
 0x284   : > { %2213 = vrot.lane.b32.xlu1 %v2159_v26, %s5189_s7  ;;  %v3655_v54 = vsel %vm779_vm9, %v3654_v28, %v3610_v19 }
 0x285   : > { %v3646_v8 = vpop.permute.xlu0 %3645 }
 0x286   : > { %v1278_v22 = vpop.permute.xlu1 %1277 }
 0x287   : > { %4649 = vrot.lane.b32.xlu0 %v4595_v3, %s5189_s7  ;;  %v1293_v58 = vsel %vm785_vm12, %v1292_v1, %v1278_v22  ;;  %v8067_v1 = vld [vmem:[#allocation82_spill] sm:$0xff]  ;;  %v8068_v22 = vld [vmem:[#allocation81_spill] sm:$0xff] }
 0x288   : > { %4641 = vrot.lane.b32.xlu1 %v4593_v6, %s5187_s25  ;;  %1299 = vmatprep.subr.mxu1 %v1293_v58  ;;  %v8069_v6 = vcombine.low %v8067_v1, %v8068_v22  ;;  %v8070_v58 = vld [vmem:[#allocation69_spill] sm:$0xff] }
 0x289   : > { %1300 = vmatpush1.msra.mxu1 %v1286_v59  ;;  %v3618_v35 = vpop.permute.xlu0 %3617 }
 0x28a   : > { %v3642_v16 = vpop.permute.xlu1 %3641  ;;  %4872 = vmatmul.mubr.msk.f32.vlgmr.msra.gmra.mrb[0].mxu1 %vm795_vm13, %v4871_v36  ;;  %v8071_v36 = vld [vmem:[#allocation60_spill] sm:$0xff] }
 0x28b   : > { %1863 = vmatprep.mubr.f32.mxu1 %v8031_v27  ;;  %v3663_v30 = vsel %vm781_vm10, %v3662_v7, %v3642_v16  ;;  %v8072_v24 = vcombine.low %v8070_v58, %v8071_v36  ;;  %v8073_v7 = vld [vmem:[#allocation63_spill] sm:$0xff] }
 0x28c   : > { %4613 = vrot.lane.b32.xlu1 %v4457_v41, %s5187_s25  ;;  %v3664_v34 = vsel %vm783_vm11, %v3663_v30, %v3646_v8  ;;  %v8076_v30 = vld [vmem:[#allocation26_spill] sm:$0xff]  ;;  %s5103_s25 = scalar_lea.vmem %s7628_s20, 128 }
 0x28d   : > { %v1726_v40 = vpop.permute.xlu0 %1725  ;;  %p5104_p13 = scmp.ne.s32.totalorder %s7628_s20, %s5103_s25 }
 0x28e   : > { %v3614_v43 = vpop.permute.xlu1 %3613  ;;  %v1780_v59 = vsel %vm773_vm6, %v8072_v24, %v1726_v40 }
 0x28f   : > { %v3656_v17 = vsel %vm781_vm10, %v3655_v54, %v3614_v43  ;;  %p5105_p12 = pnand %p5104_p13, %p8087_p1 }
 0x290   : > { %4617 = vrot.lane.b32.xlu1 %v4458_v42, %s5192_s30  ;;  %v3657_v10 = vsel %vm783_vm11, %v3656_v17, %v3618_v35  ;;  %v8077_v17 = vld [vmem:[#allocation25_spill] sm:$0xff] }
 0x291   : > { %v3622_v18 = vpop.permute.xlu0 %3621  ;;  %p5106_p10 = pneg %p5105_p12 }
 0x292   : > { %v1754_v57 = vpop.permute.xlu1 %1753  ;;  %v3658_v19 = vsel %vm785_vm12, %v3657_v10, %v3622_v18 }
 0x293   : > { %v1787_v12 = vsel %vm773_vm6, %v8069_v6, %v1754_v57  ;;  %v8074_v57 = vld [vmem:[#allocation57_spill] sm:$0xff] }
 0x294   : > { %4621 = vrot.lane.b32.xlu1 %v4459_v56, %s5189_s7  ;;  %v8075_v56 = vcombine.low %v8073_v7, %v8074_v57  ;;  %v8084_v57 = vcombine.low %v6996_v14, %v6981_v50  ;;  %s5109_s7 = scalar_lea.vmem %s5108_s5, 256 }
 0x295   : > { %v1762_v63 = vpop.permute.xlu0 %1761  ;;  %p5111_p7 = scmp.lt.s32.totalorder %s5109_s7, %s5103_s25 }
 0x296   : > { %v3650_v38 = vpop.permute.xlu1 %3649 }
 0x297   : > { %v3665_v4 = vsel %vm785_vm12, %v3664_v34, %v3650_v38  ;;  %p5112_p9 = por %p5111_p7, %p5110_p5 }
 0x298   : > { %3671 = vmatprep.subr.mxu0 %v3665_v4 }
 0x299   : > { %3672 = vmatpush1.msra.mxu0 %v3658_v19  ;;  %v1734_v25 = vpop.permute.xlu0 %1733  ;;  %p5113_p11 = pnand %p5112_p9, %p5106_p10 }
 0x29a   : > { %v1758_v9 = vpop.permute.xlu1 %1757  ;;  %4882 = vmatmul.mubr.msk.f32.vlgmr.msra.gmra.mrb[0].mxu0 %vm795_vm13, %v4881_v2 }
 0x29b   : > { %4235 = vmatprep.mubr.f32.mxu0 %v8031_v27  ;;  %v1788_v35 = vsel %vm775_vm7, %v1787_v12, %v1758_v9 }
 0x29c   : > { %v1789_v60 = vsel %vm777_vm8, %v1788_v35, %v1762_v63  ;;  %v8078_v63 = vcombine.low %v8076_v30, %v8077_v17  ;;  %v4875_v17 = vld [vmem:[%s7672_s2 + $0xc] sm:$0xf] }
 0x29d   : > { %v4098_v45 = vpop.permute.xlu0 %4097 }
 0x29e   : > { %v1730_v32 = vpop.permute.xlu1 %1729  ;;  %v4152_v38 = vsel %vm773_vm6, %v8078_v63, %v4098_v45 }
 0x29f   : > { %v1781_v16 = vsel %vm775_vm7, %v1780_v59, %v1730_v32 }
 0x2a0   : > { %v1782_v43 = vsel %vm777_vm8, %v1781_v16, %v1734_v25 }
 0x2a1   : > { %v1738_v31 = vpop.permute.xlu0 %1737 }
 0x2a2   : > { %v4126_v55 = vpop.permute.xlu1 %4125  ;;  %v1783_v62 = vsel %vm779_vm9, %v1782_v43, %v1738_v31 }
 0x2a3   : > { %v4159_v54 = vsel %vm773_vm6, %v8075_v56, %v4126_v55 }
 0x2a5   : > { %v4102_v26 = vpop.permute.xlu0 %4101 }
 0x2a6   : > { %v1766_v53 = vpop.permute.xlu1 %1765  ;;  %v4153_v10 = vsel %vm775_vm7, %v4152_v38, %v4102_v26 }
 0x2a7   : > { %v1790_v42 = vsel %vm779_vm9, %v1789_v60, %v1766_v53  ;;  %v8079_v60 = vld [vmem:[#allocation47_spill] sm:$0xff] }
 0x2a8   : > { %v8080_v43 = vcombine.low %v8041_v23, %v8079_v60 }
 0x2a9   : > { %v1742_v49 = vpop.permute.xlu0 %1741 }
 0x2aa   : > { %v4130_v11 = vpop.permute.xlu1 %4129  ;;  %v1784_v29 = vsel %vm781_vm10, %v1783_v62, %v1742_v49  ;;  %v8082_v62 = vld [vmem:[#allocation45_spill] sm:$0xff] }
 0x2ab   : > { %v4160_v34 = vsel %vm775_vm7, %v4159_v54, %v4130_v11 }
 0x2ad   : > { %v4106_v33 = vpop.permute.xlu0 %4105 }
 0x2ae   : > { %v1770_v37 = vpop.permute.xlu1 %1769  ;;  %v4154_v19 = vsel %vm777_vm8, %v4153_v10, %v4106_v33  ;;  %v4883_v33 = vld [vmem:[%s7672_s2 + $0x1c] sm:$0xf] }
 0x2af   : > { %v1791_v21 = vsel %vm781_vm10, %v1790_v42, %v1770_v37 }
 0x2b1   : > { %v1746_v8 = vpop.permute.xlu0 %1745 }
 0x2b2   : > { %v4134_v3 = vpop.permute.xlu1 %4133  ;;  %v1785_v13 = vsel %vm783_vm11, %v1784_v29, %v1746_v8 }
 0x2b3   : > { %v4161_v4 = vsel %vm777_vm8, %v4160_v34, %v4134_v3 }
 0x2b5   : > { %v4110_v52 = vpop.permute.xlu0 %4109 }
 0x2b6   : > { %v1774_v46 = vpop.permute.xlu1 %1773  ;;  %v4155_v32 = vsel %vm779_vm9, %v4154_v19, %v4110_v52 }
 0x2b7   : > { %v1792_v40 = vsel %vm783_vm11, %v1791_v21, %v1774_v46 }
 0x2b9   : > { %v1750_v41 = vpop.permute.xlu0 %1749 }
 0x2ba   : > { %v4138_v51 = vpop.permute.xlu1 %4137  ;;  %v1786_v5 = vsel %vm785_vm12, %v1785_v13, %v1750_v41 }
 0x2bb   : > { %v4162_v25 = vsel %vm779_vm9, %v4161_v4, %v4138_v51 }
 0x2bd   : > { %v4146_v20 = vpop.permute.xlu0 %4145 }
 0x2be   : > { %v1778_v47 = vpop.permute.xlu1 %1777 }
 0x2bf   : > { %v1793_v61 = vsel %vm785_vm12, %v1792_v40, %v1778_v47 }
 0x2c0   : > { %1799 = vmatprep.subr.mxu1 %v1793_v61 }
 0x2c1   : > { %1800 = vmatpush1.msra.mxu1 %v1786_v5  ;;  %v4118_v15 = vpop.permute.xlu0 %4117 }
 0x2c2   : > { %v4142_v48 = vpop.permute.xlu1 %4141  ;;  %4874 = vmatmul.mubr.msk.f32.vlgmr.msra.gmra.mrb[0].mxu1 %vm795_vm13, %v4873_v0 }
 0x2c3   : > { %2299 = vmatprep.mubr.f32.mxu1 %v8031_v27  ;;  %v4163_v31 = vsel %vm781_vm10, %v4162_v25, %v4142_v48 }
 0x2c4   : > { %v4164_v49 = vsel %vm783_vm11, %v4163_v31, %v4146_v20 }
 0x2c5   : > { %v2162_v18 = vpop.permute.xlu0 %2161 }
 0x2c6   : > { %v4114_v28 = vpop.permute.xlu1 %4113 }
 0x2c7   : > { %v4156_v55 = vsel %vm781_vm10, %v4155_v32, %v4114_v28 }
 0x2c8   : > { %v4157_v26 = vsel %vm783_vm11, %v4156_v55, %v4118_v15 }
 0x2c9   : > { %v4122_v2 = vpop.permute.xlu0 %4121 }
 0x2ca   : > { %v2190_v9 = vpop.permute.xlu1 %2189  ;;  %v4158_v37 = vsel %vm785_vm12, %v4157_v26, %v4122_v2 }
 0x2cb   : > { %v2223_v42 = vsel %vm773_vm6, %v8080_v43, %v2190_v9  ;;  %v8085_v9 = vcombine.low %v7107_v39, %v7095_v44 }
 0x2cd   : > { %v2198_v53 = vpop.permute.xlu0 %2197 }
 0x2ce   : > { %v4150_v45 = vpop.permute.xlu1 %4149 }
 0x2cf   : > { %v4165_v11 = vsel %vm785_vm12, %v4164_v49, %v4150_v45 }
 0x2d0   : > { %4171 = vmatprep.subr.mxu0 %v4165_v11 }
 0x2d1   : > { %4172 = vmatpush1.msra.mxu0 %v4158_v37  ;;  %v2170_v8 = vpop.permute.xlu0 %2169 }
 0x2d2   : > { %v2194_v3 = vpop.permute.xlu1 %2193  ;;  %4884 = vmatmul.mubr.msk.f32.vlgmr.msra.gmra.mrb[0].mxu0 %vm795_vm13, %v4883_v33  ;;  %v4885_v33 = vld [vmem:[%s7672_s2 + $0x20] sm:$0xf] }
 0x2d3   : > { %4735 = vmatprep.mubr.f32.mxu0 %v8031_v27  ;;  %v8081_v27 = vld [vmem:[#allocation46_spill] sm:$0xff]  ;;  %v2224_v29 = vsel %vm775_vm7, %v2223_v42, %v2194_v3 }
 0x2d4   : > { %v8083_v21 = vcombine.low %v8081_v27, %v8082_v62  ;;  %v2225_v61 = vsel %vm777_vm8, %v2224_v29, %v2198_v53 }
 0x2d5   : > { %v4598_v52 = vpop.permute.xlu0 %4597 }
 0x2d6   : > { %v2166_v46 = vpop.permute.xlu1 %2165  ;;  %v2216_v20 = vsel %vm773_vm6, %v8083_v21, %v2162_v18  ;;  %v4652_v32 = vsel %vm773_vm6, %v8085_v9, %v4598_v52 }
 0x2d7   : > { %v2217_v40 = vsel %vm775_vm7, %v2216_v20, %v2166_v46 }
 0x2d8   : > { %v2218_v0 = vsel %vm777_vm8, %v2217_v40, %v2170_v8  ;;  %v8086_v8 = vld [vmem:[#allocation49_spill] sm:$0xff] }
 0x2d9   : > { %v2174_v1 = vpop.permute.xlu0 %2173 }
 0x2da   : > { %v4626_v22 = vpop.permute.xlu1 %4625  ;;  %v2219_v23 = vsel %vm779_vm9, %v2218_v0, %v2174_v1 }
 0x2db   : > { %v4659_v56 = vsel %vm773_vm6, %v8084_v57, %v4626_v22 }
 0x2dd   : > { %v4602_v6 = vpop.permute.xlu0 %4601 }
 0x2de   : > { %v2202_v12 = vpop.permute.xlu1 %2201  ;;  %v4653_v31 = vsel %vm775_vm7, %v4652_v32, %v4602_v6 }
 0x2df   : > { %v2226_v5 = vsel %vm779_vm9, %v2225_v61, %v2202_v12 }
 0x2e1   : > { %v2178_v58 = vpop.permute.xlu0 %2177 }
 0x2e2   : > { %v4630_v36 = vpop.permute.xlu1 %4629  ;;  %v2220_v48 = vsel %vm781_vm10, %v2219_v23, %v2178_v58 }
 0x2e3   : > { %v4660_v63 = vsel %vm775_vm7, %v4659_v56, %v4630_v36 }
 0x2e5   : > { %v4606_v24 = vpop.permute.xlu0 %4605 }
 0x2e6   : > { %v2206_v59 = vpop.permute.xlu1 %2205  ;;  %v4654_v53 = vsel %vm777_vm8, %v4653_v31, %v4606_v24 }
 0x2e7   : > { %v2227_v15 = vsel %vm781_vm10, %v2226_v5, %v2206_v59 }
 0x2e9   : > { %v2182_v35 = vpop.permute.xlu0 %2181 }
 0x2ea   : > { %v4634_v16 = vpop.permute.xlu1 %4633  ;;  %v2221_v54 = vsel %vm783_vm11, %v2220_v48, %v2182_v35 }
 0x2eb   : > { %v4661_v34 = vsel %vm777_vm8, %v4660_v63, %v4634_v16 }
 0x2ed   : > { %v4610_v41 = vpop.permute.xlu0 %4609 }
 0x2ee   : > { %v2210_v51 = vpop.permute.xlu1 %2209  ;;  %v4655_v45 = vsel %vm779_vm9, %v4654_v53, %v4610_v41 }
 0x2ef   : > { %v2228_v18 = vsel %vm783_vm11, %v2227_v15, %v2210_v51 }
 0x2f1   : > { %v2186_v47 = vpop.permute.xlu0 %2185 }
 0x2f2   : > { %v4638_v13 = vpop.permute.xlu1 %4637  ;;  %v2222_v38 = vsel %vm785_vm12, %v2221_v54, %v2186_v47 }
 0x2f3   : > { %v4662_v50 = vsel %vm779_vm9, %v4661_v34, %v4638_v13 }
 0x2f5   : > { %v4646_v28 = vpop.permute.xlu0 %4645 }
 0x2f6   : > { %v2214_v7 = vpop.permute.xlu1 %2213 }
 0x2f7   : > { %v2229_v30 = vsel %vm785_vm12, %v2228_v18, %v2214_v7 }
 0x2f8   : > { %2235 = vmatprep.subr.mxu1 %v2229_v30 }
 0x2f9   : > { %2236 = vmatpush1.msra.mxu1 %v2222_v38  ;;  %v4650_v4 = vpop.permute.xlu0 %4649 }
 0x2fa   : > { %v4642_v14 = vpop.permute.xlu1 %4641  ;;  %4876 = vmatmul.mubr.msk.f32.vlgmr.msra.gmra.mrb[0].mxu1 %vm795_vm13, %v4875_v17 }
 0x2fb   : > { %v4663_v10 = vsel %vm781_vm10, %v4662_v50, %v4642_v14 }
 0x2fc   : > { %v4664_v2 = vsel %vm783_vm11, %v4663_v10, %v4646_v28 }
 0x2fd   : > { %v4665_v19 = vsel %vm785_vm12, %v4664_v2, %v4650_v4 }
 0x2fe   : > { %4671 = vmatprep.subr.mxu0 %v4665_v19  ;;  %v4614_v25 = vpop.permute.xlu1 %4613 }
 0x2ff   : > { %v4656_v49 = vsel %vm781_vm10, %v4655_v45, %v4614_v25 }
 0x302   : > { %v4618_v55 = vpop.permute.xlu1 %4617 }
 0x303   : > { %v4657_v26 = vsel %vm783_vm11, %v4656_v49, %v4618_v55 }
 0x306   : > { %v4622_v11 = vpop.permute.xlu1 %4621 }
 0x307   : > { %v4658_v39 = vsel %vm785_vm12, %v4657_v26, %v4622_v11 }
 0x308   : > { %4672 = vmatpush1.msra.mxu0 %v4658_v39 }
 0x309   : > { %4886 = vmatmul.mubr.msk.f32.vlgmr.msra.gmra.mrb[0].mxu0 %vm795_vm13, %v4885_v33 }
 0x3cd   : > { %v2301_v44 = vpop.f32.mrb[0].mxu1 }
 0x3ce   : > { %v2303_v37 = vpop.f32.mrb[1].mxu1  ;;  %v4895_v3 = vadd.f32 %v2301_v44, %v8086_v8 }
 0x3cf   : > { %v4897_v52 = vadd.f32 %v2303_v37, %v8086_v8 }
 0x3dc   : > { %v4737_v46 = vpop.f32.mrb[0].mxu0 }
 0x3dd   : > { %v4896_v1 = vadd.f32 %v4895_v3, %v4737_v46  ;;  %v4739_v22 = vpop.f32.mrb[1].mxu0 }
 0x3de   : > { %v4898_v6 = vadd.f32 %v4897_v52, %v4739_v22 }
 0x3e0   : > { %v4746_v12 = vcombine.low %v4896_v1, %v4898_v6 }
 0x3e2   : > { %4748 = vst [vmem:[%s255_s26] sm:$0xff] %v4746_v12 }
 0x3e3   : > { %5116 = shalt.err (!%p5113_p11)
}
 0x3e4   : > { %s5117_s10 = scalar_lea.hbm %s7626_s9, 128  ;;  %s5121_s30 = scalar_lea.hbm %s7674_s4, 256 }
 0x3e5   : > { %p5118_p3 = scmp.ne.s32.totalorder %s7626_s9, %s5117_s10  ;;  %p5122_p2 = scmp.lt.u32.totalorder %s7626_s9, %s7674_s4 }
 0x3e6   : > { %p5123_p4 = scmp.lt.u32.totalorder %s5121_s30, %s5117_s10  ;;  %p5125_p13 = scmp.lt.u32.totalorder %s5117_s10, %s7626_s9 }
 0x3e7   : > { %p5119_p8 = pnand %p5118_p3, %p8087_p1 }
 0x3e8   : > { %p5124_p6 = por %p5123_p4, %p5122_p2 }
 0x3e9   : > { %p5120_p0 = pneg %p5119_p8 }
 0x3ea   : > { %p5126_p12 = por %p5125_p13, %p5124_p6 }
 0x3ec   : > { %p5127_p10 = pnand %p5126_p12, %p5120_p0 }
 0x3ee   : > { %5130 = shalt.err (!%p5127_p10)
}
 0x3ef   : > { %4917 = dma.vmem_to_hbm [thread:$0]  (%p8087_p1), %s7628_s20, 128, %s7626_s9, %s4750_s8  }
 0x3f0 PF: > { %s4776_s29 = sand.u32 1, %s5161_s15   ;;  %p8088_p5 = scmp.ne.s32.totalorder %s7822_s28, 0 }
 0x3f1   : > { %p8089_p7 = scmp.ge.s32.totalorder %s5173_s18, 2  ;;  %s4777_s13 = scalar_lea.sflag [#allocation5], %s4776_s29 }
 0x3f3   : > { %p4927_p9 = pnand %p8089_p7, %p8088_p5 }
 0x3f5   : > { %5156 = dma.done.wait (!%p4927_p9), %s4777_s13, 128  }
 0x3f6   : > { %5158 = vsyncadd (!%p4927_p9), %s4777_s13, 4294967168  ;;  %p20_p11 = scmp.ge.s32.totalorder %s5244_s21, 4   ;;  %s8090_s15 = smov %s5165_s16 }
 0x3f7   : > { %s8091_s16 = smov %s5169_s17  ;;  %s8092_s17 = smov %s5256_s24 }
 0x3f8   : > { %s8093_s18 = smov %s5244_s21  ;;  %22 = sbr.rel (!%p20_p11) target bundleno = 7 (0x7), region = 103 }
 0x3ff   :  { %4782 = vsyncpa [#allocation4], 1 }
 0x400   :  { %4784 = vsyncpa [#allocation4 + $0x1], 1 }
 0x401   :  { %4785 = vsyncpa [#allocation7], 1 }
 0x402   :  { %4787 = vsyncpa [#allocation7 + $0x1], 1 }
 0x403   :  { %4788 = vsyncpa [#allocation5], 1 }
 0x404   :  { %4790 = vsyncpa [#allocation5 + $0x1], 1 }

</bundles_post_ra>
